<compile_context>
chip_gen: v7x
topology: tpu7x:2x2x1
jax: 0.10.0
libtpu: 0.0.40
codegen_flags: <defaults>
</compile_context>

<pallas_src>
import functools

import jax
import jax.numpy as jnp
from jax.experimental import pallas as pl
from jax.experimental.pallas import tpu as pltpu


def lstm_kernel(x_ref, wih0_ref, wih_ref, whh_ref, b_ref, wlin_ref, blin_ref,
                out_ref, *, seq_len, batch, num_layers):
    """Multi-layer LSTM (wavefront over layers) + linear head, single invocation.

    Gate columns are packed [i, f, o | g] (reordered from PyTorch's [i, f, g, o]).

    x_ref    : (T*B, I)     bf16  time-major input, flattened over (T, B)
    wih0_ref : (I, 4H)      bf16  layer-0 input weights (transposed, gate-reordered)
    wih_ref  : (L-1, H, 4H) bf16  layer 1..L-1 input weights
    whh_ref  : (L,   H, 4H) bf16  recurrent weights
    b_ref    : (L, 1, 4H)   f32   combined bias (b_ih + b_hh)
    wlin_ref : (H, O)       bf16  head weights (transposed)
    blin_ref : (1, O)       f32
    out_ref  : (B, O)       f32
    """
    T, B, L = seq_len, batch, num_layers
    H = whh_ref.shape[1]

    # Layer-0 input projection for all T timesteps in one MXU matmul, bias folded in
    # (off the serial recurrence path).
    gates_x0 = (jnp.dot(x_ref[...], wih0_ref[...], preferred_element_type=jnp.float32)
                + b_ref[0])                                   # (T*B, 4H) f32

    # Hoist weight/bias loads + bias broadcasts out of the unrolled recurrence.
    whh = [whh_ref[l] for l in range(L)]                      # each (H, 4H) bf16
    wih = [wih_ref[l] for l in range(L - 1)]                  # each (H, 4H) bf16
    b_bc = [jnp.broadcast_to(b_ref[l], (B, 4 * H)) for l in range(1, L)]

    h = [jnp.zeros((B, H), jnp.bfloat16) for _ in range(L)]   # h only feeds matmuls -> bf16
    c = [jnp.zeros((B, H), jnp.float32) for _ in range(L)]    # cell state stays f32
    h_last = None

    # Wavefront: diagonal d handles (layer l, time t = d - l). Every step on a diagonal
    # depends only on the previous diagonal's states (h_snap), so the up-to-L recurrent
    # matmuls per diagonal are independent and pipeline through the MXU.
    for d in range(T + L - 1):                                # static unroll
        h_snap = list(h)
        for l in range(L):
            t = d - l
            if t < 0 or t >= T:
                continue
            if l == 0:
                g = gates_x0[t * B:(t + 1) * B, :] + jnp.dot(
                    h_snap[0], whh[0], preferred_element_type=jnp.float32)
            else:
                g = (jnp.dot(h_snap[l - 1], wih[l - 1],
                             preferred_element_type=jnp.float32)
                     + jnp.dot(h_snap[l], whh[l],
                               preferred_element_type=jnp.float32)
                     + b_bc[l - 1])                           # (B, 4H) f32
            # Gate order [i, f, o | g]: sigmoid on 3H lanes, tanh on H lanes only.
            sg = jax.nn.sigmoid(g[:, :3 * H])
            i_g = sg[:, 0 * H:1 * H]
            f_g = sg[:, 1 * H:2 * H]
            o_g = sg[:, 2 * H:3 * H]
            g_g = jnp.tanh(g[:, 3 * H:4 * H])
            c_new = f_g * c[l] + i_g * g_g
            h_new = (o_g * jnp.tanh(c_new)).astype(jnp.bfloat16)
            c[l] = c_new
            h[l] = h_new
            if l == L - 1 and t == T - 1:
                h_last = h_new

    # Dropout(p=0.2) is identity at inference time.
    out_ref[...] = (jnp.dot(h_last, wlin_ref[...], preferred_element_type=jnp.float32)
                    + blin_ref[...])


def lstm_forward(x_btI, packed_params):
    """x_btI: (B, T, I) float32 (batch_first, like the PyTorch module)."""
    wih0, wih, whh, b, wlin, blin = packed_params
    B, T, I = x_btI.shape
    L, H, _ = whh.shape
    O = wlin.shape[1]

    # Pad batch to the 8-row sublane width so every per-step tile is full and aligned.
    B_pad = ((B + 7) // 8) * 8
    x_pad = jnp.zeros((B_pad, T, I), x_btI.dtype).at[:B].set(x_btI)
    # Time-major, flattened over (T, B_pad); bf16 MXU operands, f32 accumulation in-kernel.
    x_flat = jnp.transpose(x_pad, (1, 0, 2)).reshape(T * B_pad, I).astype(jnp.bfloat16)

    vmem = pl.BlockSpec(memory_space=pltpu.MemorySpace.VMEM)
    kernel = functools.partial(lstm_kernel, seq_len=T, batch=B_pad, num_layers=L)
    out_pad = pl.pallas_call(
        kernel,
        out_shape=jax.ShapeDtypeStruct((B_pad, O), jnp.float32),
        in_specs=[vmem] * 7,
        out_specs=vmem,
    )(x_flat, wih0, wih, whh, b, wlin, blin)
    return out_pad[:B]


def init_torch_params(key, input_size, hidden_size, output_size, num_layers):
    """PyTorch-layout parameters with the default U(-1/sqrt(H), 1/sqrt(H)) init."""
    H, I, O, L = hidden_size, input_size, output_size, num_layers
    k = 1.0 / float(jnp.sqrt(jnp.float32(H)))
    keys = jax.random.split(key, 4 * L + 2)

    def u(kk, shape):
        return jax.random.uniform(kk, shape, jnp.float32, -k, k)

    layers = []
    idx = 0
    for l in range(L):
        in_dim = I if l == 0 else H
        w_ih = u(keys[idx], (4 * H, in_dim)); idx += 1        # gate rows in [i, f, g, o]
        w_hh = u(keys[idx], (4 * H, H)); idx += 1
        b_ih = u(keys[idx], (4 * H,)); idx += 1
        b_hh = u(keys[idx], (4 * H,)); idx += 1
        layers.append((w_ih, w_hh, b_ih, b_hh))
    w_lin = u(keys[idx], (O, H)); idx += 1
    b_lin = u(keys[idx], (O,))
    return layers, w_lin, b_lin


def _reorder_gates(w):
    """Reorder the last (4H) axis from PyTorch's [i, f, g, o] to kernel order [i, f, o, g]."""
    H = w.shape[-1] // 4
    return jnp.concatenate(
        [w[..., 0:2 * H], w[..., 3 * H:4 * H], w[..., 2 * H:3 * H]], axis=-1)


def pack_params(layers, w_lin, b_lin):
    """Convert PyTorch-layout params into the kernel's transposed / gate-reordered layout."""
    L = len(layers)
    H = layers[0][1].shape[1]

    wih0 = _reorder_gates(layers[0][0].T).astype(jnp.bfloat16)           # (I, 4H)
    wih_rest, whh_all, b_all = [], [], []
    for l, (w_ih, w_hh, b_ih, b_hh) in enumerate(layers):
        if l > 0:
            wih_rest.append(_reorder_gates(w_ih.T))                      # (H, 4H)
        whh_all.append(_reorder_gates(w_hh.T))                           # (H, 4H)
        b_all.append(_reorder_gates(b_ih + b_hh)[None, :])               # (1, 4H)
    wih = (jnp.stack(wih_rest, axis=0) if wih_rest
           else jnp.zeros((1, H, 4 * H), jnp.float32)).astype(jnp.bfloat16)
    whh = jnp.stack(whh_all, axis=0).astype(jnp.bfloat16)                # (L, H, 4H)
    b = jnp.stack(b_all, axis=0)                                         # (L, 1, 4H) f32
    wlin = w_lin.T.astype(jnp.bfloat16)                                  # (H, O)
    blin = b_lin[None, :]                                                # (1, O) f32
    return wih0, wih, whh, b, wlin, blin


def lstm_reference(x_btI, layers, w_lin, b_lin):
    """Pure-JAX f32 reference with PyTorch LSTM semantics (gate order i, f, g, o)."""
    B, T, _ = x_btI.shape
    seq = x_btI
    for (w_ih, w_hh, b_ih, b_hh) in layers:
        H = w_hh.shape[1]
        h = jnp.zeros((B, H), jnp.float32)
        c = jnp.zeros((B, H), jnp.float32)
        outs = []
        for t in range(T):
            gates = seq[:, t, :] @ w_ih.T + h @ w_hh.T + b_ih + b_hh
            i_g = jax.nn.sigmoid(gates[:, 0 * H:1 * H])
            f_g = jax.nn.sigmoid(gates[:, 1 * H:2 * H])
            g_g = jnp.tanh(gates[:, 2 * H:3 * H])
            o_g = jax.nn.sigmoid(gates[:, 3 * H:4 * H])
            c = f_g * c + i_g * g_g
            h = o_g * jnp.tanh(c)
            outs.append(h)
        seq = jnp.stack(outs, axis=1)
    return seq[:, -1, :] @ w_lin.T + b_lin


if __name__ == "__main__":
    B, T = 2, 8
    input_size, hidden_size, output_size, num_layers = 16, 32, 8, 4

    key = jax.random.PRNGKey(0)
    kx, kp = jax.random.split(key)
    x = jax.random.normal(kx, (B, T, input_size), jnp.float32)
    layers, w_lin, b_lin = init_torch_params(kp, input_size, hidden_size,
                                             output_size, num_layers)
    packed = pack_params(layers, w_lin, b_lin)

    out = jax.jit(lstm_forward)(x, packed)
    out = jax.block_until_ready(out)

    ref = lstm_reference(x, layers, w_lin, b_lin)
    assert out.shape == (B, output_size)
    # bf16 matmul operands / bf16-carried h vs the pure-f32 reference -> relaxed tolerance.
    assert jnp.allclose(out, ref, atol=5e-2, rtol=5e-2), "mismatch vs reference"
    print("KERNEL_OK")
</pallas_src>

<mosaic_0001>
module attributes {stable_mosaic.version = 11 : i64} {
  func.func @lstm_kernel(%arg0: memref<64x16xbf16, #tpu.memory_space<vmem>>, %arg1: memref<16x128xbf16, #tpu.memory_space<vmem>>, %arg2: memref<3x32x128xbf16, #tpu.memory_space<vmem>>, %arg3: memref<4x32x128xbf16, #tpu.memory_space<vmem>>, %arg4: memref<4x1x128xf32, #tpu.memory_space<vmem>>, %arg5: memref<32x8xbf16, #tpu.memory_space<vmem>>, %arg6: memref<1x8xf32, #tpu.memory_space<vmem>>, %arg7: memref<8x8xf32, #tpu.memory_space<vmem>>) attributes {dimension_semantics = [], scalar_prefetch = 0 : i64, scratch_operands = 0 : i64, tpu.core_type = #tpu.core_type<tc>} {
    %c0 = arith.constant 0 : index
    %c0_0 = arith.constant 0 : index
    %0 = vector.load %arg0[%c0, %c0_0] : memref<64x16xbf16, #tpu.memory_space<vmem>>, vector<64x16xbf16>
    %c0_1 = arith.constant 0 : index
    %c0_2 = arith.constant 0 : index
    %1 = vector.load %arg1[%c0_1, %c0_2] : memref<16x128xbf16, #tpu.memory_space<vmem>>, vector<16x128xbf16>
    %cst = arith.constant dense<0.000000e+00> : vector<64x128xf32>
    %2 = tpu.matmul %0, %1, %cst {dimension_numbers = #tpu.dot_dimension_numbers<[1], [0], [0], [1], [0, 0, 1, 1], [], []>} : vector<64x16xbf16>, vector<16x128xbf16>, vector<64x128xf32> -> vector<64x128xf32>
    %c0_3 = arith.constant 0 : index
    %c0_4 = arith.constant 0 : index
    %c0_5 = arith.constant 0 : index
    %3 = vector.load %arg4[%c0_3, %c0_4, %c0_5] : memref<4x1x128xf32, #tpu.memory_space<vmem>>, vector<1x1x128xf32>
    %4 = vector.shape_cast %3 : vector<1x1x128xf32> to vector<1x128xf32>
    %5 = vector.broadcast %4 : vector<1x128xf32> to vector<64x128xf32>
    %6 = arith.addf %2, %5 : vector<64x128xf32>
    %c0_6 = arith.constant 0 : index
    %c0_7 = arith.constant 0 : index
    %c0_8 = arith.constant 0 : index
    %7 = vector.load %arg3[%c0_6, %c0_7, %c0_8] : memref<4x32x128xbf16, #tpu.memory_space<vmem>>, vector<1x32x128xbf16>
    %8 = vector.shape_cast %7 : vector<1x32x128xbf16> to vector<32x128xbf16>
    %c1 = arith.constant 1 : index
    %c0_9 = arith.constant 0 : index
    %c0_10 = arith.constant 0 : index
    %9 = vector.load %arg3[%c1, %c0_9, %c0_10] : memref<4x32x128xbf16, #tpu.memory_space<vmem>>, vector<1x32x128xbf16>
    %10 = vector.shape_cast %9 : vector<1x32x128xbf16> to vector<32x128xbf16>
    %c2 = arith.constant 2 : index
    %c0_11 = arith.constant 0 : index
    %c0_12 = arith.constant 0 : index
    %11 = vector.load %arg3[%c2, %c0_11, %c0_12] : memref<4x32x128xbf16, #tpu.memory_space<vmem>>, vector<1x32x128xbf16>
    %12 = vector.shape_cast %11 : vector<1x32x128xbf16> to vector<32x128xbf16>
    %c3 = arith.constant 3 : index
    %c0_13 = arith.constant 0 : index
    %c0_14 = arith.constant 0 : index
    %13 = vector.load %arg3[%c3, %c0_13, %c0_14] : memref<4x32x128xbf16, #tpu.memory_space<vmem>>, vector<1x32x128xbf16>
    %14 = vector.shape_cast %13 : vector<1x32x128xbf16> to vector<32x128xbf16>
    %c0_15 = arith.constant 0 : index
    %c0_16 = arith.constant 0 : index
    %c0_17 = arith.constant 0 : index
    %15 = vector.load %arg2[%c0_15, %c0_16, %c0_17] : memref<3x32x128xbf16, #tpu.memory_space<vmem>>, vector<1x32x128xbf16>
    %16 = vector.shape_cast %15 : vector<1x32x128xbf16> to vector<32x128xbf16>
    %c1_18 = arith.constant 1 : index
    %c0_19 = arith.constant 0 : index
    %c0_20 = arith.constant 0 : index
    %17 = vector.load %arg2[%c1_18, %c0_19, %c0_20] : memref<3x32x128xbf16, #tpu.memory_space<vmem>>, vector<1x32x128xbf16>
    %18 = vector.shape_cast %17 : vector<1x32x128xbf16> to vector<32x128xbf16>
    %c2_21 = arith.constant 2 : index
    %c0_22 = arith.constant 0 : index
    %c0_23 = arith.constant 0 : index
    %19 = vector.load %arg2[%c2_21, %c0_22, %c0_23] : memref<3x32x128xbf16, #tpu.memory_space<vmem>>, vector<1x32x128xbf16>
    %20 = vector.shape_cast %19 : vector<1x32x128xbf16> to vector<32x128xbf16>
    %c1_24 = arith.constant 1 : index
    %c0_25 = arith.constant 0 : index
    %c0_26 = arith.constant 0 : index
    %21 = vector.load %arg4[%c1_24, %c0_25, %c0_26] : memref<4x1x128xf32, #tpu.memory_space<vmem>>, vector<1x1x128xf32>
    %22 = vector.shape_cast %21 : vector<1x1x128xf32> to vector<1x128xf32>
    %23 = vector.shape_cast %22 : vector<1x128xf32> to vector<1x128xf32>
    %24 = vector.broadcast %23 : vector<1x128xf32> to vector<8x128xf32>
    %c2_27 = arith.constant 2 : index
    %c0_28 = arith.constant 0 : index
    %c0_29 = arith.constant 0 : index
    %25 = vector.load %arg4[%c2_27, %c0_28, %c0_29] : memref<4x1x128xf32, #tpu.memory_space<vmem>>, vector<1x1x128xf32>
    %26 = vector.shape_cast %25 : vector<1x1x128xf32> to vector<1x128xf32>
    %27 = vector.shape_cast %26 : vector<1x128xf32> to vector<1x128xf32>
    %28 = vector.broadcast %27 : vector<1x128xf32> to vector<8x128xf32>
    %c3_30 = arith.constant 3 : index
    %c0_31 = arith.constant 0 : index
    %c0_32 = arith.constant 0 : index
    %29 = vector.load %arg4[%c3_30, %c0_31, %c0_32] : memref<4x1x128xf32, #tpu.memory_space<vmem>>, vector<1x1x128xf32>
    %30 = vector.shape_cast %29 : vector<1x1x128xf32> to vector<1x128xf32>
    %31 = vector.shape_cast %30 : vector<1x128xf32> to vector<1x128xf32>
    %32 = vector.broadcast %31 : vector<1x128xf32> to vector<8x128xf32>
    %cst_33 = arith.constant 0.000000e+00 : bf16
    %33 = vector.broadcast %cst_33 : bf16 to vector<8x32xbf16>
    %cst_34 = arith.constant 0.000000e+00 : bf16
    %34 = vector.broadcast %cst_34 : bf16 to vector<8x32xbf16>
    %cst_35 = arith.constant 0.000000e+00 : bf16
    %35 = vector.broadcast %cst_35 : bf16 to vector<8x32xbf16>
    %cst_36 = arith.constant 0.000000e+00 : bf16
    %36 = vector.broadcast %cst_36 : bf16 to vector<8x32xbf16>
    %cst_37 = arith.constant 0.000000e+00 : f32
    %37 = vector.broadcast %cst_37 : f32 to vector<8x32xf32>
    %cst_38 = arith.constant 0.000000e+00 : f32
    %38 = vector.broadcast %cst_38 : f32 to vector<8x32xf32>
    %cst_39 = arith.constant 0.000000e+00 : f32
    %39 = vector.broadcast %cst_39 : f32 to vector<8x32xf32>
    %cst_40 = arith.constant 0.000000e+00 : f32
    %40 = vector.broadcast %cst_40 : f32 to vector<8x32xf32>
    %41 = vector.extract_strided_slice %6 {offsets = [0, 0], sizes = [8, 128], strides = [1, 1]} : vector<64x128xf32> to vector<8x128xf32>
    %cst_41 = arith.constant dense<0.000000e+00> : vector<8x128xf32>
    %42 = tpu.matmul %33, %8, %cst_41 {dimension_numbers = #tpu.dot_dimension_numbers<[1], [0], [0], [1], [0, 0, 1, 1], [], []>} : vector<8x32xbf16>, vector<32x128xbf16>, vector<8x128xf32> -> vector<8x128xf32>
    %43 = arith.addf %41, %42 : vector<8x128xf32>
    %44 = vector.extract_strided_slice %43 {offsets = [0, 0], sizes = [8, 96], strides = [1, 1]} : vector<8x128xf32> to vector<8x96xf32>
    %45 = arith.negf %44 : vector<8x96xf32>
    %46 = math.exp %45 : vector<8x96xf32>
    %cst_42 = arith.constant 1.000000e+00 : f32
    %47 = vector.broadcast %cst_42 : f32 to vector<8x96xf32>
    %48 = arith.addf %47, %46 : vector<8x96xf32>
    %49 = arith.divf %47, %48 : vector<8x96xf32>
    %50 = vector.extract_strided_slice %49 {offsets = [0, 0], sizes = [8, 32], strides = [1, 1]} : vector<8x96xf32> to vector<8x32xf32>
    %51 = vector.extract_strided_slice %49 {offsets = [0, 32], sizes = [8, 32], strides = [1, 1]} : vector<8x96xf32> to vector<8x32xf32>
    %52 = vector.extract_strided_slice %49 {offsets = [0, 64], sizes = [8, 32], strides = [1, 1]} : vector<8x96xf32> to vector<8x32xf32>
    %53 = vector.extract_strided_slice %43 {offsets = [0, 96], sizes = [8, 32], strides = [1, 1]} : vector<8x128xf32> to vector<8x32xf32>
    %54 = math.tanh %53 : vector<8x32xf32>
    %55 = arith.mulf %51, %37 : vector<8x32xf32>
    %56 = arith.mulf %50, %54 : vector<8x32xf32>
    %57 = arith.addf %55, %56 : vector<8x32xf32>
    %58 = math.tanh %57 : vector<8x32xf32>
    %59 = arith.mulf %52, %58 : vector<8x32xf32>
    %60 = arith.truncf %59 : vector<8x32xf32> to vector<8x32xbf16>
    %61 = vector.extract_strided_slice %6 {offsets = [8, 0], sizes = [8, 128], strides = [1, 1]} : vector<64x128xf32> to vector<8x128xf32>
    %cst_43 = arith.constant dense<0.000000e+00> : vector<8x128xf32>
    %62 = tpu.matmul %60, %8, %cst_43 {dimension_numbers = #tpu.dot_dimension_numbers<[1], [0], [0], [1], [0, 0, 1, 1], [], []>} : vector<8x32xbf16>, vector<32x128xbf16>, vector<8x128xf32> -> vector<8x128xf32>
    %63 = arith.addf %61, %62 : vector<8x128xf32>
    %64 = vector.extract_strided_slice %63 {offsets = [0, 0], sizes = [8, 96], strides = [1, 1]} : vector<8x128xf32> to vector<8x96xf32>
    %65 = arith.negf %64 : vector<8x96xf32>
    %66 = math.exp %65 : vector<8x96xf32>
    %cst_44 = arith.constant 1.000000e+00 : f32
    %67 = vector.broadcast %cst_44 : f32 to vector<8x96xf32>
    %68 = arith.addf %67, %66 : vector<8x96xf32>
    %69 = arith.divf %67, %68 : vector<8x96xf32>
    %70 = vector.extract_strided_slice %69 {offsets = [0, 0], sizes = [8, 32], strides = [1, 1]} : vector<8x96xf32> to vector<8x32xf32>
    %71 = vector.extract_strided_slice %69 {offsets = [0, 32], sizes = [8, 32], strides = [1, 1]} : vector<8x96xf32> to vector<8x32xf32>
    %72 = vector.extract_strided_slice %69 {offsets = [0, 64], sizes = [8, 32], strides = [1, 1]} : vector<8x96xf32> to vector<8x32xf32>
    %73 = vector.extract_strided_slice %63 {offsets = [0, 96], sizes = [8, 32], strides = [1, 1]} : vector<8x128xf32> to vector<8x32xf32>
    %74 = math.tanh %73 : vector<8x32xf32>
    %75 = arith.mulf %71, %57 : vector<8x32xf32>
    %76 = arith.mulf %70, %74 : vector<8x32xf32>
    %77 = arith.addf %75, %76 : vector<8x32xf32>
    %78 = math.tanh %77 : vector<8x32xf32>
    %79 = arith.mulf %72, %78 : vector<8x32xf32>
    %80 = arith.truncf %79 : vector<8x32xf32> to vector<8x32xbf16>
    %cst_45 = arith.constant dense<0.000000e+00> : vector<8x128xf32>
    %81 = tpu.matmul %60, %16, %cst_45 {dimension_numbers = #tpu.dot_dimension_numbers<[1], [0], [0], [1], [0, 0, 1, 1], [], []>} : vector<8x32xbf16>, vector<32x128xbf16>, vector<8x128xf32> -> vector<8x128xf32>
    %cst_46 = arith.constant dense<0.000000e+00> : vector<8x128xf32>
    %82 = tpu.matmul %34, %10, %cst_46 {dimension_numbers = #tpu.dot_dimension_numbers<[1], [0], [0], [1], [0, 0, 1, 1], [], []>} : vector<8x32xbf16>, vector<32x128xbf16>, vector<8x128xf32> -> vector<8x128xf32>
    %83 = arith.addf %81, %82 : vector<8x128xf32>
    %84 = arith.addf %83, %24 : vector<8x128xf32>
    %85 = vector.extract_strided_slice %84 {offsets = [0, 0], sizes = [8, 96], strides = [1, 1]} : vector<8x128xf32> to vector<8x96xf32>
    %86 = arith.negf %85 : vector<8x96xf32>
    %87 = math.exp %86 : vector<8x96xf32>
    %cst_47 = arith.constant 1.000000e+00 : f32
    %88 = vector.broadcast %cst_47 : f32 to vector<8x96xf32>
    %89 = arith.addf %88, %87 : vector<8x96xf32>
    %90 = arith.divf %88, %89 : vector<8x96xf32>
    %91 = vector.extract_strided_slice %90 {offsets = [0, 0], sizes = [8, 32], strides = [1, 1]} : vector<8x96xf32> to vector<8x32xf32>
    %92 = vector.extract_strided_slice %90 {offsets = [0, 32], sizes = [8, 32], strides = [1, 1]} : vector<8x96xf32> to vector<8x32xf32>
    %93 = vector.extract_strided_slice %90 {offsets = [0, 64], sizes = [8, 32], strides = [1, 1]} : vector<8x96xf32> to vector<8x32xf32>
    %94 = vector.extract_strided_slice %84 {offsets = [0, 96], sizes = [8, 32], strides = [1, 1]} : vector<8x128xf32> to vector<8x32xf32>
    %95 = math.tanh %94 : vector<8x32xf32>
    %96 = arith.mulf %92, %38 : vector<8x32xf32>
    %97 = arith.mulf %91, %95 : vector<8x32xf32>
    %98 = arith.addf %96, %97 : vector<8x32xf32>
    %99 = math.tanh %98 : vector<8x32xf32>
    %100 = arith.mulf %93, %99 : vector<8x32xf32>
    %101 = arith.truncf %100 : vector<8x32xf32> to vector<8x32xbf16>
    %102 = vector.extract_strided_slice %6 {offsets = [16, 0], sizes = [8, 128], strides = [1, 1]} : vector<64x128xf32> to vector<8x128xf32>
    %cst_48 = arith.constant dense<0.000000e+00> : vector<8x128xf32>
    %103 = tpu.matmul %80, %8, %cst_48 {dimension_numbers = #tpu.dot_dimension_numbers<[1], [0], [0], [1], [0, 0, 1, 1], [], []>} : vector<8x32xbf16>, vector<32x128xbf16>, vector<8x128xf32> -> vector<8x128xf32>
    %104 = arith.addf %102, %103 : vector<8x128xf32>
    %105 = vector.extract_strided_slice %104 {offsets = [0, 0], sizes = [8, 96], strides = [1, 1]} : vector<8x128xf32> to vector<8x96xf32>
    %106 = arith.negf %105 : vector<8x96xf32>
    %107 = math.exp %106 : vector<8x96xf32>
    %cst_49 = arith.constant 1.000000e+00 : f32
    %108 = vector.broadcast %cst_49 : f32 to vector<8x96xf32>
    %109 = arith.addf %108, %107 : vector<8x96xf32>
    %110 = arith.divf %108, %109 : vector<8x96xf32>
    %111 = vector.extract_strided_slice %110 {offsets = [0, 0], sizes = [8, 32], strides = [1, 1]} : vector<8x96xf32> to vector<8x32xf32>
    %112 = vector.extract_strided_slice %110 {offsets = [0, 32], sizes = [8, 32], strides = [1, 1]} : vector<8x96xf32> to vector<8x32xf32>
    %113 = vector.extract_strided_slice %110 {offsets = [0, 64], sizes = [8, 32], strides = [1, 1]} : vector<8x96xf32> to vector<8x32xf32>
    %114 = vector.extract_strided_slice %104 {offsets = [0, 96], sizes = [8, 32], strides = [1, 1]} : vector<8x128xf32> to vector<8x32xf32>
    %115 = math.tanh %114 : vector<8x32xf32>
    %116 = arith.mulf %112, %77 : vector<8x32xf32>
    %117 = arith.mulf %111, %115 : vector<8x32xf32>
    %118 = arith.addf %116, %117 : vector<8x32xf32>
    %119 = math.tanh %118 : vector<8x32xf32>
    %120 = arith.mulf %113, %119 : vector<8x32xf32>
    %121 = arith.truncf %120 : vector<8x32xf32> to vector<8x32xbf16>
    %cst_50 = arith.constant dense<0.000000e+00> : vector<8x128xf32>
    %122 = tpu.matmul %80, %16, %cst_50 {dimension_numbers = #tpu.dot_dimension_numbers<[1], [0], [0], [1], [0, 0, 1, 1], [], []>} : vector<8x32xbf16>, vector<32x128xbf16>, vector<8x128xf32> -> vector<8x128xf32>
    %cst_51 = arith.constant dense<0.000000e+00> : vector<8x128xf32>
    %123 = tpu.matmul %101, %10, %cst_51 {dimension_numbers = #tpu.dot_dimension_numbers<[1], [0], [0], [1], [0, 0, 1, 1], [], []>} : vector<8x32xbf16>, vector<32x128xbf16>, vector<8x128xf32> -> vector<8x128xf32>
    %124 = arith.addf %122, %123 : vector<8x128xf32>
    %125 = arith.addf %124, %24 : vector<8x128xf32>
    %126 = vector.extract_strided_slice %125 {offsets = [0, 0], sizes = [8, 96], strides = [1, 1]} : vector<8x128xf32> to vector<8x96xf32>
    %127 = arith.negf %126 : vector<8x96xf32>
    %128 = math.exp %127 : vector<8x96xf32>
    %cst_52 = arith.constant 1.000000e+00 : f32
    %129 = vector.broadcast %cst_52 : f32 to vector<8x96xf32>
    %130 = arith.addf %129, %128 : vector<8x96xf32>
    %131 = arith.divf %129, %130 : vector<8x96xf32>
    %132 = vector.extract_strided_slice %131 {offsets = [0, 0], sizes = [8, 32], strides = [1, 1]} : vector<8x96xf32> to vector<8x32xf32>
    %133 = vector.extract_strided_slice %131 {offsets = [0, 32], sizes = [8, 32], strides = [1, 1]} : vector<8x96xf32> to vector<8x32xf32>
    %134 = vector.extract_strided_slice %131 {offsets = [0, 64], sizes = [8, 32], strides = [1, 1]} : vector<8x96xf32> to vector<8x32xf32>
    %135 = vector.extract_strided_slice %125 {offsets = [0, 96], sizes = [8, 32], strides = [1, 1]} : vector<8x128xf32> to vector<8x32xf32>
    %136 = math.tanh %135 : vector<8x32xf32>
    %137 = arith.mulf %133, %98 : vector<8x32xf32>
    %138 = arith.mulf %132, %136 : vector<8x32xf32>
    %139 = arith.addf %137, %138 : vector<8x32xf32>
    %140 = math.tanh %139 : vector<8x32xf32>
    %141 = arith.mulf %134, %140 : vector<8x32xf32>
    %142 = arith.truncf %141 : vector<8x32xf32> to vector<8x32xbf16>
    %cst_53 = arith.constant dense<0.000000e+00> : vector<8x128xf32>
    %143 = tpu.matmul %101, %18, %cst_53 {dimension_numbers = #tpu.dot_dimension_numbers<[1], [0], [0], [1], [0, 0, 1, 1], [], []>} : vector<8x32xbf16>, vector<32x128xbf16>, vector<8x128xf32> -> vector<8x128xf32>
    %cst_54 = arith.constant dense<0.000000e+00> : vector<8x128xf32>
    %144 = tpu.matmul %35, %12, %cst_54 {dimension_numbers = #tpu.dot_dimension_numbers<[1], [0], [0], [1], [0, 0, 1, 1], [], []>} : vector<8x32xbf16>, vector<32x128xbf16>, vector<8x128xf32> -> vector<8x128xf32>
    %145 = arith.addf %143, %144 : vector<8x128xf32>
    %146 = arith.addf %145, %28 : vector<8x128xf32>
    %147 = vector.extract_strided_slice %146 {offsets = [0, 0], sizes = [8, 96], strides = [1, 1]} : vector<8x128xf32> to vector<8x96xf32>
    %148 = arith.negf %147 : vector<8x96xf32>
    %149 = math.exp %148 : vector<8x96xf32>
    %cst_55 = arith.constant 1.000000e+00 : f32
    %150 = vector.broadcast %cst_55 : f32 to vector<8x96xf32>
    %151 = arith.addf %150, %149 : vector<8x96xf32>
    %152 = arith.divf %150, %151 : vector<8x96xf32>
    %153 = vector.extract_strided_slice %152 {offsets = [0, 0], sizes = [8, 32], strides = [1, 1]} : vector<8x96xf32> to vector<8x32xf32>
    %154 = vector.extract_strided_slice %152 {offsets = [0, 32], sizes = [8, 32], strides = [1, 1]} : vector<8x96xf32> to vector<8x32xf32>
    %155 = vector.extract_strided_slice %152 {offsets = [0, 64], sizes = [8, 32], strides = [1, 1]} : vector<8x96xf32> to vector<8x32xf32>
    %156 = vector.extract_strided_slice %146 {offsets = [0, 96], sizes = [8, 32], strides = [1, 1]} : vector<8x128xf32> to vector<8x32xf32>
    %157 = math.tanh %156 : vector<8x32xf32>
    %158 = arith.mulf %154, %39 : vector<8x32xf32>
    %159 = arith.mulf %153, %157 : vector<8x32xf32>
    %160 = arith.addf %158, %159 : vector<8x32xf32>
    %161 = math.tanh %160 : vector<8x32xf32>
    %162 = arith.mulf %155, %161 : vector<8x32xf32>
    %163 = arith.truncf %162 : vector<8x32xf32> to vector<8x32xbf16>
    %164 = vector.extract_strided_slice %6 {offsets = [24, 0], sizes = [8, 128], strides = [1, 1]} : vector<64x128xf32> to vector<8x128xf32>
    %cst_56 = arith.constant dense<0.000000e+00> : vector<8x128xf32>
    %165 = tpu.matmul %121, %8, %cst_56 {dimension_numbers = #tpu.dot_dimension_numbers<[1], [0], [0], [1], [0, 0, 1, 1], [], []>} : vector<8x32xbf16>, vector<32x128xbf16>, vector<8x128xf32> -> vector<8x128xf32>
    %166 = arith.addf %164, %165 : vector<8x128xf32>
    %167 = vector.extract_strided_slice %166 {offsets = [0, 0], sizes = [8, 96], strides = [1, 1]} : vector<8x128xf32> to vector<8x96xf32>
    %168 = arith.negf %167 : vector<8x96xf32>
    %169 = math.exp %168 : vector<8x96xf32>
    %cst_57 = arith.constant 1.000000e+00 : f32
    %170 = vector.broadcast %cst_57 : f32 to vector<8x96xf32>
    %171 = arith.addf %170, %169 : vector<8x96xf32>
    %172 = arith.divf %170, %171 : vector<8x96xf32>
    %173 = vector.extract_strided_slice %172 {offsets = [0, 0], sizes = [8, 32], strides = [1, 1]} : vector<8x96xf32> to vector<8x32xf32>
    %174 = vector.extract_strided_slice %172 {offsets = [0, 32], sizes = [8, 32], strides = [1, 1]} : vector<8x96xf32> to vector<8x32xf32>
    %175 = vector.extract_strided_slice %172 {offsets = [0, 64], sizes = [8, 32], strides = [1, 1]} : vector<8x96xf32> to vector<8x32xf32>
    %176 = vector.extract_strided_slice %166 {offsets = [0, 96], sizes = [8, 32], strides = [1, 1]} : vector<8x128xf32> to vector<8x32xf32>
    %177 = math.tanh %176 : vector<8x32xf32>
    %178 = arith.mulf %174, %118 : vector<8x32xf32>
    %179 = arith.mulf %173, %177 : vector<8x32xf32>
    %180 = arith.addf %178, %179 : vector<8x32xf32>
    %181 = math.tanh %180 : vector<8x32xf32>
    %182 = arith.mulf %175, %181 : vector<8x32xf32>
    %183 = arith.truncf %182 : vector<8x32xf32> to vector<8x32xbf16>
    %cst_58 = arith.constant dense<0.000000e+00> : vector<8x128xf32>
    %184 = tpu.matmul %121, %16, %cst_58 {dimension_numbers = #tpu.dot_dimension_numbers<[1], [0], [0], [1], [0, 0, 1, 1], [], []>} : vector<8x32xbf16>, vector<32x128xbf16>, vector<8x128xf32> -> vector<8x128xf32>
    %cst_59 = arith.constant dense<0.000000e+00> : vector<8x128xf32>
    %185 = tpu.matmul %142, %10, %cst_59 {dimension_numbers = #tpu.dot_dimension_numbers<[1], [0], [0], [1], [0, 0, 1, 1], [], []>} : vector<8x32xbf16>, vector<32x128xbf16>, vector<8x128xf32> -> vector<8x128xf32>
    %186 = arith.addf %184, %185 : vector<8x128xf32>
    %187 = arith.addf %186, %24 : vector<8x128xf32>
    %188 = vector.extract_strided_slice %187 {offsets = [0, 0], sizes = [8, 96], strides = [1, 1]} : vector<8x128xf32> to vector<8x96xf32>
    %189 = arith.negf %188 : vector<8x96xf32>
    %190 = math.exp %189 : vector<8x96xf32>
    %cst_60 = arith.constant 1.000000e+00 : f32
    %191 = vector.broadcast %cst_60 : f32 to vector<8x96xf32>
    %192 = arith.addf %191, %190 : vector<8x96xf32>
    %193 = arith.divf %191, %192 : vector<8x96xf32>
    %194 = vector.extract_strided_slice %193 {offsets = [0, 0], sizes = [8, 32], strides = [1, 1]} : vector<8x96xf32> to vector<8x32xf32>
    %195 = vector.extract_strided_slice %193 {offsets = [0, 32], sizes = [8, 32], strides = [1, 1]} : vector<8x96xf32> to vector<8x32xf32>
    %196 = vector.extract_strided_slice %193 {offsets = [0, 64], sizes = [8, 32], strides = [1, 1]} : vector<8x96xf32> to vector<8x32xf32>
    %197 = vector.extract_strided_slice %187 {offsets = [0, 96], sizes = [8, 32], strides = [1, 1]} : vector<8x128xf32> to vector<8x32xf32>
    %198 = math.tanh %197 : vector<8x32xf32>
    %199 = arith.mulf %195, %139 : vector<8x32xf32>
    %200 = arith.mulf %194, %198 : vector<8x32xf32>
    %201 = arith.addf %199, %200 : vector<8x32xf32>
    %202 = math.tanh %201 : vector<8x32xf32>
    %203 = arith.mulf %196, %202 : vector<8x32xf32>
    %204 = arith.truncf %203 : vector<8x32xf32> to vector<8x32xbf16>
    %cst_61 = arith.constant dense<0.000000e+00> : vector<8x128xf32>
    %205 = tpu.matmul %142, %18, %cst_61 {dimension_numbers = #tpu.dot_dimension_numbers<[1], [0], [0], [1], [0, 0, 1, 1], [], []>} : vector<8x32xbf16>, vector<32x128xbf16>, vector<8x128xf32> -> vector<8x128xf32>
    %cst_62 = arith.constant dense<0.000000e+00> : vector<8x128xf32>
    %206 = tpu.matmul %163, %12, %cst_62 {dimension_numbers = #tpu.dot_dimension_numbers<[1], [0], [0], [1], [0, 0, 1, 1], [], []>} : vector<8x32xbf16>, vector<32x128xbf16>, vector<8x128xf32> -> vector<8x128xf32>
    %207 = arith.addf %205, %206 : vector<8x128xf32>
    %208 = arith.addf %207, %28 : vector<8x128xf32>
    %209 = vector.extract_strided_slice %208 {offsets = [0, 0], sizes = [8, 96], strides = [1, 1]} : vector<8x128xf32> to vector<8x96xf32>
    %210 = arith.negf %209 : vector<8x96xf32>
    %211 = math.exp %210 : vector<8x96xf32>
    %cst_63 = arith.constant 1.000000e+00 : f32
    %212 = vector.broadcast %cst_63 : f32 to vector<8x96xf32>
    %213 = arith.addf %212, %211 : vector<8x96xf32>
    %214 = arith.divf %212, %213 : vector<8x96xf32>
    %215 = vector.extract_strided_slice %214 {offsets = [0, 0], sizes = [8, 32], strides = [1, 1]} : vector<8x96xf32> to vector<8x32xf32>
    %216 = vector.extract_strided_slice %214 {offsets = [0, 32], sizes = [8, 32], strides = [1, 1]} : vector<8x96xf32> to vector<8x32xf32>
    %217 = vector.extract_strided_slice %214 {offsets = [0, 64], sizes = [8, 32], strides = [1, 1]} : vector<8x96xf32> to vector<8x32xf32>
    %218 = vector.extract_strided_slice %208 {offsets = [0, 96], sizes = [8, 32], strides = [1, 1]} : vector<8x128xf32> to vector<8x32xf32>
    %219 = math.tanh %218 : vector<8x32xf32>
    %220 = arith.mulf %216, %160 : vector<8x32xf32>
    %221 = arith.mulf %215, %219 : vector<8x32xf32>
    %222 = arith.addf %220, %221 : vector<8x32xf32>
    %223 = math.tanh %222 : vector<8x32xf32>
    %224 = arith.mulf %217, %223 : vector<8x32xf32>
    %225 = arith.truncf %224 : vector<8x32xf32> to vector<8x32xbf16>
    %cst_64 = arith.constant dense<0.000000e+00> : vector<8x128xf32>
    %226 = tpu.matmul %163, %20, %cst_64 {dimension_numbers = #tpu.dot_dimension_numbers<[1], [0], [0], [1], [0, 0, 1, 1], [], []>} : vector<8x32xbf16>, vector<32x128xbf16>, vector<8x128xf32> -> vector<8x128xf32>
    %cst_65 = arith.constant dense<0.000000e+00> : vector<8x128xf32>
    %227 = tpu.matmul %36, %14, %cst_65 {dimension_numbers = #tpu.dot_dimension_numbers<[1], [0], [0], [1], [0, 0, 1, 1], [], []>} : vector<8x32xbf16>, vector<32x128xbf16>, vector<8x128xf32> -> vector<8x128xf32>
    %228 = arith.addf %226, %227 : vector<8x128xf32>
    %229 = arith.addf %228, %32 : vector<8x128xf32>
    %230 = vector.extract_strided_slice %229 {offsets = [0, 0], sizes = [8, 96], strides = [1, 1]} : vector<8x128xf32> to vector<8x96xf32>
    %231 = arith.negf %230 : vector<8x96xf32>
    %232 = math.exp %231 : vector<8x96xf32>
    %cst_66 = arith.constant 1.000000e+00 : f32
    %233 = vector.broadcast %cst_66 : f32 to vector<8x96xf32>
    %234 = arith.addf %233, %232 : vector<8x96xf32>
    %235 = arith.divf %233, %234 : vector<8x96xf32>
    %236 = vector.extract_strided_slice %235 {offsets = [0, 0], sizes = [8, 32], strides = [1, 1]} : vector<8x96xf32> to vector<8x32xf32>
    %237 = vector.extract_strided_slice %235 {offsets = [0, 32], sizes = [8, 32], strides = [1, 1]} : vector<8x96xf32> to vector<8x32xf32>
    %238 = vector.extract_strided_slice %235 {offsets = [0, 64], sizes = [8, 32], strides = [1, 1]} : vector<8x96xf32> to vector<8x32xf32>
    %239 = vector.extract_strided_slice %229 {offsets = [0, 96], sizes = [8, 32], strides = [1, 1]} : vector<8x128xf32> to vector<8x32xf32>
    %240 = math.tanh %239 : vector<8x32xf32>
    %241 = arith.mulf %237, %40 : vector<8x32xf32>
    %242 = arith.mulf %236, %240 : vector<8x32xf32>
    %243 = arith.addf %241, %242 : vector<8x32xf32>
    %244 = math.tanh %243 : vector<8x32xf32>
    %245 = arith.mulf %238, %244 : vector<8x32xf32>
    %246 = arith.truncf %245 : vector<8x32xf32> to vector<8x32xbf16>
    %247 = vector.extract_strided_slice %6 {offsets = [32, 0], sizes = [8, 128], strides = [1, 1]} : vector<64x128xf32> to vector<8x128xf32>
    %cst_67 = arith.constant dense<0.000000e+00> : vector<8x128xf32>
    %248 = tpu.matmul %183, %8, %cst_67 {dimension_numbers = #tpu.dot_dimension_numbers<[1], [0], [0], [1], [0, 0, 1, 1], [], []>} : vector<8x32xbf16>, vector<32x128xbf16>, vector<8x128xf32> -> vector<8x128xf32>
    %249 = arith.addf %247, %248 : vector<8x128xf32>
    %250 = vector.extract_strided_slice %249 {offsets = [0, 0], sizes = [8, 96], strides = [1, 1]} : vector<8x128xf32> to vector<8x96xf32>
    %251 = arith.negf %250 : vector<8x96xf32>
    %252 = math.exp %251 : vector<8x96xf32>
    %cst_68 = arith.constant 1.000000e+00 : f32
    %253 = vector.broadcast %cst_68 : f32 to vector<8x96xf32>
    %254 = arith.addf %253, %252 : vector<8x96xf32>
    %255 = arith.divf %253, %254 : vector<8x96xf32>
    %256 = vector.extract_strided_slice %255 {offsets = [0, 0], sizes = [8, 32], strides = [1, 1]} : vector<8x96xf32> to vector<8x32xf32>
    %257 = vector.extract_strided_slice %255 {offsets = [0, 32], sizes = [8, 32], strides = [1, 1]} : vector<8x96xf32> to vector<8x32xf32>
    %258 = vector.extract_strided_slice %255 {offsets = [0, 64], sizes = [8, 32], strides = [1, 1]} : vector<8x96xf32> to vector<8x32xf32>
    %259 = vector.extract_strided_slice %249 {offsets = [0, 96], sizes = [8, 32], strides = [1, 1]} : vector<8x128xf32> to vector<8x32xf32>
    %260 = math.tanh %259 : vector<8x32xf32>
    %261 = arith.mulf %257, %180 : vector<8x32xf32>
    %262 = arith.mulf %256, %260 : vector<8x32xf32>
    %263 = arith.addf %261, %262 : vector<8x32xf32>
    %264 = math.tanh %263 : vector<8x32xf32>
    %265 = arith.mulf %258, %264 : vector<8x32xf32>
    %266 = arith.truncf %265 : vector<8x32xf32> to vector<8x32xbf16>
    %cst_69 = arith.constant dense<0.000000e+00> : vector<8x128xf32>
    %267 = tpu.matmul %183, %16, %cst_69 {dimension_numbers = #tpu.dot_dimension_numbers<[1], [0], [0], [1], [0, 0, 1, 1], [], []>} : vector<8x32xbf16>, vector<32x128xbf16>, vector<8x128xf32> -> vector<8x128xf32>
    %cst_70 = arith.constant dense<0.000000e+00> : vector<8x128xf32>
    %268 = tpu.matmul %204, %10, %cst_70 {dimension_numbers = #tpu.dot_dimension_numbers<[1], [0], [0], [1], [0, 0, 1, 1], [], []>} : vector<8x32xbf16>, vector<32x128xbf16>, vector<8x128xf32> -> vector<8x128xf32>
    %269 = arith.addf %267, %268 : vector<8x128xf32>
    %270 = arith.addf %269, %24 : vector<8x128xf32>
    %271 = vector.extract_strided_slice %270 {offsets = [0, 0], sizes = [8, 96], strides = [1, 1]} : vector<8x128xf32> to vector<8x96xf32>
    %272 = arith.negf %271 : vector<8x96xf32>
    %273 = math.exp %272 : vector<8x96xf32>
    %cst_71 = arith.constant 1.000000e+00 : f32
    %274 = vector.broadcast %cst_71 : f32 to vector<8x96xf32>
    %275 = arith.addf %274, %273 : vector<8x96xf32>
    %276 = arith.divf %274, %275 : vector<8x96xf32>
    %277 = vector.extract_strided_slice %276 {offsets = [0, 0], sizes = [8, 32], strides = [1, 1]} : vector<8x96xf32> to vector<8x32xf32>
    %278 = vector.extract_strided_slice %276 {offsets = [0, 32], sizes = [8, 32], strides = [1, 1]} : vector<8x96xf32> to vector<8x32xf32>
    %279 = vector.extract_strided_slice %276 {offsets = [0, 64], sizes = [8, 32], strides = [1, 1]} : vector<8x96xf32> to vector<8x32xf32>
    %280 = vector.extract_strided_slice %270 {offsets = [0, 96], sizes = [8, 32], strides = [1, 1]} : vector<8x128xf32> to vector<8x32xf32>
    %281 = math.tanh %280 : vector<8x32xf32>
    %282 = arith.mulf %278, %201 : vector<8x32xf32>
    %283 = arith.mulf %277, %281 : vector<8x32xf32>
    %284 = arith.addf %282, %283 : vector<8x32xf32>
    %285 = math.tanh %284 : vector<8x32xf32>
    %286 = arith.mulf %279, %285 : vector<8x32xf32>
    %287 = arith.truncf %286 : vector<8x32xf32> to vector<8x32xbf16>
    %cst_72 = arith.constant dense<0.000000e+00> : vector<8x128xf32>
    %288 = tpu.matmul %204, %18, %cst_72 {dimension_numbers = #tpu.dot_dimension_numbers<[1], [0], [0], [1], [0, 0, 1, 1], [], []>} : vector<8x32xbf16>, vector<32x128xbf16>, vector<8x128xf32> -> vector<8x128xf32>
    %cst_73 = arith.constant dense<0.000000e+00> : vector<8x128xf32>
    %289 = tpu.matmul %225, %12, %cst_73 {dimension_numbers = #tpu.dot_dimension_numbers<[1], [0], [0], [1], [0, 0, 1, 1], [], []>} : vector<8x32xbf16>, vector<32x128xbf16>, vector<8x128xf32> -> vector<8x128xf32>
    %290 = arith.addf %288, %289 : vector<8x128xf32>
    %291 = arith.addf %290, %28 : vector<8x128xf32>
    %292 = vector.extract_strided_slice %291 {offsets = [0, 0], sizes = [8, 96], strides = [1, 1]} : vector<8x128xf32> to vector<8x96xf32>
    %293 = arith.negf %292 : vector<8x96xf32>
    %294 = math.exp %293 : vector<8x96xf32>
    %cst_74 = arith.constant 1.000000e+00 : f32
    %295 = vector.broadcast %cst_74 : f32 to vector<8x96xf32>
    %296 = arith.addf %295, %294 : vector<8x96xf32>
    %297 = arith.divf %295, %296 : vector<8x96xf32>
    %298 = vector.extract_strided_slice %297 {offsets = [0, 0], sizes = [8, 32], strides = [1, 1]} : vector<8x96xf32> to vector<8x32xf32>
    %299 = vector.extract_strided_slice %297 {offsets = [0, 32], sizes = [8, 32], strides = [1, 1]} : vector<8x96xf32> to vector<8x32xf32>
    %300 = vector.extract_strided_slice %297 {offsets = [0, 64], sizes = [8, 32], strides = [1, 1]} : vector<8x96xf32> to vector<8x32xf32>
    %301 = vector.extract_strided_slice %291 {offsets = [0, 96], sizes = [8, 32], strides = [1, 1]} : vector<8x128xf32> to vector<8x32xf32>
    %302 = math.tanh %301 : vector<8x32xf32>
    %303 = arith.mulf %299, %222 : vector<8x32xf32>
    %304 = arith.mulf %298, %302 : vector<8x32xf32>
    %305 = arith.addf %303, %304 : vector<8x32xf32>
    %306 = math.tanh %305 : vector<8x32xf32>
    %307 = arith.mulf %300, %306 : vector<8x32xf32>
    %308 = arith.truncf %307 : vector<8x32xf32> to vector<8x32xbf16>
    %cst_75 = arith.constant dense<0.000000e+00> : vector<8x128xf32>
    %309 = tpu.matmul %225, %20, %cst_75 {dimension_numbers = #tpu.dot_dimension_numbers<[1], [0], [0], [1], [0, 0, 1, 1], [], []>} : vector<8x32xbf16>, vector<32x128xbf16>, vector<8x128xf32> -> vector<8x128xf32>
    %cst_76 = arith.constant dense<0.000000e+00> : vector<8x128xf32>
    %310 = tpu.matmul %246, %14, %cst_76 {dimension_numbers = #tpu.dot_dimension_numbers<[1], [0], [0], [1], [0, 0, 1, 1], [], []>} : vector<8x32xbf16>, vector<32x128xbf16>, vector<8x128xf32> -> vector<8x128xf32>
    %311 = arith.addf %309, %310 : vector<8x128xf32>
    %312 = arith.addf %311, %32 : vector<8x128xf32>
    %313 = vector.extract_strided_slice %312 {offsets = [0, 0], sizes = [8, 96], strides = [1, 1]} : vector<8x128xf32> to vector<8x96xf32>
    %314 = arith.negf %313 : vector<8x96xf32>
    %315 = math.exp %314 : vector<8x96xf32>
    %cst_77 = arith.constant 1.000000e+00 : f32
    %316 = vector.broadcast %cst_77 : f32 to vector<8x96xf32>
    %317 = arith.addf %316, %315 : vector<8x96xf32>
    %318 = arith.divf %316, %317 : vector<8x96xf32>
    %319 = vector.extract_strided_slice %318 {offsets = [0, 0], sizes = [8, 32], strides = [1, 1]} : vector<8x96xf32> to vector<8x32xf32>
    %320 = vector.extract_strided_slice %318 {offsets = [0, 32], sizes = [8, 32], strides = [1, 1]} : vector<8x96xf32> to vector<8x32xf32>
    %321 = vector.extract_strided_slice %318 {offsets = [0, 64], sizes = [8, 32], strides = [1, 1]} : vector<8x96xf32> to vector<8x32xf32>
    %322 = vector.extract_strided_slice %312 {offsets = [0, 96], sizes = [8, 32], strides = [1, 1]} : vector<8x128xf32> to vector<8x32xf32>
    %323 = math.tanh %322 : vector<8x32xf32>
    %324 = arith.mulf %320, %243 : vector<8x32xf32>
    %325 = arith.mulf %319, %323 : vector<8x32xf32>
    %326 = arith.addf %324, %325 : vector<8x32xf32>
    %327 = math.tanh %326 : vector<8x32xf32>
    %328 = arith.mulf %321, %327 : vector<8x32xf32>
    %329 = arith.truncf %328 : vector<8x32xf32> to vector<8x32xbf16>
    %330 = vector.extract_strided_slice %6 {offsets = [40, 0], sizes = [8, 128], strides = [1, 1]} : vector<64x128xf32> to vector<8x128xf32>
    %cst_78 = arith.constant dense<0.000000e+00> : vector<8x128xf32>
    %331 = tpu.matmul %266, %8, %cst_78 {dimension_numbers = #tpu.dot_dimension_numbers<[1], [0], [0], [1], [0, 0, 1, 1], [], []>} : vector<8x32xbf16>, vector<32x128xbf16>, vector<8x128xf32> -> vector<8x128xf32>
    %332 = arith.addf %330, %331 : vector<8x128xf32>
    %333 = vector.extract_strided_slice %332 {offsets = [0, 0], sizes = [8, 96], strides = [1, 1]} : vector<8x128xf32> to vector<8x96xf32>
    %334 = arith.negf %333 : vector<8x96xf32>
    %335 = math.exp %334 : vector<8x96xf32>
    %cst_79 = arith.constant 1.000000e+00 : f32
    %336 = vector.broadcast %cst_79 : f32 to vector<8x96xf32>
    %337 = arith.addf %336, %335 : vector<8x96xf32>
    %338 = arith.divf %336, %337 : vector<8x96xf32>
    %339 = vector.extract_strided_slice %338 {offsets = [0, 0], sizes = [8, 32], strides = [1, 1]} : vector<8x96xf32> to vector<8x32xf32>
    %340 = vector.extract_strided_slice %338 {offsets = [0, 32], sizes = [8, 32], strides = [1, 1]} : vector<8x96xf32> to vector<8x32xf32>
    %341 = vector.extract_strided_slice %338 {offsets = [0, 64], sizes = [8, 32], strides = [1, 1]} : vector<8x96xf32> to vector<8x32xf32>
    %342 = vector.extract_strided_slice %332 {offsets = [0, 96], sizes = [8, 32], strides = [1, 1]} : vector<8x128xf32> to vector<8x32xf32>
    %343 = math.tanh %342 : vector<8x32xf32>
    %344 = arith.mulf %340, %263 : vector<8x32xf32>
    %345 = arith.mulf %339, %343 : vector<8x32xf32>
    %346 = arith.addf %344, %345 : vector<8x32xf32>
    %347 = math.tanh %346 : vector<8x32xf32>
    %348 = arith.mulf %341, %347 : vector<8x32xf32>
    %349 = arith.truncf %348 : vector<8x32xf32> to vector<8x32xbf16>
    %cst_80 = arith.constant dense<0.000000e+00> : vector<8x128xf32>
    %350 = tpu.matmul %266, %16, %cst_80 {dimension_numbers = #tpu.dot_dimension_numbers<[1], [0], [0], [1], [0, 0, 1, 1], [], []>} : vector<8x32xbf16>, vector<32x128xbf16>, vector<8x128xf32> -> vector<8x128xf32>
    %cst_81 = arith.constant dense<0.000000e+00> : vector<8x128xf32>
    %351 = tpu.matmul %287, %10, %cst_81 {dimension_numbers = #tpu.dot_dimension_numbers<[1], [0], [0], [1], [0, 0, 1, 1], [], []>} : vector<8x32xbf16>, vector<32x128xbf16>, vector<8x128xf32> -> vector<8x128xf32>
    %352 = arith.addf %350, %351 : vector<8x128xf32>
    %353 = arith.addf %352, %24 : vector<8x128xf32>
    %354 = vector.extract_strided_slice %353 {offsets = [0, 0], sizes = [8, 96], strides = [1, 1]} : vector<8x128xf32> to vector<8x96xf32>
    %355 = arith.negf %354 : vector<8x96xf32>
    %356 = math.exp %355 : vector<8x96xf32>
    %cst_82 = arith.constant 1.000000e+00 : f32
    %357 = vector.broadcast %cst_82 : f32 to vector<8x96xf32>
    %358 = arith.addf %357, %356 : vector<8x96xf32>
    %359 = arith.divf %357, %358 : vector<8x96xf32>
    %360 = vector.extract_strided_slice %359 {offsets = [0, 0], sizes = [8, 32], strides = [1, 1]} : vector<8x96xf32> to vector<8x32xf32>
    %361 = vector.extract_strided_slice %359 {offsets = [0, 32], sizes = [8, 32], strides = [1, 1]} : vector<8x96xf32> to vector<8x32xf32>
    %362 = vector.extract_strided_slice %359 {offsets = [0, 64], sizes = [8, 32], strides = [1, 1]} : vector<8x96xf32> to vector<8x32xf32>
    %363 = vector.extract_strided_slice %353 {offsets = [0, 96], sizes = [8, 32], strides = [1, 1]} : vector<8x128xf32> to vector<8x32xf32>
    %364 = math.tanh %363 : vector<8x32xf32>
    %365 = arith.mulf %361, %284 : vector<8x32xf32>
    %366 = arith.mulf %360, %364 : vector<8x32xf32>
    %367 = arith.addf %365, %366 : vector<8x32xf32>
    %368 = math.tanh %367 : vector<8x32xf32>
    %369 = arith.mulf %362, %368 : vector<8x32xf32>
    %370 = arith.truncf %369 : vector<8x32xf32> to vector<8x32xbf16>
    %cst_83 = arith.constant dense<0.000000e+00> : vector<8x128xf32>
    %371 = tpu.matmul %287, %18, %cst_83 {dimension_numbers = #tpu.dot_dimension_numbers<[1], [0], [0], [1], [0, 0, 1, 1], [], []>} : vector<8x32xbf16>, vector<32x128xbf16>, vector<8x128xf32> -> vector<8x128xf32>
    %cst_84 = arith.constant dense<0.000000e+00> : vector<8x128xf32>
    %372 = tpu.matmul %308, %12, %cst_84 {dimension_numbers = #tpu.dot_dimension_numbers<[1], [0], [0], [1], [0, 0, 1, 1], [], []>} : vector<8x32xbf16>, vector<32x128xbf16>, vector<8x128xf32> -> vector<8x128xf32>
    %373 = arith.addf %371, %372 : vector<8x128xf32>
    %374 = arith.addf %373, %28 : vector<8x128xf32>
    %375 = vector.extract_strided_slice %374 {offsets = [0, 0], sizes = [8, 96], strides = [1, 1]} : vector<8x128xf32> to vector<8x96xf32>
    %376 = arith.negf %375 : vector<8x96xf32>
    %377 = math.exp %376 : vector<8x96xf32>
    %cst_85 = arith.constant 1.000000e+00 : f32
    %378 = vector.broadcast %cst_85 : f32 to vector<8x96xf32>
    %379 = arith.addf %378, %377 : vector<8x96xf32>
    %380 = arith.divf %378, %379 : vector<8x96xf32>
    %381 = vector.extract_strided_slice %380 {offsets = [0, 0], sizes = [8, 32], strides = [1, 1]} : vector<8x96xf32> to vector<8x32xf32>
    %382 = vector.extract_strided_slice %380 {offsets = [0, 32], sizes = [8, 32], strides = [1, 1]} : vector<8x96xf32> to vector<8x32xf32>
    %383 = vector.extract_strided_slice %380 {offsets = [0, 64], sizes = [8, 32], strides = [1, 1]} : vector<8x96xf32> to vector<8x32xf32>
    %384 = vector.extract_strided_slice %374 {offsets = [0, 96], sizes = [8, 32], strides = [1, 1]} : vector<8x128xf32> to vector<8x32xf32>
    %385 = math.tanh %384 : vector<8x32xf32>
    %386 = arith.mulf %382, %305 : vector<8x32xf32>
    %387 = arith.mulf %381, %385 : vector<8x32xf32>
    %388 = arith.addf %386, %387 : vector<8x32xf32>
    %389 = math.tanh %388 : vector<8x32xf32>
    %390 = arith.mulf %383, %389 : vector<8x32xf32>
    %391 = arith.truncf %390 : vector<8x32xf32> to vector<8x32xbf16>
    %cst_86 = arith.constant dense<0.000000e+00> : vector<8x128xf32>
    %392 = tpu.matmul %308, %20, %cst_86 {dimension_numbers = #tpu.dot_dimension_numbers<[1], [0], [0], [1], [0, 0, 1, 1], [], []>} : vector<8x32xbf16>, vector<32x128xbf16>, vector<8x128xf32> -> vector<8x128xf32>
    %cst_87 = arith.constant dense<0.000000e+00> : vector<8x128xf32>
    %393 = tpu.matmul %329, %14, %cst_87 {dimension_numbers = #tpu.dot_dimension_numbers<[1], [0], [0], [1], [0, 0, 1, 1], [], []>} : vector<8x32xbf16>, vector<32x128xbf16>, vector<8x128xf32> -> vector<8x128xf32>
    %394 = arith.addf %392, %393 : vector<8x128xf32>
    %395 = arith.addf %394, %32 : vector<8x128xf32>
    %396 = vector.extract_strided_slice %395 {offsets = [0, 0], sizes = [8, 96], strides = [1, 1]} : vector<8x128xf32> to vector<8x96xf32>
    %397 = arith.negf %396 : vector<8x96xf32>
    %398 = math.exp %397 : vector<8x96xf32>
    %cst_88 = arith.constant 1.000000e+00 : f32
    %399 = vector.broadcast %cst_88 : f32 to vector<8x96xf32>
    %400 = arith.addf %399, %398 : vector<8x96xf32>
    %401 = arith.divf %399, %400 : vector<8x96xf32>
    %402 = vector.extract_strided_slice %401 {offsets = [0, 0], sizes = [8, 32], strides = [1, 1]} : vector<8x96xf32> to vector<8x32xf32>
    %403 = vector.extract_strided_slice %401 {offsets = [0, 32], sizes = [8, 32], strides = [1, 1]} : vector<8x96xf32> to vector<8x32xf32>
    %404 = vector.extract_strided_slice %401 {offsets = [0, 64], sizes = [8, 32], strides = [1, 1]} : vector<8x96xf32> to vector<8x32xf32>
    %405 = vector.extract_strided_slice %395 {offsets = [0, 96], sizes = [8, 32], strides = [1, 1]} : vector<8x128xf32> to vector<8x32xf32>
    %406 = math.tanh %405 : vector<8x32xf32>
    %407 = arith.mulf %403, %326 : vector<8x32xf32>
    %408 = arith.mulf %402, %406 : vector<8x32xf32>
    %409 = arith.addf %407, %408 : vector<8x32xf32>
    %410 = math.tanh %409 : vector<8x32xf32>
    %411 = arith.mulf %404, %410 : vector<8x32xf32>
    %412 = arith.truncf %411 : vector<8x32xf32> to vector<8x32xbf16>
    %413 = vector.extract_strided_slice %6 {offsets = [48, 0], sizes = [8, 128], strides = [1, 1]} : vector<64x128xf32> to vector<8x128xf32>
    %cst_89 = arith.constant dense<0.000000e+00> : vector<8x128xf32>
    %414 = tpu.matmul %349, %8, %cst_89 {dimension_numbers = #tpu.dot_dimension_numbers<[1], [0], [0], [1], [0, 0, 1, 1], [], []>} : vector<8x32xbf16>, vector<32x128xbf16>, vector<8x128xf32> -> vector<8x128xf32>
    %415 = arith.addf %413, %414 : vector<8x128xf32>
    %416 = vector.extract_strided_slice %415 {offsets = [0, 0], sizes = [8, 96], strides = [1, 1]} : vector<8x128xf32> to vector<8x96xf32>
    %417 = arith.negf %416 : vector<8x96xf32>
    %418 = math.exp %417 : vector<8x96xf32>
    %cst_90 = arith.constant 1.000000e+00 : f32
    %419 = vector.broadcast %cst_90 : f32 to vector<8x96xf32>
    %420 = arith.addf %419, %418 : vector<8x96xf32>
    %421 = arith.divf %419, %420 : vector<8x96xf32>
    %422 = vector.extract_strided_slice %421 {offsets = [0, 0], sizes = [8, 32], strides = [1, 1]} : vector<8x96xf32> to vector<8x32xf32>
    %423 = vector.extract_strided_slice %421 {offsets = [0, 32], sizes = [8, 32], strides = [1, 1]} : vector<8x96xf32> to vector<8x32xf32>
    %424 = vector.extract_strided_slice %421 {offsets = [0, 64], sizes = [8, 32], strides = [1, 1]} : vector<8x96xf32> to vector<8x32xf32>
    %425 = vector.extract_strided_slice %415 {offsets = [0, 96], sizes = [8, 32], strides = [1, 1]} : vector<8x128xf32> to vector<8x32xf32>
    %426 = math.tanh %425 : vector<8x32xf32>
    %427 = arith.mulf %423, %346 : vector<8x32xf32>
    %428 = arith.mulf %422, %426 : vector<8x32xf32>
    %429 = arith.addf %427, %428 : vector<8x32xf32>
    %430 = math.tanh %429 : vector<8x32xf32>
    %431 = arith.mulf %424, %430 : vector<8x32xf32>
    %432 = arith.truncf %431 : vector<8x32xf32> to vector<8x32xbf16>
    %cst_91 = arith.constant dense<0.000000e+00> : vector<8x128xf32>
    %433 = tpu.matmul %349, %16, %cst_91 {dimension_numbers = #tpu.dot_dimension_numbers<[1], [0], [0], [1], [0, 0, 1, 1], [], []>} : vector<8x32xbf16>, vector<32x128xbf16>, vector<8x128xf32> -> vector<8x128xf32>
    %cst_92 = arith.constant dense<0.000000e+00> : vector<8x128xf32>
    %434 = tpu.matmul %370, %10, %cst_92 {dimension_numbers = #tpu.dot_dimension_numbers<[1], [0], [0], [1], [0, 0, 1, 1], [], []>} : vector<8x32xbf16>, vector<32x128xbf16>, vector<8x128xf32> -> vector<8x128xf32>
    %435 = arith.addf %433, %434 : vector<8x128xf32>
    %436 = arith.addf %435, %24 : vector<8x128xf32>
    %437 = vector.extract_strided_slice %436 {offsets = [0, 0], sizes = [8, 96], strides = [1, 1]} : vector<8x128xf32> to vector<8x96xf32>
    %438 = arith.negf %437 : vector<8x96xf32>
    %439 = math.exp %438 : vector<8x96xf32>
    %cst_93 = arith.constant 1.000000e+00 : f32
    %440 = vector.broadcast %cst_93 : f32 to vector<8x96xf32>
    %441 = arith.addf %440, %439 : vector<8x96xf32>
    %442 = arith.divf %440, %441 : vector<8x96xf32>
    %443 = vector.extract_strided_slice %442 {offsets = [0, 0], sizes = [8, 32], strides = [1, 1]} : vector<8x96xf32> to vector<8x32xf32>
    %444 = vector.extract_strided_slice %442 {offsets = [0, 32], sizes = [8, 32], strides = [1, 1]} : vector<8x96xf32> to vector<8x32xf32>
    %445 = vector.extract_strided_slice %442 {offsets = [0, 64], sizes = [8, 32], strides = [1, 1]} : vector<8x96xf32> to vector<8x32xf32>
    %446 = vector.extract_strided_slice %436 {offsets = [0, 96], sizes = [8, 32], strides = [1, 1]} : vector<8x128xf32> to vector<8x32xf32>
    %447 = math.tanh %446 : vector<8x32xf32>
    %448 = arith.mulf %444, %367 : vector<8x32xf32>
    %449 = arith.mulf %443, %447 : vector<8x32xf32>
    %450 = arith.addf %448, %449 : vector<8x32xf32>
    %451 = math.tanh %450 : vector<8x32xf32>
    %452 = arith.mulf %445, %451 : vector<8x32xf32>
    %453 = arith.truncf %452 : vector<8x32xf32> to vector<8x32xbf16>
    %cst_94 = arith.constant dense<0.000000e+00> : vector<8x128xf32>
    %454 = tpu.matmul %370, %18, %cst_94 {dimension_numbers = #tpu.dot_dimension_numbers<[1], [0], [0], [1], [0, 0, 1, 1], [], []>} : vector<8x32xbf16>, vector<32x128xbf16>, vector<8x128xf32> -> vector<8x128xf32>
    %cst_95 = arith.constant dense<0.000000e+00> : vector<8x128xf32>
    %455 = tpu.matmul %391, %12, %cst_95 {dimension_numbers = #tpu.dot_dimension_numbers<[1], [0], [0], [1], [0, 0, 1, 1], [], []>} : vector<8x32xbf16>, vector<32x128xbf16>, vector<8x128xf32> -> vector<8x128xf32>
    %456 = arith.addf %454, %455 : vector<8x128xf32>
    %457 = arith.addf %456, %28 : vector<8x128xf32>
    %458 = vector.extract_strided_slice %457 {offsets = [0, 0], sizes = [8, 96], strides = [1, 1]} : vector<8x128xf32> to vector<8x96xf32>
    %459 = arith.negf %458 : vector<8x96xf32>
    %460 = math.exp %459 : vector<8x96xf32>
    %cst_96 = arith.constant 1.000000e+00 : f32
    %461 = vector.broadcast %cst_96 : f32 to vector<8x96xf32>
    %462 = arith.addf %461, %460 : vector<8x96xf32>
    %463 = arith.divf %461, %462 : vector<8x96xf32>
    %464 = vector.extract_strided_slice %463 {offsets = [0, 0], sizes = [8, 32], strides = [1, 1]} : vector<8x96xf32> to vector<8x32xf32>
    %465 = vector.extract_strided_slice %463 {offsets = [0, 32], sizes = [8, 32], strides = [1, 1]} : vector<8x96xf32> to vector<8x32xf32>
    %466 = vector.extract_strided_slice %463 {offsets = [0, 64], sizes = [8, 32], strides = [1, 1]} : vector<8x96xf32> to vector<8x32xf32>
    %467 = vector.extract_strided_slice %457 {offsets = [0, 96], sizes = [8, 32], strides = [1, 1]} : vector<8x128xf32> to vector<8x32xf32>
    %468 = math.tanh %467 : vector<8x32xf32>
    %469 = arith.mulf %465, %388 : vector<8x32xf32>
    %470 = arith.mulf %464, %468 : vector<8x32xf32>
    %471 = arith.addf %469, %470 : vector<8x32xf32>
    %472 = math.tanh %471 : vector<8x32xf32>
    %473 = arith.mulf %466, %472 : vector<8x32xf32>
    %474 = arith.truncf %473 : vector<8x32xf32> to vector<8x32xbf16>
    %cst_97 = arith.constant dense<0.000000e+00> : vector<8x128xf32>
    %475 = tpu.matmul %391, %20, %cst_97 {dimension_numbers = #tpu.dot_dimension_numbers<[1], [0], [0], [1], [0, 0, 1, 1], [], []>} : vector<8x32xbf16>, vector<32x128xbf16>, vector<8x128xf32> -> vector<8x128xf32>
    %cst_98 = arith.constant dense<0.000000e+00> : vector<8x128xf32>
    %476 = tpu.matmul %412, %14, %cst_98 {dimension_numbers = #tpu.dot_dimension_numbers<[1], [0], [0], [1], [0, 0, 1, 1], [], []>} : vector<8x32xbf16>, vector<32x128xbf16>, vector<8x128xf32> -> vector<8x128xf32>
    %477 = arith.addf %475, %476 : vector<8x128xf32>
    %478 = arith.addf %477, %32 : vector<8x128xf32>
    %479 = vector.extract_strided_slice %478 {offsets = [0, 0], sizes = [8, 96], strides = [1, 1]} : vector<8x128xf32> to vector<8x96xf32>
    %480 = arith.negf %479 : vector<8x96xf32>
    %481 = math.exp %480 : vector<8x96xf32>
    %cst_99 = arith.constant 1.000000e+00 : f32
    %482 = vector.broadcast %cst_99 : f32 to vector<8x96xf32>
    %483 = arith.addf %482, %481 : vector<8x96xf32>
    %484 = arith.divf %482, %483 : vector<8x96xf32>
    %485 = vector.extract_strided_slice %484 {offsets = [0, 0], sizes = [8, 32], strides = [1, 1]} : vector<8x96xf32> to vector<8x32xf32>
    %486 = vector.extract_strided_slice %484 {offsets = [0, 32], sizes = [8, 32], strides = [1, 1]} : vector<8x96xf32> to vector<8x32xf32>
    %487 = vector.extract_strided_slice %484 {offsets = [0, 64], sizes = [8, 32], strides = [1, 1]} : vector<8x96xf32> to vector<8x32xf32>
    %488 = vector.extract_strided_slice %478 {offsets = [0, 96], sizes = [8, 32], strides = [1, 1]} : vector<8x128xf32> to vector<8x32xf32>
    %489 = math.tanh %488 : vector<8x32xf32>
    %490 = arith.mulf %486, %409 : vector<8x32xf32>
    %491 = arith.mulf %485, %489 : vector<8x32xf32>
    %492 = arith.addf %490, %491 : vector<8x32xf32>
    %493 = math.tanh %492 : vector<8x32xf32>
    %494 = arith.mulf %487, %493 : vector<8x32xf32>
    %495 = arith.truncf %494 : vector<8x32xf32> to vector<8x32xbf16>
    %496 = vector.extract_strided_slice %6 {offsets = [56, 0], sizes = [8, 128], strides = [1, 1]} : vector<64x128xf32> to vector<8x128xf32>
    %cst_100 = arith.constant dense<0.000000e+00> : vector<8x128xf32>
    %497 = tpu.matmul %432, %8, %cst_100 {dimension_numbers = #tpu.dot_dimension_numbers<[1], [0], [0], [1], [0, 0, 1, 1], [], []>} : vector<8x32xbf16>, vector<32x128xbf16>, vector<8x128xf32> -> vector<8x128xf32>
    %498 = arith.addf %496, %497 : vector<8x128xf32>
    %499 = vector.extract_strided_slice %498 {offsets = [0, 0], sizes = [8, 96], strides = [1, 1]} : vector<8x128xf32> to vector<8x96xf32>
    %500 = arith.negf %499 : vector<8x96xf32>
    %501 = math.exp %500 : vector<8x96xf32>
    %cst_101 = arith.constant 1.000000e+00 : f32
    %502 = vector.broadcast %cst_101 : f32 to vector<8x96xf32>
    %503 = arith.addf %502, %501 : vector<8x96xf32>
    %504 = arith.divf %502, %503 : vector<8x96xf32>
    %505 = vector.extract_strided_slice %504 {offsets = [0, 0], sizes = [8, 32], strides = [1, 1]} : vector<8x96xf32> to vector<8x32xf32>
    %506 = vector.extract_strided_slice %504 {offsets = [0, 32], sizes = [8, 32], strides = [1, 1]} : vector<8x96xf32> to vector<8x32xf32>
    %507 = vector.extract_strided_slice %504 {offsets = [0, 64], sizes = [8, 32], strides = [1, 1]} : vector<8x96xf32> to vector<8x32xf32>
    %508 = vector.extract_strided_slice %498 {offsets = [0, 96], sizes = [8, 32], strides = [1, 1]} : vector<8x128xf32> to vector<8x32xf32>
    %509 = math.tanh %508 : vector<8x32xf32>
    %510 = arith.mulf %506, %429 : vector<8x32xf32>
    %511 = arith.mulf %505, %509 : vector<8x32xf32>
    %512 = arith.addf %510, %511 : vector<8x32xf32>
    %513 = math.tanh %512 : vector<8x32xf32>
    %514 = arith.mulf %507, %513 : vector<8x32xf32>
    %515 = arith.truncf %514 : vector<8x32xf32> to vector<8x32xbf16>
    %cst_102 = arith.constant dense<0.000000e+00> : vector<8x128xf32>
    %516 = tpu.matmul %432, %16, %cst_102 {dimension_numbers = #tpu.dot_dimension_numbers<[1], [0], [0], [1], [0, 0, 1, 1], [], []>} : vector<8x32xbf16>, vector<32x128xbf16>, vector<8x128xf32> -> vector<8x128xf32>
    %cst_103 = arith.constant dense<0.000000e+00> : vector<8x128xf32>
    %517 = tpu.matmul %453, %10, %cst_103 {dimension_numbers = #tpu.dot_dimension_numbers<[1], [0], [0], [1], [0, 0, 1, 1], [], []>} : vector<8x32xbf16>, vector<32x128xbf16>, vector<8x128xf32> -> vector<8x128xf32>
    %518 = arith.addf %516, %517 : vector<8x128xf32>
    %519 = arith.addf %518, %24 : vector<8x128xf32>
    %520 = vector.extract_strided_slice %519 {offsets = [0, 0], sizes = [8, 96], strides = [1, 1]} : vector<8x128xf32> to vector<8x96xf32>
    %521 = arith.negf %520 : vector<8x96xf32>
    %522 = math.exp %521 : vector<8x96xf32>
    %cst_104 = arith.constant 1.000000e+00 : f32
    %523 = vector.broadcast %cst_104 : f32 to vector<8x96xf32>
    %524 = arith.addf %523, %522 : vector<8x96xf32>
    %525 = arith.divf %523, %524 : vector<8x96xf32>
    %526 = vector.extract_strided_slice %525 {offsets = [0, 0], sizes = [8, 32], strides = [1, 1]} : vector<8x96xf32> to vector<8x32xf32>
    %527 = vector.extract_strided_slice %525 {offsets = [0, 32], sizes = [8, 32], strides = [1, 1]} : vector<8x96xf32> to vector<8x32xf32>
    %528 = vector.extract_strided_slice %525 {offsets = [0, 64], sizes = [8, 32], strides = [1, 1]} : vector<8x96xf32> to vector<8x32xf32>
    %529 = vector.extract_strided_slice %519 {offsets = [0, 96], sizes = [8, 32], strides = [1, 1]} : vector<8x128xf32> to vector<8x32xf32>
    %530 = math.tanh %529 : vector<8x32xf32>
    %531 = arith.mulf %527, %450 : vector<8x32xf32>
    %532 = arith.mulf %526, %530 : vector<8x32xf32>
    %533 = arith.addf %531, %532 : vector<8x32xf32>
    %534 = math.tanh %533 : vector<8x32xf32>
    %535 = arith.mulf %528, %534 : vector<8x32xf32>
    %536 = arith.truncf %535 : vector<8x32xf32> to vector<8x32xbf16>
    %cst_105 = arith.constant dense<0.000000e+00> : vector<8x128xf32>
    %537 = tpu.matmul %453, %18, %cst_105 {dimension_numbers = #tpu.dot_dimension_numbers<[1], [0], [0], [1], [0, 0, 1, 1], [], []>} : vector<8x32xbf16>, vector<32x128xbf16>, vector<8x128xf32> -> vector<8x128xf32>
    %cst_106 = arith.constant dense<0.000000e+00> : vector<8x128xf32>
    %538 = tpu.matmul %474, %12, %cst_106 {dimension_numbers = #tpu.dot_dimension_numbers<[1], [0], [0], [1], [0, 0, 1, 1], [], []>} : vector<8x32xbf16>, vector<32x128xbf16>, vector<8x128xf32> -> vector<8x128xf32>
    %539 = arith.addf %537, %538 : vector<8x128xf32>
    %540 = arith.addf %539, %28 : vector<8x128xf32>
    %541 = vector.extract_strided_slice %540 {offsets = [0, 0], sizes = [8, 96], strides = [1, 1]} : vector<8x128xf32> to vector<8x96xf32>
    %542 = arith.negf %541 : vector<8x96xf32>
    %543 = math.exp %542 : vector<8x96xf32>
    %cst_107 = arith.constant 1.000000e+00 : f32
    %544 = vector.broadcast %cst_107 : f32 to vector<8x96xf32>
    %545 = arith.addf %544, %543 : vector<8x96xf32>
    %546 = arith.divf %544, %545 : vector<8x96xf32>
    %547 = vector.extract_strided_slice %546 {offsets = [0, 0], sizes = [8, 32], strides = [1, 1]} : vector<8x96xf32> to vector<8x32xf32>
    %548 = vector.extract_strided_slice %546 {offsets = [0, 32], sizes = [8, 32], strides = [1, 1]} : vector<8x96xf32> to vector<8x32xf32>
    %549 = vector.extract_strided_slice %546 {offsets = [0, 64], sizes = [8, 32], strides = [1, 1]} : vector<8x96xf32> to vector<8x32xf32>
    %550 = vector.extract_strided_slice %540 {offsets = [0, 96], sizes = [8, 32], strides = [1, 1]} : vector<8x128xf32> to vector<8x32xf32>
    %551 = math.tanh %550 : vector<8x32xf32>
    %552 = arith.mulf %548, %471 : vector<8x32xf32>
    %553 = arith.mulf %547, %551 : vector<8x32xf32>
    %554 = arith.addf %552, %553 : vector<8x32xf32>
    %555 = math.tanh %554 : vector<8x32xf32>
    %556 = arith.mulf %549, %555 : vector<8x32xf32>
    %557 = arith.truncf %556 : vector<8x32xf32> to vector<8x32xbf16>
    %cst_108 = arith.constant dense<0.000000e+00> : vector<8x128xf32>
    %558 = tpu.matmul %474, %20, %cst_108 {dimension_numbers = #tpu.dot_dimension_numbers<[1], [0], [0], [1], [0, 0, 1, 1], [], []>} : vector<8x32xbf16>, vector<32x128xbf16>, vector<8x128xf32> -> vector<8x128xf32>
    %cst_109 = arith.constant dense<0.000000e+00> : vector<8x128xf32>
    %559 = tpu.matmul %495, %14, %cst_109 {dimension_numbers = #tpu.dot_dimension_numbers<[1], [0], [0], [1], [0, 0, 1, 1], [], []>} : vector<8x32xbf16>, vector<32x128xbf16>, vector<8x128xf32> -> vector<8x128xf32>
    %560 = arith.addf %558, %559 : vector<8x128xf32>
    %561 = arith.addf %560, %32 : vector<8x128xf32>
    %562 = vector.extract_strided_slice %561 {offsets = [0, 0], sizes = [8, 96], strides = [1, 1]} : vector<8x128xf32> to vector<8x96xf32>
    %563 = arith.negf %562 : vector<8x96xf32>
    %564 = math.exp %563 : vector<8x96xf32>
    %cst_110 = arith.constant 1.000000e+00 : f32
    %565 = vector.broadcast %cst_110 : f32 to vector<8x96xf32>
    %566 = arith.addf %565, %564 : vector<8x96xf32>
    %567 = arith.divf %565, %566 : vector<8x96xf32>
    %568 = vector.extract_strided_slice %567 {offsets = [0, 0], sizes = [8, 32], strides = [1, 1]} : vector<8x96xf32> to vector<8x32xf32>
    %569 = vector.extract_strided_slice %567 {offsets = [0, 32], sizes = [8, 32], strides = [1, 1]} : vector<8x96xf32> to vector<8x32xf32>
    %570 = vector.extract_strided_slice %567 {offsets = [0, 64], sizes = [8, 32], strides = [1, 1]} : vector<8x96xf32> to vector<8x32xf32>
    %571 = vector.extract_strided_slice %561 {offsets = [0, 96], sizes = [8, 32], strides = [1, 1]} : vector<8x128xf32> to vector<8x32xf32>
    %572 = math.tanh %571 : vector<8x32xf32>
    %573 = arith.mulf %569, %492 : vector<8x32xf32>
    %574 = arith.mulf %568, %572 : vector<8x32xf32>
    %575 = arith.addf %573, %574 : vector<8x32xf32>
    %576 = math.tanh %575 : vector<8x32xf32>
    %577 = arith.mulf %570, %576 : vector<8x32xf32>
    %578 = arith.truncf %577 : vector<8x32xf32> to vector<8x32xbf16>
    %cst_111 = arith.constant dense<0.000000e+00> : vector<8x128xf32>
    %579 = tpu.matmul %515, %16, %cst_111 {dimension_numbers = #tpu.dot_dimension_numbers<[1], [0], [0], [1], [0, 0, 1, 1], [], []>} : vector<8x32xbf16>, vector<32x128xbf16>, vector<8x128xf32> -> vector<8x128xf32>
    %cst_112 = arith.constant dense<0.000000e+00> : vector<8x128xf32>
    %580 = tpu.matmul %536, %10, %cst_112 {dimension_numbers = #tpu.dot_dimension_numbers<[1], [0], [0], [1], [0, 0, 1, 1], [], []>} : vector<8x32xbf16>, vector<32x128xbf16>, vector<8x128xf32> -> vector<8x128xf32>
    %581 = arith.addf %579, %580 : vector<8x128xf32>
    %582 = arith.addf %581, %24 : vector<8x128xf32>
    %583 = vector.extract_strided_slice %582 {offsets = [0, 0], sizes = [8, 96], strides = [1, 1]} : vector<8x128xf32> to vector<8x96xf32>
    %584 = arith.negf %583 : vector<8x96xf32>
    %585 = math.exp %584 : vector<8x96xf32>
    %cst_113 = arith.constant 1.000000e+00 : f32
    %586 = vector.broadcast %cst_113 : f32 to vector<8x96xf32>
    %587 = arith.addf %586, %585 : vector<8x96xf32>
    %588 = arith.divf %586, %587 : vector<8x96xf32>
    %589 = vector.extract_strided_slice %588 {offsets = [0, 0], sizes = [8, 32], strides = [1, 1]} : vector<8x96xf32> to vector<8x32xf32>
    %590 = vector.extract_strided_slice %588 {offsets = [0, 32], sizes = [8, 32], strides = [1, 1]} : vector<8x96xf32> to vector<8x32xf32>
    %591 = vector.extract_strided_slice %588 {offsets = [0, 64], sizes = [8, 32], strides = [1, 1]} : vector<8x96xf32> to vector<8x32xf32>
    %592 = vector.extract_strided_slice %582 {offsets = [0, 96], sizes = [8, 32], strides = [1, 1]} : vector<8x128xf32> to vector<8x32xf32>
    %593 = math.tanh %592 : vector<8x32xf32>
    %594 = arith.mulf %590, %533 : vector<8x32xf32>
    %595 = arith.mulf %589, %593 : vector<8x32xf32>
    %596 = arith.addf %594, %595 : vector<8x32xf32>
    %597 = math.tanh %596 : vector<8x32xf32>
    %598 = arith.mulf %591, %597 : vector<8x32xf32>
    %599 = arith.truncf %598 : vector<8x32xf32> to vector<8x32xbf16>
    %cst_114 = arith.constant dense<0.000000e+00> : vector<8x128xf32>
    %600 = tpu.matmul %536, %18, %cst_114 {dimension_numbers = #tpu.dot_dimension_numbers<[1], [0], [0], [1], [0, 0, 1, 1], [], []>} : vector<8x32xbf16>, vector<32x128xbf16>, vector<8x128xf32> -> vector<8x128xf32>
    %cst_115 = arith.constant dense<0.000000e+00> : vector<8x128xf32>
    %601 = tpu.matmul %557, %12, %cst_115 {dimension_numbers = #tpu.dot_dimension_numbers<[1], [0], [0], [1], [0, 0, 1, 1], [], []>} : vector<8x32xbf16>, vector<32x128xbf16>, vector<8x128xf32> -> vector<8x128xf32>
    %602 = arith.addf %600, %601 : vector<8x128xf32>
    %603 = arith.addf %602, %28 : vector<8x128xf32>
    %604 = vector.extract_strided_slice %603 {offsets = [0, 0], sizes = [8, 96], strides = [1, 1]} : vector<8x128xf32> to vector<8x96xf32>
    %605 = arith.negf %604 : vector<8x96xf32>
    %606 = math.exp %605 : vector<8x96xf32>
    %cst_116 = arith.constant 1.000000e+00 : f32
    %607 = vector.broadcast %cst_116 : f32 to vector<8x96xf32>
    %608 = arith.addf %607, %606 : vector<8x96xf32>
    %609 = arith.divf %607, %608 : vector<8x96xf32>
    %610 = vector.extract_strided_slice %609 {offsets = [0, 0], sizes = [8, 32], strides = [1, 1]} : vector<8x96xf32> to vector<8x32xf32>
    %611 = vector.extract_strided_slice %609 {offsets = [0, 32], sizes = [8, 32], strides = [1, 1]} : vector<8x96xf32> to vector<8x32xf32>
    %612 = vector.extract_strided_slice %609 {offsets = [0, 64], sizes = [8, 32], strides = [1, 1]} : vector<8x96xf32> to vector<8x32xf32>
    %613 = vector.extract_strided_slice %603 {offsets = [0, 96], sizes = [8, 32], strides = [1, 1]} : vector<8x128xf32> to vector<8x32xf32>
    %614 = math.tanh %613 : vector<8x32xf32>
    %615 = arith.mulf %611, %554 : vector<8x32xf32>
    %616 = arith.mulf %610, %614 : vector<8x32xf32>
    %617 = arith.addf %615, %616 : vector<8x32xf32>
    %618 = math.tanh %617 : vector<8x32xf32>
    %619 = arith.mulf %612, %618 : vector<8x32xf32>
    %620 = arith.truncf %619 : vector<8x32xf32> to vector<8x32xbf16>
    %cst_117 = arith.constant dense<0.000000e+00> : vector<8x128xf32>
    %621 = tpu.matmul %557, %20, %cst_117 {dimension_numbers = #tpu.dot_dimension_numbers<[1], [0], [0], [1], [0, 0, 1, 1], [], []>} : vector<8x32xbf16>, vector<32x128xbf16>, vector<8x128xf32> -> vector<8x128xf32>
    %cst_118 = arith.constant dense<0.000000e+00> : vector<8x128xf32>
    %622 = tpu.matmul %578, %14, %cst_118 {dimension_numbers = #tpu.dot_dimension_numbers<[1], [0], [0], [1], [0, 0, 1, 1], [], []>} : vector<8x32xbf16>, vector<32x128xbf16>, vector<8x128xf32> -> vector<8x128xf32>
    %623 = arith.addf %621, %622 : vector<8x128xf32>
    %624 = arith.addf %623, %32 : vector<8x128xf32>
    %625 = vector.extract_strided_slice %624 {offsets = [0, 0], sizes = [8, 96], strides = [1, 1]} : vector<8x128xf32> to vector<8x96xf32>
    %626 = arith.negf %625 : vector<8x96xf32>
    %627 = math.exp %626 : vector<8x96xf32>
    %cst_119 = arith.constant 1.000000e+00 : f32
    %628 = vector.broadcast %cst_119 : f32 to vector<8x96xf32>
    %629 = arith.addf %628, %627 : vector<8x96xf32>
    %630 = arith.divf %628, %629 : vector<8x96xf32>
    %631 = vector.extract_strided_slice %630 {offsets = [0, 0], sizes = [8, 32], strides = [1, 1]} : vector<8x96xf32> to vector<8x32xf32>
    %632 = vector.extract_strided_slice %630 {offsets = [0, 32], sizes = [8, 32], strides = [1, 1]} : vector<8x96xf32> to vector<8x32xf32>
    %633 = vector.extract_strided_slice %630 {offsets = [0, 64], sizes = [8, 32], strides = [1, 1]} : vector<8x96xf32> to vector<8x32xf32>
    %634 = vector.extract_strided_slice %624 {offsets = [0, 96], sizes = [8, 32], strides = [1, 1]} : vector<8x128xf32> to vector<8x32xf32>
    %635 = math.tanh %634 : vector<8x32xf32>
    %636 = arith.mulf %632, %575 : vector<8x32xf32>
    %637 = arith.mulf %631, %635 : vector<8x32xf32>
    %638 = arith.addf %636, %637 : vector<8x32xf32>
    %639 = math.tanh %638 : vector<8x32xf32>
    %640 = arith.mulf %633, %639 : vector<8x32xf32>
    %641 = arith.truncf %640 : vector<8x32xf32> to vector<8x32xbf16>
    %cst_120 = arith.constant dense<0.000000e+00> : vector<8x128xf32>
    %642 = tpu.matmul %599, %18, %cst_120 {dimension_numbers = #tpu.dot_dimension_numbers<[1], [0], [0], [1], [0, 0, 1, 1], [], []>} : vector<8x32xbf16>, vector<32x128xbf16>, vector<8x128xf32> -> vector<8x128xf32>
    %cst_121 = arith.constant dense<0.000000e+00> : vector<8x128xf32>
    %643 = tpu.matmul %620, %12, %cst_121 {dimension_numbers = #tpu.dot_dimension_numbers<[1], [0], [0], [1], [0, 0, 1, 1], [], []>} : vector<8x32xbf16>, vector<32x128xbf16>, vector<8x128xf32> -> vector<8x128xf32>
    %644 = arith.addf %642, %643 : vector<8x128xf32>
    %645 = arith.addf %644, %28 : vector<8x128xf32>
    %646 = vector.extract_strided_slice %645 {offsets = [0, 0], sizes = [8, 96], strides = [1, 1]} : vector<8x128xf32> to vector<8x96xf32>
    %647 = arith.negf %646 : vector<8x96xf32>
    %648 = math.exp %647 : vector<8x96xf32>
    %cst_122 = arith.constant 1.000000e+00 : f32
    %649 = vector.broadcast %cst_122 : f32 to vector<8x96xf32>
    %650 = arith.addf %649, %648 : vector<8x96xf32>
    %651 = arith.divf %649, %650 : vector<8x96xf32>
    %652 = vector.extract_strided_slice %651 {offsets = [0, 0], sizes = [8, 32], strides = [1, 1]} : vector<8x96xf32> to vector<8x32xf32>
    %653 = vector.extract_strided_slice %651 {offsets = [0, 32], sizes = [8, 32], strides = [1, 1]} : vector<8x96xf32> to vector<8x32xf32>
    %654 = vector.extract_strided_slice %651 {offsets = [0, 64], sizes = [8, 32], strides = [1, 1]} : vector<8x96xf32> to vector<8x32xf32>
    %655 = vector.extract_strided_slice %645 {offsets = [0, 96], sizes = [8, 32], strides = [1, 1]} : vector<8x128xf32> to vector<8x32xf32>
    %656 = math.tanh %655 : vector<8x32xf32>
    %657 = arith.mulf %653, %617 : vector<8x32xf32>
    %658 = arith.mulf %652, %656 : vector<8x32xf32>
    %659 = arith.addf %657, %658 : vector<8x32xf32>
    %660 = math.tanh %659 : vector<8x32xf32>
    %661 = arith.mulf %654, %660 : vector<8x32xf32>
    %662 = arith.truncf %661 : vector<8x32xf32> to vector<8x32xbf16>
    %cst_123 = arith.constant dense<0.000000e+00> : vector<8x128xf32>
    %663 = tpu.matmul %620, %20, %cst_123 {dimension_numbers = #tpu.dot_dimension_numbers<[1], [0], [0], [1], [0, 0, 1, 1], [], []>} : vector<8x32xbf16>, vector<32x128xbf16>, vector<8x128xf32> -> vector<8x128xf32>
    %cst_124 = arith.constant dense<0.000000e+00> : vector<8x128xf32>
    %664 = tpu.matmul %641, %14, %cst_124 {dimension_numbers = #tpu.dot_dimension_numbers<[1], [0], [0], [1], [0, 0, 1, 1], [], []>} : vector<8x32xbf16>, vector<32x128xbf16>, vector<8x128xf32> -> vector<8x128xf32>
    %665 = arith.addf %663, %664 : vector<8x128xf32>
    %666 = arith.addf %665, %32 : vector<8x128xf32>
    %667 = vector.extract_strided_slice %666 {offsets = [0, 0], sizes = [8, 96], strides = [1, 1]} : vector<8x128xf32> to vector<8x96xf32>
    %668 = arith.negf %667 : vector<8x96xf32>
    %669 = math.exp %668 : vector<8x96xf32>
    %cst_125 = arith.constant 1.000000e+00 : f32
    %670 = vector.broadcast %cst_125 : f32 to vector<8x96xf32>
    %671 = arith.addf %670, %669 : vector<8x96xf32>
    %672 = arith.divf %670, %671 : vector<8x96xf32>
    %673 = vector.extract_strided_slice %672 {offsets = [0, 0], sizes = [8, 32], strides = [1, 1]} : vector<8x96xf32> to vector<8x32xf32>
    %674 = vector.extract_strided_slice %672 {offsets = [0, 32], sizes = [8, 32], strides = [1, 1]} : vector<8x96xf32> to vector<8x32xf32>
    %675 = vector.extract_strided_slice %672 {offsets = [0, 64], sizes = [8, 32], strides = [1, 1]} : vector<8x96xf32> to vector<8x32xf32>
    %676 = vector.extract_strided_slice %666 {offsets = [0, 96], sizes = [8, 32], strides = [1, 1]} : vector<8x128xf32> to vector<8x32xf32>
    %677 = math.tanh %676 : vector<8x32xf32>
    %678 = arith.mulf %674, %638 : vector<8x32xf32>
    %679 = arith.mulf %673, %677 : vector<8x32xf32>
    %680 = arith.addf %678, %679 : vector<8x32xf32>
    %681 = math.tanh %680 : vector<8x32xf32>
    %682 = arith.mulf %675, %681 : vector<8x32xf32>
    %683 = arith.truncf %682 : vector<8x32xf32> to vector<8x32xbf16>
    %cst_126 = arith.constant dense<0.000000e+00> : vector<8x128xf32>
    %684 = tpu.matmul %662, %20, %cst_126 {dimension_numbers = #tpu.dot_dimension_numbers<[1], [0], [0], [1], [0, 0, 1, 1], [], []>} : vector<8x32xbf16>, vector<32x128xbf16>, vector<8x128xf32> -> vector<8x128xf32>
    %cst_127 = arith.constant dense<0.000000e+00> : vector<8x128xf32>
    %685 = tpu.matmul %683, %14, %cst_127 {dimension_numbers = #tpu.dot_dimension_numbers<[1], [0], [0], [1], [0, 0, 1, 1], [], []>} : vector<8x32xbf16>, vector<32x128xbf16>, vector<8x128xf32> -> vector<8x128xf32>
    %686 = arith.addf %684, %685 : vector<8x128xf32>
    %687 = arith.addf %686, %32 : vector<8x128xf32>
    %688 = vector.extract_strided_slice %687 {offsets = [0, 0], sizes = [8, 96], strides = [1, 1]} : vector<8x128xf32> to vector<8x96xf32>
    %689 = arith.negf %688 : vector<8x96xf32>
    %690 = math.exp %689 : vector<8x96xf32>
    %cst_128 = arith.constant 1.000000e+00 : f32
    %691 = vector.broadcast %cst_128 : f32 to vector<8x96xf32>
    %692 = arith.addf %691, %690 : vector<8x96xf32>
    %693 = arith.divf %691, %692 : vector<8x96xf32>
    %694 = vector.extract_strided_slice %693 {offsets = [0, 0], sizes = [8, 32], strides = [1, 1]} : vector<8x96xf32> to vector<8x32xf32>
    %695 = vector.extract_strided_slice %693 {offsets = [0, 32], sizes = [8, 32], strides = [1, 1]} : vector<8x96xf32> to vector<8x32xf32>
    %696 = vector.extract_strided_slice %693 {offsets = [0, 64], sizes = [8, 32], strides = [1, 1]} : vector<8x96xf32> to vector<8x32xf32>
    %697 = vector.extract_strided_slice %687 {offsets = [0, 96], sizes = [8, 32], strides = [1, 1]} : vector<8x128xf32> to vector<8x32xf32>
    %698 = math.tanh %697 : vector<8x32xf32>
    %699 = arith.mulf %695, %680 : vector<8x32xf32>
    %700 = arith.mulf %694, %698 : vector<8x32xf32>
    %701 = arith.addf %699, %700 : vector<8x32xf32>
    %702 = math.tanh %701 : vector<8x32xf32>
    %703 = arith.mulf %696, %702 : vector<8x32xf32>
    %704 = arith.truncf %703 : vector<8x32xf32> to vector<8x32xbf16>
    %c0_129 = arith.constant 0 : index
    %c0_130 = arith.constant 0 : index
    %705 = vector.load %arg5[%c0_129, %c0_130] : memref<32x8xbf16, #tpu.memory_space<vmem>>, vector<32x8xbf16>
    %cst_131 = arith.constant dense<0.000000e+00> : vector<8x8xf32>
    %706 = tpu.matmul %704, %705, %cst_131 {dimension_numbers = #tpu.dot_dimension_numbers<[1], [0], [0], [1], [0, 0, 1, 1], [], []>} : vector<8x32xbf16>, vector<32x8xbf16>, vector<8x8xf32> -> vector<8x8xf32>
    %c0_132 = arith.constant 0 : index
    %c0_133 = arith.constant 0 : index
    %707 = vector.load %arg6[%c0_132, %c0_133] : memref<1x8xf32, #tpu.memory_space<vmem>>, vector<1x8xf32>
    %708 = vector.broadcast %707 : vector<1x8xf32> to vector<8x8xf32>
    %709 = arith.addf %706, %708 : vector<8x8xf32>
    %c0_134 = arith.constant 0 : index
    %c0_135 = arith.constant 0 : index
    %710 = vector.load %arg7[%c0_134, %c0_135] : memref<8x8xf32, #tpu.memory_space<vmem>>, vector<8x8xf32>
    tpu.vector_store %arg7[%c0_134, %c0_135], %709 {strides = array<i32>} : memref<8x8xf32, #tpu.memory_space<vmem>>, vector<8x8xf32>,
    return
  }
}

</mosaic_0001>

<bundles_post_ra>
// kernel: lstm_forward.1
= control target key start
LH: loop header
LB: loop body
LE: loop exit
PB: predicated region body
PF: predicated region fallthrough
CT: control target
= control target key end

     0   :  { %v4706_v0 = vmov 0.0   ;;  %vm4707_vm0 = vmmov 0   ;;  %vm70_vm1 = vcmask 130048   ;;  %v4708_v6 = vmov 0   ;;  %s4709_s12 = smov 32   ;;  %s5648_s1 = inlined_call_operand.vmem [shape: bf16[16,128], index: 1, kind: input, shape index: {}]   ;;  %s5649_s3 = inlined_call_operand.vmem [shape: bf16[4,32,128], index: 3, kind: input, shape index: {}]   ;;  %s5650_s0 = inlined_call_operand.vmem [shape: bf16[64,16], index: 0, kind: input, shape index: {}]   ;;  %s5651_s4 = inlined_call_operand.vmem [shape: f32[4,1,128], index: 4, kind: input, shape index: {}]   ;;  %s5652_s2 = inlined_call_operand.vmem [shape: bf16[3,32,128], index: 2, kind: input, shape index: {}]   ;;  %s5653_s5 = inlined_call_operand.vmem [shape: bf16[32,8], index: 5, kind: input, shape index: {}]   ;;  %s5654_s6 = inlined_call_operand.vmem [shape: f32[1,8], index: 6, kind: input, shape index: {}]   ;;  %s5655_s7 = inlined_call_operand.vmem [shape: f32[8,8], index: 7, kind: output, shape index: {}]  }
   0x1   :  { %3950 = vmatprep.subr.bf16.mxu1 %v4706_v0  ;;  %v4411_v1 = vld [vmem:[%s5648_s1] sm:$0xff]   ;;  %3954 = vmatprep.mubr.msk.bf16.mxu1 %vm4707_vm0, %v4706_v0  ;;  %v4414_v4 = vld [vmem:[%s5650_s0 + $0x8] sm:$0xff]   ;;  %v4807_v28 = vld [vmem:[%s5649_s3 + $0x10] sm:$0xff]   ;;  %vm217_vm2 = vcmask 261120   ;;  %vm3620_vm3 = vcmask 64512  }
   0x2   :  { %v4760_v2 = vld [vmem:[%s5649_s3] sm:$0xff]   ;;  %3940 = vmatprep.subr.bf16.mxu0 %v4411_v1  ;;  %v4774_v5 = vld [vmem:[%s5649_s3 + $0x8] sm:$0xff]   ;;  %v4417_v29 = vld [vmem:[%s5650_s0 + $0x10] sm:$0xff]  }
   0x3   :  { %v4413_v3 = vld [vmem:[%s5650_s0] sm:$0xff]   ;;  %3951 = vmatpush3.bf16.msra.mxu1 %v4760_v2  ;;  %3941 = vmatpush3.bf16.msra.mxu0 %v4411_v1  ;;  %v4418_v30 = vld [vmem:[%s5650_s0 + $0x18] sm:$0xff]   ;;  %s4710_s0 = smov 64   ;;  %v4855_v42 = vld [vmem:[%s5652_s2 + $0x8] sm:$0xff]  }
   0x4   :  { %3942 = vmatprep.mubr.msk.bf16.mxu0 %vm70_vm1, %v4413_v3  ;;  %3952 = vmatprep.subr.bf16.mxu1 %v4706_v0  ;;  %v4790_v7 = vld [vmem:[%s5651_s4] ss:$0 sm:$0xff]  ;;  %v4825_v32 = vld [vmem:[%s5649_s3 + $0x18] sm:$0xff]   ;;  %v4874_v53 = vld [vmem:[%s5651_s4 + $0x1] ss:$0 sm:$0xff] }
   0x5   :  { %3966 = vmatprep.subr.bf16.mxu0 %v4706_v0  ;;  %v4848_v40 = vld [vmem:[%s5652_s2] sm:$0xff]  }
   0x6   :  { %3943 = vmatmul.mubr.msk.bf16.vlgmr.msra.gmra.mrb[0].mxu0 %vm70_vm1, %v4414_v4 }
   0x7   :  { %3953 = vmatpush3.bf16.msra.mxu1 %v4774_v5  ;;  %3967 = vmatpush3.bf16.msra.mxu0 %v4807_v28 }
   0x8   :  { %3958 = vmatprep.subr.bf16.mxu1 %v4706_v0  ;;  %3946 = vmatprep.mubr.msk.bf16.mxu0 %vm70_vm1, %v4417_v29 }
   0x9   :  { %3968 = vmatprep.subr.bf16.mxu0 %v4706_v0 }
   0xa   :  { %3955 = vmatmul.mubr.bf16.vlgmr.msra.gmra.mrb[0].mxu1 %v4708_v6 }
   0xb   :  { %3959 = vmatpush3.bf16.msra.mxu1 %v4760_v2  ;;  %3962 = vmatprep.mubr.msk.bf16.mxu1 %vm4707_vm0, %v4706_v0 }
   0xc   :  { %3960 = vmatprep.subr.bf16.mxu1 %v4706_v0  ;;  %3969 = vmatpush3.bf16.msra.mxu0 %v4825_v32 }
   0xd   :  { %3982 = vmatprep.subr.bf16.mxu0 %v4706_v0 }
   0xe   :  { %3947 = vmatmul.mubr.msk.bf16.gmra.mrb[4].mxu0 %vm70_vm1, %v4418_v30 }
   0xf   :  { %3961 = vmatpush3.bf16.msra.mxu1 %v4774_v5  ;;  %3970 = vmatprep.mubr.msk.bf16.mxu0 %vm4707_vm0, %v4706_v0 }
  0x10   :  { %3974 = vmatprep.subr.bf16.mxu1 %v4706_v0 }
  0x16   :  { %3971 = vmatmul.mubr.bf16.vlgmr.msra.gmra.mrb[8].mxu0 %v4708_v6 }
  0x17   :  { %3983 = vmatpush3.bf16.msra.mxu0 %v4760_v2  ;;  %3986 = vmatprep.mubr.msk.bf16.mxu0 %vm4707_vm0, %v4706_v0 }
  0x18   :  { %3984 = vmatprep.subr.bf16.mxu0 %v4706_v0 }
  0x1b   :  { %3985 = vmatpush3.bf16.msra.mxu0 %v4774_v5 }
  0x1c   :  { %3998 = vmatprep.subr.bf16.mxu0 %v4706_v0 }
  0xd9   :  { %v4792_v8 = vpop.f32.mrb[0].mxu0 }
  0xda   :  { %v117_v9 = vpop.f32.mrb[1].mxu0 }
  0xdb   :  { %v118_v10 = vadd.f32 %v4790_v7, %v117_v9  ;;  %v4795_v11 = vpop.f32.mrb[2].mxu0 }
  0xdc   :  { %v4797_v12 = vpop.f32.mrb[3].mxu0 }
  0xdd   :  { %v255_v13 = vpop.f32.mrb[0].mxu1  ;;  %v121_v47 = vadd.f32 %v4790_v7, %v4797_v12 }
  0xde   :  { %v261_v14 = vadd.f32 %v255_v13, %v118_v10  ;;  %v3956_v15 = vpop.f32.mrb[1].mxu1 }
  0xdf   :  { %v258_v16 = vpop.f32.mrb[2].mxu1 }
  0xe0   :  { %4432 = vtanh.f32 %v261_v14  ;;  %v3957_v17 = vpop.f32.mrb[3].mxu1  ;;  %v3664_v19 = vmul.f32 -1.442695, %v261_v14 }
  0xe1   :  { %v4837_v36 = vpop.f32.mrb[4].mxu0 }
  0xe2   :  { %4434 = vpow2.f32 %v3664_v19  ;;  %v4839_v37 = vpop.f32.mrb[5].mxu0 }
  0xe3   :  { %v4841_v38 = vpop.f32.mrb[6].mxu0 }
  0xe4   :  { %v4843_v39 = vpop.f32.mrb[7].mxu0 }
  0xe9   :  { %v405_v43 = vpop.f32.mrb[8].mxu0 }
  0xea   :  { %v4433_v18 = vpop.eup %4432  ;;  %v3972_v44 = vpop.f32.mrb[9].mxu0 }
  0xeb   :  { %271 = vrot.lane.b32.xlu0 %v4433_v18, %s4709_s12  ;;  %v408_v45 = vpop.f32.mrb[10].mxu0  ;;  %v4924_v44 = vld [vmem:[%s5649_s3 + $0x28] sm:$0xff]  }
  0xec   :  { %v4435_v20 = vpop.eup %4434  ;;  %v3973_v46 = vpop.f32.mrb[11].mxu0  ;;  %v126_v45 = vadd.f32 %v4792_v8, %v4790_v7 }
  0xed   :  { %v265_v21 = vadd.f32 1.0, %v4435_v20 }
  0xef   :  { %4436 = vrcp.f32 %v265_v21 }
  0xf9   :  { %v4437_v22 = vpop.eup %4436 }
  0xfa   :  { %v269_v25 = vmul.f32 0.0, %v4437_v22 }
 0x15d   :  { %v272_v23 = vpop.permute.xlu0 %271 }
 0x15e   :  { %v274_v24 = vmul.f32 %v4437_v22, %v272_v23 }
 0x160   :  { %276 = vrot.lane.b32.xlu0 %v274_v24, %s4709_s12 }
 0x1d2   :  { %v277_v26 = vpop.permute.xlu0 %276 }
 0x1d3   :  { %v4801_v27 = vadd.f32 %v277_v26, %v269_v25 }
 0x1d5   :  { %4438 = vtanh.f32 %v4801_v27 }
 0x1df   :  { %v4439_v31 = vpop.eup %4438 }
 0x1e0   :  { %282 = vrot.lane.b32.xlu1 %v4439_v31, %s4709_s12 }
 0x252   :  { %v283_v33 = vpop.permute.xlu1 %282 }
 0x253   :  { %v285_v34 = vmul.f32 %v4437_v22, %v283_v33 }
 0x255   :  { %v286_v35 = vpack.c.bf16 %v285_v34, %v285_v34  ;;  %v4901_v34 = vld [vmem:[%s5652_s2 + $0x10] sm:$0xff]  }
 0x257   :  { %288 = vrot.lane.b32.xlu1 %v286_v35, %s4710_s0  ;;  %v4907_v35 = vld [vmem:[%s5649_s3 + $0x20] sm:$0xff]  }
 0x2c9   :  { %v289_v41 = vpop.permute.xlu1 %288 }
 0x2ca   :  { %3963 = vmatmul.mubr.msk.bf16.vlgmr.msra.gmra.mrb[4].mxu1 %vm217_vm2, %v289_v41 }
 0x2cb   :  { %3975 = vmatpush3.bf16.msra.mxu1 %v4848_v40  ;;  %3978 = vmatprep.mubr.msk.bf16.mxu1 %vm4707_vm0, %v4706_v0 }
 0x2cc   :  { %3976 = vmatprep.subr.bf16.mxu1 %v4706_v0 }
 0x2cf   :  { %3977 = vmatpush3.bf16.msra.mxu1 %v4855_v42 }
 0x2d0   :  { %3990 = vmatprep.subr.bf16.mxu1 %v4706_v0 }
 0x2d2   :  { %3979 = vmatmul.mubr.msk.bf16.vlgmr.msra.gmra.mrb[8].mxu1 %vm217_vm2, %v289_v41 }
 0x2d3   :  { %3991 = vmatpush3.bf16.msra.mxu1 %v4807_v28  ;;  %3994 = vmatprep.mubr.msk.bf16.mxu1 %vm4707_vm0, %v4706_v0 }
 0x2d4   :  { %3992 = vmatprep.subr.bf16.mxu1 %v4706_v0 }
 0x2d7   :  { %3993 = vmatpush3.bf16.msra.mxu1 %v4825_v32 }
 0x2d8   :  { %4006 = vmatprep.subr.bf16.mxu1 %v4706_v0 }
 0x39d   :  { %v327_v48 = vpop.f32.mrb[4].mxu1 }
 0x39e   :  { %v333_v49 = vadd.f32 %v327_v48, %v121_v47  ;;  %v3964_v50 = vpop.f32.mrb[5].mxu1 }
 0x39f   :  { %v330_v51 = vpop.f32.mrb[6].mxu1 }
 0x3a0   :  { %4440 = vtanh.f32 %v333_v49  ;;  %v3965_v52 = vpop.f32.mrb[7].mxu1  ;;  %v3666_v62 = vmul.f32 -1.442695, %v333_v49 }
 0x3a5   :  { %v457_v54 = vpop.f32.mrb[8].mxu1 }
 0x3a6   :  { %v458_v55 = vadd.f32 %v457_v54, %v405_v43  ;;  %v3980_v56 = vpop.f32.mrb[9].mxu1  ;;  %v4914_v43 = vld [vmem:[%s5652_s2 + $0x18] sm:$0xff]  }
 0x3a7   :  { %v460_v57 = vpop.f32.mrb[10].mxu1 }
 0x3a8   :  { %v463_v58 = vadd.f32 %v4874_v53, %v458_v55  ;;  %v3981_v59 = vpop.f32.mrb[11].mxu1 }
 0x3aa   :  { %v4441_v60 = vpop.eup %4440  ;;  %4442 = vtanh.f32 %v463_v58  ;;  %v3672_v63 = vmul.f32 -1.442695, %v463_v58 }
 0x3ab   :  { %343 = vrot.lane.b32.xlu0 %v4441_v60, %s4709_s12  ;;  %4444 = vpow2.f32 %v3666_v62 }
 0x3ac   :  { %4446 = vpow2.f32 %v3672_v63 }
 0x3b4   :  { %v4443_v61 = vpop.eup %4442 }
 0x3b5   :  { %473 = vrot.lane.b32.xlu1 %v4443_v61, %s4709_s12  ;;  %v4445_v1 = vpop.eup %4444 }
 0x3b6   :  { %v337_v3 = vadd.f32 1.0, %v4445_v1  ;;  %v4447_v4 = vpop.eup %4446  ;;  %v4954_v1 = vld [vmem:[%s5651_s4 + $0x2] ss:$0 sm:$0xff] }
 0x3b7   :  { %v467_v9 = vadd.f32 1.0, %v4447_v4 }
 0x3b8   :  { %4448 = vrcp.f32 %v337_v3 }
 0x3b9   :  { %4450 = vrcp.f32 %v467_v9 }
 0x3c2   :  { %v4449_v10 = vpop.eup %4448 }
 0x3c3   :  { %v4451_v14 = vpop.eup %4450  ;;  %v341_v17 = vmul.f32 %v4449_v10, %v4801_v27 }
 0x3c4   :  { %v471_v20 = vmul.f32 0.0, %v4451_v14 }
 0x41d   :  { %v344_v12 = vpop.permute.xlu0 %343 }
 0x41e   :  { %v346_v13 = vmul.f32 %v4449_v10, %v344_v12 }
 0x420   :  { %348 = vrot.lane.b32.xlu0 %v346_v13, %s4709_s12 }
 0x427   :  { %v474_v15 = vpop.permute.xlu1 %473 }
 0x428   :  { %v476_v16 = vmul.f32 %v4451_v14, %v474_v15 }
 0x42a   :  { %478 = vrot.lane.b32.xlu1 %v476_v16, %s4709_s12 }
 0x492   :  { %v349_v18 = vpop.permute.xlu0 %348 }
 0x493   :  { %v4882_v19 = vadd.f32 %v349_v18, %v341_v17 }
 0x495   :  { %4452 = vtanh.f32 %v4882_v19 }
 0x49c   :  { %v479_v21 = vpop.permute.xlu1 %478 }
 0x49d   :  { %v4885_v22 = vadd.f32 %v479_v21, %v471_v20 }
 0x49f   :  { %v4453_v23 = vpop.eup %4452  ;;  %4454 = vtanh.f32 %v4885_v22 }
 0x4a0   :  { %354 = vrot.lane.b32.xlu0 %v4453_v23, %s4709_s12 }
 0x4a9   :  { %v4455_v24 = vpop.eup %4454 }
 0x4aa   :  { %484 = vrot.lane.b32.xlu1 %v4455_v24, %s4709_s12 }
 0x512   :  { %v355_v25 = vpop.permute.xlu0 %354 }
 0x513   :  { %v357_v26 = vmul.f32 %v4449_v10, %v355_v25 }
 0x515   :  { %v358_v27 = vpack.c.bf16 %v357_v26, %v357_v26 }
 0x517   :  { %490 = vrot.lane.b32.xlu0 %v358_v27, %s4710_s0 }
 0x51c   :  { %v485_v29 = vpop.permute.xlu1 %484 }
 0x51d   :  { %v487_v30 = vmul.f32 %v4451_v14, %v485_v29 }
 0x51f   :  { %v488_v31 = vpack.c.bf16 %v487_v30, %v487_v30 }
 0x521   :  { %562 = vrot.lane.b32.xlu1 %v488_v31, %s4710_s0 }
 0x589   :  { %v491_v33 = vpop.permute.xlu0 %490 }
 0x58a   :  { %3987 = vmatmul.mubr.msk.bf16.vlgmr.msra.gmra.mrb[12].mxu0 %vm217_vm2, %v491_v33 }
 0x58b   :  { %3999 = vmatpush3.bf16.msra.mxu0 %v4848_v40  ;;  %4002 = vmatprep.mubr.msk.bf16.mxu0 %vm4707_vm0, %v4706_v0 }
 0x58c   :  { %4000 = vmatprep.subr.bf16.mxu0 %v4706_v0 }
 0x58f   :  { %4001 = vmatpush3.bf16.msra.mxu0 %v4855_v42 }
 0x590   :  { %4014 = vmatprep.subr.bf16.mxu0 %v4706_v0 }
 0x592   :  { %4003 = vmatmul.mubr.msk.bf16.vlgmr.msra.gmra.mrb[16].mxu0 %vm217_vm2, %v491_v33 }
 0x593   :  { %4015 = vmatpush3.bf16.msra.mxu0 %v4901_v34  ;;  %v563_v41 = vpop.permute.xlu1 %562  ;;  %4018 = vmatprep.mubr.msk.bf16.mxu0 %vm4707_vm0, %v4706_v0 }
 0x594   :  { %3995 = vmatmul.mubr.msk.bf16.vlgmr.msra.gmra.mrb[12].mxu1 %vm217_vm2, %v563_v41  ;;  %4016 = vmatprep.subr.bf16.mxu0 %v4706_v0 }
 0x595   :  { %4007 = vmatpush3.bf16.msra.mxu1 %v4907_v35  ;;  %4010 = vmatprep.mubr.msk.bf16.mxu1 %vm4707_vm0, %v4706_v0 }
 0x596   :  { %4008 = vmatprep.subr.bf16.mxu1 %v4706_v0 }
 0x597   :  { %4017 = vmatpush3.bf16.msra.mxu0 %v4914_v43 }
 0x598   :  { %4030 = vmatprep.subr.bf16.mxu0 %v4706_v0 }
 0x599   :  { %4009 = vmatpush3.bf16.msra.mxu1 %v4924_v44 }
 0x59a   :  { %4019 = vmatmul.mubr.msk.bf16.vlgmr.msra.gmra.mrb[20].mxu0 %vm217_vm2, %v563_v41  ;;  %4022 = vmatprep.subr.bf16.mxu1 %v4706_v0 }
 0x59b   :  { %4031 = vmatpush3.bf16.msra.mxu0 %v4807_v28  ;;  %4034 = vmatprep.mubr.msk.bf16.mxu0 %vm4707_vm0, %v4706_v0 }
 0x59c   :  { %4011 = vmatmul.mubr.bf16.vlgmr.msra.gmra.mrb[16].mxu1 %v4708_v6  ;;  %4032 = vmatprep.subr.bf16.mxu0 %v4706_v0 }
 0x59d   :  { %4023 = vmatpush3.bf16.msra.mxu1 %v4760_v2  ;;  %4026 = vmatprep.mubr.msk.bf16.mxu1 %vm4707_vm0, %v4706_v0 }
 0x59e   :  { %4024 = vmatprep.subr.bf16.mxu1 %v4706_v0 }
 0x59f   :  { %4033 = vmatpush3.bf16.msra.mxu0 %v4825_v32 }
 0x5a0   :  { %4046 = vmatprep.subr.bf16.mxu0 %v4706_v0 }
 0x5a1   :  { %4025 = vmatpush3.bf16.msra.mxu1 %v4774_v5 }
 0x5a2   :  { %4038 = vmatprep.subr.bf16.mxu1 %v4706_v0 }
 0x65d   :  { %v529_v46 = vpop.f32.mrb[12].mxu0 }
 0x65e   :  { %v535_v47 = vadd.f32 %v529_v46, %v126_v45  ;;  %v3988_v48 = vpop.f32.mrb[13].mxu0 }
 0x65f   :  { %v532_v49 = vpop.f32.mrb[14].mxu0 }
 0x660   :  { %4456 = vtanh.f32 %v535_v47  ;;  %v3989_v50 = vpop.f32.mrb[15].mxu0  ;;  %v3674_v18 = vmul.f32 -1.442695, %v535_v47 }
 0x665   :  { %v641_v51 = vpop.f32.mrb[16].mxu0 }
 0x666   :  { %v4004_v52 = vpop.f32.mrb[17].mxu0 }
 0x667   :  { %v601_v54 = vpop.f32.mrb[12].mxu1  ;;  %v644_v55 = vpop.f32.mrb[18].mxu0 }
 0x668   :  { %v642_v56 = vadd.f32 %v641_v51, %v601_v54  ;;  %v3996_v57 = vpop.f32.mrb[13].mxu1  ;;  %v4005_v58 = vpop.f32.mrb[19].mxu0 }
 0x669   :  { %v604_v59 = vpop.f32.mrb[14].mxu1 }
 0x66a   :  { %v4457_v60 = vpop.eup %4456  ;;  %v647_v61 = vadd.f32 %v4874_v53, %v642_v56  ;;  %v3997_v62 = vpop.f32.mrb[15].mxu1 }
 0x66b   :  { %545 = vrot.lane.b32.xlu0 %v4457_v60, %s4709_s12 }
 0x66c   :  { %4458 = vtanh.f32 %v647_v61  ;;  %v3677_v20 = vmul.f32 -1.442695, %v647_v61 }
 0x66d   :  { %v771_v8 = vpop.f32.mrb[20].mxu0 }
 0x66e   :  { %v4020_v63 = vpop.f32.mrb[21].mxu0 }
 0x66f   :  { %v719_v3 = vpop.f32.mrb[16].mxu1  ;;  %v774_v4 = vpop.f32.mrb[22].mxu0 }
 0x670   :  { %v772_v9 = vadd.f32 %v771_v8, %v719_v3  ;;  %v4012_v10 = vpop.f32.mrb[17].mxu1  ;;  %v4021_v12 = vpop.f32.mrb[23].mxu0 }
 0x671   :  { %v722_v13 = vpop.f32.mrb[18].mxu1 }
 0x672   :  { %v777_v14 = vadd.f32 %v4954_v1, %v772_v9  ;;  %v4013_v15 = vpop.f32.mrb[19].mxu1 }
 0x673   :  { %v4997_v15 = vld [vmem:[%s5652_s2 + $0x20] sm:$0xff]  }
 0x674   :  { %4460 = vtanh.f32 %v777_v14  ;;  %v3683_v24 = vmul.f32 -1.442695, %v777_v14 }
 0x675   :  { %4462 = vpow2.f32 %v3674_v18 }
 0x676   :  { %v4459_v16 = vpop.eup %4458  ;;  %4464 = vpow2.f32 %v3677_v20  ;;  %v5026_v20 = vld [vmem:[%s5649_s3 + $0x38] sm:$0xff]  }
 0x677   :  { %657 = vrot.lane.b32.xlu1 %v4459_v16, %s4709_s12  ;;  %v5009_v16 = vld [vmem:[%s5649_s3 + $0x30] sm:$0xff]  }
 0x67e   :  { %v4461_v17 = vpop.eup %4460 }
 0x67f   :  { %787 = vrot.lane.b32.xlu0 %v4461_v17, %s4709_s12  ;;  %v4463_v21 = vpop.eup %4462  ;;  %v5014_v17 = vld [vmem:[%s5652_s2 + $0x28] sm:$0xff]  }
 0x680   :  { %v539_v23 = vadd.f32 1.0, %v4463_v21  ;;  %v4465_v25 = vpop.eup %4464  ;;  %v129_v21 = vadd.f32 %v4795_v11, %v4790_v7 }
 0x681   :  { %v651_v26 = vadd.f32 1.0, %v4465_v25 }
 0x682   :  { %4466 = vrcp.f32 %v539_v23 }
 0x683   :  { %4468 = vpow2.f32 %v3683_v24 }
 0x684   :  { %4470 = vrcp.f32 %v651_v26 }
 0x68c   :  { %v4467_v27 = vpop.eup %4466 }
 0x68d   :  { %v4469_v31 = vpop.eup %4468  ;;  %v543_v50 = vmul.f32 %v4467_v27, %v4882_v19 }
 0x68e   :  { %v781_v33 = vadd.f32 1.0, %v4469_v31  ;;  %v4471_v41 = vpop.eup %4470 }
 0x68f   :  { %v655_v54 = vmul.f32 %v4471_v41, %v4885_v22 }
 0x690   :  { %4472 = vrcp.f32 %v781_v33 }
 0x69a   :  { %v4473_v47 = vpop.eup %4472 }
 0x69b   :  { %v785_v58 = vmul.f32 0.0, %v4473_v47 }
 0x6dd   :  { %v546_v29 = vpop.permute.xlu0 %545 }
 0x6de   :  { %v548_v30 = vmul.f32 %v4467_v27, %v546_v29 }
 0x6e0   :  { %550 = vrot.lane.b32.xlu1 %v548_v30, %s4709_s12 }
 0x6e9   :  { %v658_v45 = vpop.permute.xlu1 %657 }
 0x6ea   :  { %v660_v46 = vmul.f32 %v4471_v41, %v658_v45 }
 0x6ec   :  { %662 = vrot.lane.b32.xlu0 %v660_v46, %s4709_s12 }
 0x6f1   :  { %v788_v48 = vpop.permute.xlu0 %787 }
 0x6f2   :  { %v790_v49 = vmul.f32 %v4473_v47, %v788_v48 }
 0x6f4   :  { %792 = vrot.lane.b32.xlu1 %v790_v49, %s4709_s12 }
 0x752   :  { %v551_v51 = vpop.permute.xlu1 %550 }
 0x753   :  { %v4963_v52 = vadd.f32 %v551_v51, %v543_v50 }
 0x755   :  { %4474 = vtanh.f32 %v4963_v52 }
 0x75e   :  { %v663_v55 = vpop.permute.xlu0 %662 }
 0x75f   :  { %v4475_v56 = vpop.eup %4474  ;;  %v4967_v57 = vadd.f32 %v663_v55, %v655_v54 }
 0x760   :  { %556 = vrot.lane.b32.xlu0 %v4475_v56, %s4709_s12 }
 0x761   :  { %4476 = vtanh.f32 %v4967_v57 }
 0x766   :  { %v793_v59 = vpop.permute.xlu1 %792 }
 0x767   :  { %v4971_v60 = vadd.f32 %v793_v59, %v785_v58 }
 0x769   :  { %4478 = vtanh.f32 %v4971_v60 }
 0x76b   :  { %v4477_v19 = vpop.eup %4476 }
 0x76c   :  { %668 = vrot.lane.b32.xlu1 %v4477_v19, %s4709_s12 }
 0x773   :  { %v4479_v61 = vpop.eup %4478 }
 0x774   :  { %798 = vrot.lane.b32.xlu0 %v4479_v61, %s4709_s12 }
 0x7d2   :  { %v557_v22 = vpop.permute.xlu0 %556 }
 0x7d3   :  { %v559_v62 = vmul.f32 %v4467_v27, %v557_v22 }
 0x7d5   :  { %v560_v8 = vpack.c.bf16 %v559_v62, %v559_v62 }
 0x7d7   :  { %804 = vrot.lane.b32.xlu1 %v560_v8, %s4710_s0 }
 0x7de   :  { %v669_v63 = vpop.permute.xlu1 %668 }
 0x7df   :  { %v671_v3 = vmul.f32 %v4471_v41, %v669_v63  ;;  %v5056_v63 = vld [vmem:[%s5651_s4 + $0x3] ss:$0 sm:$0xff] }
 0x7e1   :  { %v672_v4 = vpack.c.bf16 %v671_v3, %v671_v3 }
 0x7e3   :  { %876 = vrot.lane.b32.xlu0 %v672_v4, %s4710_s0 }
 0x7e6   :  { %v799_v9 = vpop.permute.xlu0 %798 }
 0x7e7   :  { %v801_v10 = vmul.f32 %v4473_v47, %v799_v9 }
 0x7e9   :  { %v802_v12 = vpack.c.bf16 %v801_v10, %v801_v10 }
 0x7eb   :  { %988 = vrot.lane.b32.xlu1 %v802_v12, %s4710_s0 }
 0x849   :  { %v805_v13 = vpop.permute.xlu1 %804 }
 0x84a   :  { %4027 = vmatmul.mubr.msk.bf16.vlgmr.msra.gmra.mrb[20].mxu1 %vm217_vm2, %v805_v13 }
 0x84b   :  { %4039 = vmatpush3.bf16.msra.mxu1 %v4848_v40  ;;  %4042 = vmatprep.mubr.msk.bf16.mxu1 %vm4707_vm0, %v4706_v0 }
 0x84c   :  { %4040 = vmatprep.subr.bf16.mxu1 %v4706_v0 }
 0x84f   :  { %4041 = vmatpush3.bf16.msra.mxu1 %v4855_v42 }
 0x850   :  { %4054 = vmatprep.subr.bf16.mxu1 %v4706_v0 }
 0x852   :  { %4043 = vmatmul.mubr.msk.bf16.vlgmr.msra.gmra.mrb[24].mxu1 %vm217_vm2, %v805_v13 }
 0x853   :  { %4055 = vmatpush3.bf16.msra.mxu1 %v4901_v34  ;;  %4058 = vmatprep.mubr.msk.bf16.mxu1 %vm4707_vm0, %v4706_v0 }
 0x854   :  { %4056 = vmatprep.subr.bf16.mxu1 %v4706_v0 }
 0x855   :  { %v877_v14 = vpop.permute.xlu0 %876 }
 0x856   :  { %4035 = vmatmul.mubr.msk.bf16.vlgmr.msra.gmra.mrb[24].mxu0 %vm217_vm2, %v877_v14 }
 0x857   :  { %4047 = vmatpush3.bf16.msra.mxu0 %v4907_v35  ;;  %4057 = vmatpush3.bf16.msra.mxu1 %v4914_v43 }
 0x858   :  { %4048 = vmatprep.subr.bf16.mxu0 %v4706_v0  ;;  %4070 = vmatprep.subr.bf16.mxu1 %v4706_v0 }
 0x859   :  { %4050 = vmatprep.mubr.msk.bf16.mxu0 %vm4707_vm0, %v4706_v0 }
 0x85a   :  { %4059 = vmatmul.mubr.msk.bf16.vlgmr.msra.gmra.mrb[28].mxu1 %vm217_vm2, %v877_v14 }
 0x85b   :  { %4049 = vmatpush3.bf16.msra.mxu0 %v4924_v44  ;;  %4071 = vmatpush3.bf16.msra.mxu1 %v4997_v15 }
 0x85c   :  { %4062 = vmatprep.subr.bf16.mxu0 %v4706_v0  ;;  %4072 = vmatprep.subr.bf16.mxu1 %v4706_v0 }
 0x85d   :  { %v989_v18 = vpop.permute.xlu1 %988  ;;  %4074 = vmatprep.mubr.msk.bf16.mxu1 %vm4707_vm0, %v4706_v0 }
 0x85e   :  { %4051 = vmatmul.mubr.msk.bf16.vlgmr.msra.gmra.mrb[28].mxu0 %vm217_vm2, %v989_v18 }
 0x85f   :  { %4063 = vmatpush3.bf16.msra.mxu0 %v5009_v16  ;;  %4073 = vmatpush3.bf16.msra.mxu1 %v5014_v17 }
 0x860   :  { %4064 = vmatprep.subr.bf16.mxu0 %v4706_v0  ;;  %4066 = vmatprep.mubr.msk.bf16.mxu0 %vm4707_vm0, %v4706_v0 }
 0x861   :  { %4086 = vmatprep.subr.bf16.mxu1 %v4706_v0 }
 0x862   :  { %4075 = vmatmul.mubr.msk.bf16.vlgmr.msra.gmra.mrb[32].mxu1 %vm217_vm2, %v989_v18 }
 0x863   :  { %4065 = vmatpush3.bf16.msra.mxu0 %v5026_v20  ;;  %4087 = vmatpush3.bf16.msra.mxu1 %v4807_v28 }
 0x864   :  { %4078 = vmatprep.subr.bf16.mxu0 %v4706_v0  ;;  %4088 = vmatprep.subr.bf16.mxu1 %v4706_v0 }
 0x865   :  { %4090 = vmatprep.mubr.msk.bf16.mxu1 %vm4707_vm0, %v4706_v0 }
 0x866   :  { %4067 = vmatmul.mubr.bf16.vlgmr.msra.gmra.mrb[32].mxu0 %v4708_v6 }
 0x867   :  { %4079 = vmatpush3.bf16.msra.mxu0 %v4760_v2  ;;  %4082 = vmatprep.mubr.msk.bf16.mxu0 %vm4707_vm0, %v4706_v0 }
 0x868   :  { %4080 = vmatprep.subr.bf16.mxu0 %v4706_v0  ;;  %4089 = vmatpush3.bf16.msra.mxu1 %v4825_v32 }
 0x869   :  { %4102 = vmatprep.subr.bf16.mxu1 %v4706_v0 }
 0x86b   :  { %4081 = vmatpush3.bf16.msra.mxu0 %v4774_v5 }
 0x86c   :  { %4094 = vmatprep.subr.bf16.mxu0 %v4706_v0 }
 0x91d   :  { %v843_v23 = vpop.f32.mrb[20].mxu1 }
 0x91e   :  { %v849_v6 = vadd.f32 %v843_v23, %v129_v21  ;;  %v4028_v24 = vpop.f32.mrb[21].mxu1 }
 0x91f   :  { %v846_v2 = vpop.f32.mrb[22].mxu1 }
 0x920   :  { %4480 = vtanh.f32 %v849_v6  ;;  %v4029_v25 = vpop.f32.mrb[23].mxu1  ;;  %v3685_v21 = vmul.f32 -1.442695, %v849_v6 }
 0x925   :  { %v955_v26 = vpop.f32.mrb[24].mxu1 }
 0x926   :  { %v4044_v27 = vpop.f32.mrb[25].mxu1 }
 0x927   :  { %v958_v29 = vpop.f32.mrb[26].mxu1 }
 0x928   :  { %v4045_v30 = vpop.f32.mrb[27].mxu1 }
 0x929   :  { %v915_v31 = vpop.f32.mrb[24].mxu0 }
 0x92a   :  { %v4481_v33 = vpop.eup %4480  ;;  %v956_v41 = vadd.f32 %v955_v26, %v915_v31  ;;  %v4036_v45 = vpop.f32.mrb[25].mxu0 }
 0x92b   :  { %v918_v5 = vpop.f32.mrb[26].mxu0  ;;  %859 = vrot.lane.b32.xlu0 %v4481_v33, %s4709_s12 }
 0x92c   :  { %v961_v46 = vadd.f32 %v4874_v53, %v956_v41  ;;  %v4037_v11 = vpop.f32.mrb[27].mxu0 }
 0x92d   :  { %v1067_v47 = vpop.f32.mrb[28].mxu1 }
 0x92e   :  { %4482 = vtanh.f32 %v961_v46  ;;  %v4060_v48 = vpop.f32.mrb[29].mxu1  ;;  %v3688_v24 = vmul.f32 -1.442695, %v961_v46 }
 0x92f   :  { %v1070_v49 = vpop.f32.mrb[30].mxu1 }
 0x930   :  { %v4061_v50 = vpop.f32.mrb[31].mxu1 }
 0x931   :  { %v1027_v51 = vpop.f32.mrb[28].mxu0 }
 0x932   :  { %v1068_v54 = vadd.f32 %v1067_v47, %v1027_v51  ;;  %v4052_v55 = vpop.f32.mrb[29].mxu0 }
 0x933   :  { %v1030_v56 = vpop.f32.mrb[30].mxu0 }
 0x934   :  { %v1073_v58 = vadd.f32 %v4954_v1, %v1068_v54  ;;  %v4053_v59 = vpop.f32.mrb[31].mxu0 }
 0x935   :  { %v1197_v19 = vpop.f32.mrb[32].mxu1 }
 0x936   :  { %4484 = vtanh.f32 %v1073_v58  ;;  %v4076_v61 = vpop.f32.mrb[33].mxu1  ;;  %v3691_v25 = vmul.f32 -1.442695, %v1073_v58 }
 0x937   :  { %v1200_v22 = vpop.f32.mrb[34].mxu1 }
 0x938   :  { %v4483_v62 = vpop.eup %4482  ;;  %v4077_v8 = vpop.f32.mrb[35].mxu1 }
 0x939   :  { %v1145_v3 = vpop.f32.mrb[32].mxu0  ;;  %971 = vrot.lane.b32.xlu1 %v4483_v62, %s4709_s12 }
 0x93a   :  { %v1198_v4 = vadd.f32 %v1197_v19, %v1145_v3  ;;  %v4068_v9 = vpop.f32.mrb[33].mxu0 }
 0x93b   :  { %v1148_v10 = vpop.f32.mrb[34].mxu0 }
 0x93c   :  { %v1203_v12 = vadd.f32 %v5056_v63, %v1198_v4  ;;  %v4069_v13 = vpop.f32.mrb[35].mxu0 }
 0x93e   :  { %4486 = vtanh.f32 %v1203_v12  ;;  %v3697_v27 = vmul.f32 -1.442695, %v1203_v12 }
 0x93f   :  { %4488 = vpow2.f32 %v3685_v21 }
 0x940   :  { %v4485_v14 = vpop.eup %4484  ;;  %4490 = vpow2.f32 %v3688_v24 }
 0x941   :  { %1083 = vrot.lane.b32.xlu0 %v4485_v14, %s4709_s12 }
 0x948   :  { %v4487_v18 = vpop.eup %4486 }
 0x949   :  { %1213 = vrot.lane.b32.xlu1 %v4487_v18, %s4709_s12  ;;  %v4489_v23 = vpop.eup %4488 }
 0x94a   :  { %v853_v2 = vadd.f32 1.0, %v4489_v23  ;;  %v4491_v26 = vpop.eup %4490 }
 0x94b   :  { %v965_v30 = vadd.f32 1.0, %v4491_v26 }
 0x94c   :  { %4492 = vrcp.f32 %v853_v2 }
 0x94d   :  { %4494 = vpow2.f32 %v3691_v25 }
 0x94e   :  { %4496 = vpow2.f32 %v3697_v27 }
 0x94f   :  { %4498 = vrcp.f32 %v965_v30 }
 0x956   :  { %v4493_v29 = vpop.eup %4492 }
 0x957   :  { %v4495_v41 = vpop.eup %4494  ;;  %v857_v56 = vmul.f32 %v4493_v29, %v4963_v52 }
 0x958   :  { %v1077_v6 = vadd.f32 1.0, %v4495_v41  ;;  %v4497_v45 = vpop.eup %4496  ;;  %v134_v41 = vadd.f32 %v4790_v7, %v4839_v37 }
 0x959   :  { %v4499_v5 = vpop.eup %4498  ;;  %v1207_v47 = vadd.f32 1.0, %v4497_v45 }
 0x95a   :  { %4500 = vrcp.f32 %v1077_v6  ;;  %v969_v61 = vmul.f32 %v4499_v5, %v4967_v57 }
 0x95b   :  { %4502 = vrcp.f32 %v1207_v47 }
 0x964   :  { %v4501_v48 = vpop.eup %4500 }
 0x965   :  { %v4503_v51 = vpop.eup %4502  ;;  %v1081_v8 = vmul.f32 %v4501_v48, %v4971_v60 }
 0x966   :  { %v1211_v9 = vmul.f32 0.0, %v4503_v51 }
 0x99d   :  { %v860_v31 = vpop.permute.xlu0 %859 }
 0x99e   :  { %v862_v33 = vmul.f32 %v4493_v29, %v860_v31 }
 0x9a0   :  { %864 = vrot.lane.b32.xlu0 %v862_v33, %s4709_s12 }
 0x9ab   :  { %v972_v46 = vpop.permute.xlu1 %971 }
 0x9ac   :  { %v974_v11 = vmul.f32 %v4499_v5, %v972_v46 }
 0x9ae   :  { %976 = vrot.lane.b32.xlu1 %v974_v11, %s4709_s12 }
 0x9b3   :  { %v1084_v49 = vpop.permute.xlu0 %1083 }
 0x9b4   :  { %v1086_v50 = vmul.f32 %v4501_v48, %v1084_v49 }
 0x9b6   :  { %1088 = vrot.lane.b32.xlu0 %v1086_v50, %s4709_s12 }
 0x9bb   :  { %v1214_v54 = vpop.permute.xlu1 %1213 }
 0x9bc   :  { %v1216_v55 = vmul.f32 %v4503_v51, %v1214_v54 }
 0x9be   :  { %1218 = vrot.lane.b32.xlu1 %v1216_v55, %s4709_s12 }
 0xa12   :  { %v865_v58 = vpop.permute.xlu0 %864 }
 0xa13   :  { %v5067_v59 = vadd.f32 %v865_v58, %v857_v56 }
 0xa15   :  { %4504 = vtanh.f32 %v5067_v59 }
 0xa1f   :  { %v4505_v19 = vpop.eup %4504 }
 0xa20   :  { %870 = vrot.lane.b32.xlu0 %v4505_v19, %s4709_s12  ;;  %v977_v22 = vpop.permute.xlu1 %976 }
 0xa21   :  { %v5072_v62 = vadd.f32 %v977_v22, %v969_v61 }
 0xa23   :  { %4506 = vtanh.f32 %v5072_v62 }
 0xa28   :  { %v1089_v3 = vpop.permute.xlu0 %1088 }
 0xa29   :  { %v5076_v4 = vadd.f32 %v1089_v3, %v1081_v8 }
 0xa2b   :  { %4508 = vtanh.f32 %v5076_v4 }
 0xa2d   :  { %v4507_v52 = vpop.eup %4506 }
 0xa2e   :  { %982 = vrot.lane.b32.xlu1 %v4507_v52, %s4709_s12 }
 0xa30   :  { %v1219_v10 = vpop.permute.xlu1 %1218 }
 0xa31   :  { %v5080_v57 = vadd.f32 %v1219_v10, %v1211_v9 }
 0xa33   :  { %4510 = vtanh.f32 %v5080_v57 }
 0xa35   :  { %v4509_v12 = vpop.eup %4508 }
 0xa36   :  { %1094 = vrot.lane.b32.xlu0 %v4509_v12, %s4709_s12 }
 0xa3d   :  { %v4511_v13 = vpop.eup %4510 }
 0xa3e   :  { %1224 = vrot.lane.b32.xlu1 %v4511_v13, %s4709_s12 }
 0xa92   :  { %v871_v60 = vpop.permute.xlu0 %870 }
 0xa93   :  { %v873_v14 = vmul.f32 %v4493_v29, %v871_v60 }
 0xa95   :  { %v874_v18 = vpack.c.bf16 %v873_v14, %v873_v14 }
 0xa97   :  { %1230 = vrot.lane.b32.xlu0 %v874_v18, %s4710_s0 }
 0xaa0   :  { %v983_v21 = vpop.permute.xlu1 %982 }
 0xaa1   :  { %v985_v23 = vmul.f32 %v4499_v5, %v983_v21 }
 0xaa3   :  { %v986_v24 = vpack.c.bf16 %v985_v23, %v985_v23 }
 0xaa5   :  { %1302 = vrot.lane.b32.xlu1 %v986_v24, %s4710_s0 }
 0xaa8   :  { %v1095_v2 = vpop.permute.xlu0 %1094 }
 0xaa9   :  { %v1097_v25 = vmul.f32 %v4501_v48, %v1095_v2 }
 0xaab   :  { %v1098_v26 = vpack.c.bf16 %v1097_v25, %v1097_v25 }
 0xaad   :  { %1414 = vrot.lane.b32.xlu0 %v1098_v26, %s4710_s0 }
 0xab0   :  { %v1225_v27 = vpop.permute.xlu1 %1224 }
 0xab1   :  { %v1227_v30 = vmul.f32 %v4503_v51, %v1225_v27 }
 0xab3   :  { %v1228_v31 = vpack.c.bf16 %v1227_v30, %v1227_v30 }
 0xab5   :  { %1526 = vrot.lane.b32.xlu1 %v1228_v31, %s4710_s0 }
 0xb09   :  { %v1231_v33 = vpop.permute.xlu0 %1230 }
 0xb0a   :  { %4083 = vmatmul.mubr.msk.bf16.vlgmr.msra.gmra.mrb[36].mxu0 %vm217_vm2, %v1231_v33 }
 0xb0b   :  { %4095 = vmatpush3.bf16.msra.mxu0 %v4848_v40  ;;  %4098 = vmatprep.mubr.msk.bf16.mxu0 %vm4707_vm0, %v4706_v0 }
 0xb0c   :  { %4096 = vmatprep.subr.bf16.mxu0 %v4706_v0 }
 0xb0f   :  { %4097 = vmatpush3.bf16.msra.mxu0 %v4855_v42 }
 0xb10   :  { %4110 = vmatprep.subr.bf16.mxu0 %v4706_v0 }
 0xb12   :  { %4099 = vmatmul.mubr.msk.bf16.vlgmr.msra.gmra.mrb[40].mxu0 %vm217_vm2, %v1231_v33 }
 0xb13   :  { %4111 = vmatpush3.bf16.msra.mxu0 %v4901_v34  ;;  %4114 = vmatprep.mubr.msk.bf16.mxu0 %vm4707_vm0, %v4706_v0 }
 0xb14   :  { %4112 = vmatprep.subr.bf16.mxu0 %v4706_v0 }
 0xb17   :  { %4113 = vmatpush3.bf16.msra.mxu0 %v4914_v43  ;;  %v1303_v40 = vpop.permute.xlu1 %1302 }
 0xb18   :  { %4091 = vmatmul.mubr.msk.bf16.vlgmr.msra.gmra.mrb[36].mxu1 %vm217_vm2, %v1303_v40  ;;  %4126 = vmatprep.subr.bf16.mxu0 %v4706_v0 }
 0xb19   :  { %4103 = vmatpush3.bf16.msra.mxu1 %v4907_v35  ;;  %4106 = vmatprep.mubr.msk.bf16.mxu1 %vm4707_vm0, %v4706_v0 }
 0xb1a   :  { %4115 = vmatmul.mubr.msk.bf16.vlgmr.msra.gmra.mrb[44].mxu0 %vm217_vm2, %v1303_v40  ;;  %4104 = vmatprep.subr.bf16.mxu1 %v4706_v0 }
 0xb1b   :  { %4127 = vmatpush3.bf16.msra.mxu0 %v4997_v15  ;;  %4130 = vmatprep.mubr.msk.bf16.mxu0 %vm4707_vm0, %v4706_v0 }
 0xb1c   :  { %4128 = vmatprep.subr.bf16.mxu0 %v4706_v0 }
 0xb1d   :  { %4105 = vmatpush3.bf16.msra.mxu1 %v4924_v44 }
 0xb1e   :  { %4118 = vmatprep.subr.bf16.mxu1 %v4706_v0 }
 0xb1f   :  { %v1415_v42 = vpop.permute.xlu0 %1414  ;;  %4129 = vmatpush3.bf16.msra.mxu0 %v5014_v17 }
 0xb20   :  { %4107 = vmatmul.mubr.msk.bf16.vlgmr.msra.gmra.mrb[40].mxu1 %vm217_vm2, %v1415_v42  ;;  %4142 = vmatprep.subr.bf16.mxu0 %v4706_v0 }
 0xb21   :  { %4119 = vmatpush3.bf16.msra.mxu1 %v5009_v16  ;;  %4122 = vmatprep.mubr.msk.bf16.mxu1 %vm4707_vm0, %v4706_v0 }
 0xb22   :  { %4131 = vmatmul.mubr.msk.bf16.vlgmr.msra.gmra.mrb[48].mxu0 %vm217_vm2, %v1415_v42  ;;  %4120 = vmatprep.subr.bf16.mxu1 %v4706_v0 }
 0xb23   :  { %4143 = vmatpush3.bf16.msra.mxu0 %v4807_v28  ;;  %4146 = vmatprep.mubr.msk.bf16.mxu0 %vm4707_vm0, %v4706_v0  ;;  %v5135_v28 = vld [vmem:[%s5649_s3] sm:$0xff]  }
 0xb24   :  { %4144 = vmatprep.subr.bf16.mxu0 %v4706_v0 }
 0xb25   :  { %4121 = vmatpush3.bf16.msra.mxu1 %v5026_v20 }
 0xb26   :  { %4134 = vmatprep.subr.bf16.mxu1 %v4706_v0 }
 0xb27   :  { %v1527_v29 = vpop.permute.xlu1 %1526  ;;  %4145 = vmatpush3.bf16.msra.mxu0 %v4825_v32  ;;  %v5144_v32 = vld [vmem:[%s5649_s3 + $0x8] sm:$0xff]  }
 0xb28   :  { %4123 = vmatmul.mubr.msk.bf16.vlgmr.msra.gmra.mrb[44].mxu1 %vm217_vm2, %v1527_v29  ;;  %4158 = vmatprep.subr.bf16.mxu0 %v4706_v0 }
 0xb29   :  { %4135 = vmatpush3.bf16.msra.mxu1 %v5135_v28  ;;  %4138 = vmatprep.mubr.msk.bf16.mxu1 %vm4707_vm0, %v4706_v0 }
 0xb2a   :  { %4136 = vmatprep.subr.bf16.mxu1 %v4706_v0 }
 0xb2d   :  { %4137 = vmatpush3.bf16.msra.mxu1 %v5144_v32 }
 0xb2e   :  { %4150 = vmatprep.subr.bf16.mxu1 %v4706_v0 }
 0xbdd   :  { %v1269_v6 = vpop.f32.mrb[36].mxu0 }
 0xbde   :  { %v1275_v45 = vadd.f32 %v1269_v6, %v134_v41  ;;  %v4084_v5 = vpop.f32.mrb[37].mxu0 }
 0xbdf   :  { %v1272_v46 = vpop.f32.mrb[38].mxu0 }
 0xbe0   :  { %4512 = vtanh.f32 %v1275_v45  ;;  %v4085_v11 = vpop.f32.mrb[39].mxu0  ;;  %v3699_v33 = vmul.f32 -1.442695, %v1275_v45 }
 0xbe5   :  { %v1381_v47 = vpop.f32.mrb[40].mxu0 }
 0xbe6   :  { %v4100_v48 = vpop.f32.mrb[41].mxu0 }
 0xbe7   :  { %v1384_v49 = vpop.f32.mrb[42].mxu0 }
 0xbe8   :  { %v4101_v50 = vpop.f32.mrb[43].mxu0 }
 0xbea   :  { %v4513_v51 = vpop.eup %4512 }
 0xbeb   :  { %1285 = vrot.lane.b32.xlu0 %v4513_v51, %s4709_s12  ;;  %v1341_v54 = vpop.f32.mrb[36].mxu1 }
 0xbec   :  { %v1382_v55 = vadd.f32 %v1381_v47, %v1341_v54  ;;  %v4092_v56 = vpop.f32.mrb[37].mxu1 }
 0xbed   :  { %v1344_v58 = vpop.f32.mrb[38].mxu1  ;;  %v1493_v19 = vpop.f32.mrb[44].mxu0 }
 0xbee   :  { %v1387_v7 = vadd.f32 %v4874_v53, %v1382_v55  ;;  %v4093_v37 = vpop.f32.mrb[39].mxu1  ;;  %v4116_v61 = vpop.f32.mrb[45].mxu0 }
 0xbef   :  { %v1496_v22 = vpop.f32.mrb[46].mxu0 }
 0xbf0   :  { %4514 = vtanh.f32 %v1387_v7  ;;  %v4117_v8 = vpop.f32.mrb[47].mxu0  ;;  %v3702_v42 = vmul.f32 -1.442695, %v1387_v7 }
 0xbf3   :  { %v1453_v3 = vpop.f32.mrb[40].mxu1 }
 0xbf4   :  { %v1494_v52 = vadd.f32 %v1493_v19, %v1453_v3  ;;  %v4108_v9 = vpop.f32.mrb[41].mxu1 }
 0xbf5   :  { %v1456_v10 = vpop.f32.mrb[42].mxu1  ;;  %v1605_v12 = vpop.f32.mrb[48].mxu0 }
 0xbf6   :  { %v1499_v13 = vadd.f32 %v4954_v1, %v1494_v52  ;;  %v4109_v60 = vpop.f32.mrb[43].mxu1  ;;  %v4132_v14 = vpop.f32.mrb[49].mxu0 }
 0xbf7   :  { %v1608_v18 = vpop.f32.mrb[50].mxu0 }
 0xbf8   :  { %4516 = vtanh.f32 %v1499_v13  ;;  %v4133_v21 = vpop.f32.mrb[51].mxu0  ;;  %v3705_v41 = vmul.f32 -1.442695, %v1499_v13 }
 0xbfa   :  { %v4515_v23 = vpop.eup %4514 }
 0xbfb   :  { %1397 = vrot.lane.b32.xlu1 %v4515_v23, %s4709_s12  ;;  %v1565_v53 = vpop.f32.mrb[44].mxu1 }
 0xbfc   :  { %v1606_v24 = vadd.f32 %v1605_v12, %v1565_v53  ;;  %v4124_v2 = vpop.f32.mrb[45].mxu1 }
 0xbfd   :  { %v1568_v25 = vpop.f32.mrb[46].mxu1 }
 0xbfe   :  { %v1611_v26 = vadd.f32 %v5056_v63, %v1606_v24  ;;  %v4125_v27 = vpop.f32.mrb[47].mxu1 }
 0xc00   :  { %4518 = vtanh.f32 %v1611_v26  ;;  %v3708_v11 = vmul.f32 -1.442695, %v1611_v26 }
 0xc01   :  { %4520 = vpow2.f32 %v3699_v33 }
 0xc02   :  { %v4517_v30 = vpop.eup %4516  ;;  %4522 = vpow2.f32 %v3702_v42 }
 0xc03   :  { %1509 = vrot.lane.b32.xlu0 %v4517_v30, %s4709_s12 }
 0xc0a   :  { %v4519_v31 = vpop.eup %4518 }
 0xc0b   :  { %1621 = vrot.lane.b32.xlu1 %v4519_v31, %s4709_s12  ;;  %v4521_v40 = vpop.eup %4520 }
 0xc0c   :  { %v1279_v29 = vadd.f32 1.0, %v4521_v40  ;;  %v4523_v6 = vpop.eup %4522 }
 0xc0d   :  { %v1391_v48 = vadd.f32 1.0, %v4523_v6  ;;  %v5189_v6 = vld [vmem:[%s5652_s2] sm:$0xff]  }
 0xc0e   :  { %4524 = vrcp.f32 %v1279_v29 }
 0xc0f   :  { %4526 = vpow2.f32 %v3705_v41 }
 0xc10   :  { %4528 = vpow2.f32 %v3708_v11 }
 0xc11   :  { %4530 = vrcp.f32 %v1391_v48 }
 0xc18   :  { %v4525_v5 = vpop.eup %4524 }
 0xc19   :  { %v4527_v49 = vpop.eup %4526  ;;  %v1283_v8 = vmul.f32 %v4525_v5, %v5067_v59 }
 0xc1a   :  { %v1503_v45 = vadd.f32 1.0, %v4527_v49  ;;  %v4529_v50 = vpop.eup %4528 }
 0xc1b   :  { %v4531_v51 = vpop.eup %4530  ;;  %v1615_v56 = vadd.f32 1.0, %v4529_v50 }
 0xc1c   :  { %4532 = vrcp.f32 %v1503_v45  ;;  %v1395_v10 = vmul.f32 %v4531_v51, %v5072_v62 }
 0xc1d   :  { %4534 = vrcp.f32 %v1615_v56 }
 0xc26   :  { %v4533_v58 = vpop.eup %4532 }
 0xc27   :  { %v4535_v37 = vpop.eup %4534  ;;  %v1507_v60 = vmul.f32 %v4533_v58, %v5076_v4 }
 0xc28   :  { %v1619_v21 = vmul.f32 %v4535_v37, %v5080_v57 }
 0xc5d   :  { %v1286_v46 = vpop.permute.xlu0 %1285 }
 0xc5e   :  { %v1288_v47 = vmul.f32 %v4525_v5, %v1286_v46 }
 0xc60   :  { %1290 = vrot.lane.b32.xlu0 %v1288_v47, %s4709_s12 }
 0xc6d   :  { %v1398_v54 = vpop.permute.xlu1 %1397 }
 0xc6e   :  { %v1400_v55 = vmul.f32 %v4531_v51, %v1398_v54 }
 0xc70   :  { %1402 = vrot.lane.b32.xlu1 %v1400_v55, %s4709_s12 }
 0xc75   :  { %v1510_v19 = vpop.permute.xlu0 %1509 }
 0xc76   :  { %v1512_v7 = vmul.f32 %v4533_v58, %v1510_v19 }
 0xc78   :  { %1514 = vrot.lane.b32.xlu0 %v1512_v7, %s4709_s12 }
 0xc7d   :  { %v1622_v61 = vpop.permute.xlu1 %1621 }
 0xc7e   :  { %v1624_v22 = vmul.f32 %v4535_v37, %v1622_v61  ;;  %v5265_v61 = vld [vmem:[%s5651_s4 + $0x1] ss:$0 sm:$0xff] }
 0xc80   :  { %1626 = vrot.lane.b32.xlu1 %v1624_v22, %s4709_s12 }
 0xcd2   :  { %v1291_v3 = vpop.permute.xlu0 %1290 }
 0xcd3   :  { %v5162_v52 = vadd.f32 %v1291_v3, %v1283_v8 }
 0xcd5   :  { %4536 = vtanh.f32 %v5162_v52 }
 0xcdf   :  { %v4537_v9 = vpop.eup %4536 }
 0xce0   :  { %1296 = vrot.lane.b32.xlu0 %v4537_v9, %s4709_s12 }
 0xce2   :  { %v1403_v12 = vpop.permute.xlu1 %1402 }
 0xce3   :  { %v5167_v13 = vadd.f32 %v1403_v12, %v1395_v10 }
 0xce5   :  { %4538 = vtanh.f32 %v5167_v13 }
 0xcea   :  { %v1515_v14 = vpop.permute.xlu0 %1514 }
 0xceb   :  { %v5171_v18 = vadd.f32 %v1515_v14, %v1507_v60 }
 0xced   :  { %4540 = vtanh.f32 %v5171_v18 }
 0xcef   :  { %v4539_v59 = vpop.eup %4538 }
 0xcf0   :  { %1408 = vrot.lane.b32.xlu1 %v4539_v59, %s4709_s12 }
 0xcf2   :  { %v1627_v23 = vpop.permute.xlu1 %1626 }
 0xcf3   :  { %v5176_v53 = vadd.f32 %v1627_v23, %v1619_v21 }
 0xcf5   :  { %4542 = vtanh.f32 %v5176_v53 }
 0xcf7   :  { %v4541_v62 = vpop.eup %4540 }
 0xcf8   :  { %1520 = vrot.lane.b32.xlu0 %v4541_v62, %s4709_s12 }
 0xcff   :  { %v4543_v24 = vpop.eup %4542 }
 0xd00   :  { %1632 = vrot.lane.b32.xlu1 %v4543_v24, %s4709_s12 }
 0xd52   :  { %v1297_v4 = vpop.permute.xlu0 %1296 }
 0xd53   :  { %v1299_v2 = vmul.f32 %v4525_v5, %v1297_v4  ;;  %v5198_v5 = vld [vmem:[%s5652_s2 + $0x8] sm:$0xff]  }
 0xd55   :  { %v1300_v25 = vpack.c.bf16 %v1299_v2, %v1299_v2 }
 0xd57   :  { %1638 = vrot.lane.b32.xlu0 %v1300_v25, %s4710_s0 }
 0xd62   :  { %v1409_v26 = vpop.permute.xlu1 %1408 }
 0xd63   :  { %v1411_v27 = vmul.f32 %v4531_v51, %v1409_v26 }
 0xd65   :  { %v1412_v30 = vpack.c.bf16 %v1411_v27, %v1411_v27 }
 0xd67   :  { %1710 = vrot.lane.b32.xlu1 %v1412_v30, %s4710_s0 }
 0xd6a   :  { %v1521_v57 = vpop.permute.xlu0 %1520 }
 0xd6b   :  { %v1523_v31 = vmul.f32 %v4533_v58, %v1521_v57 }
 0xd6d   :  { %v1524_v33 = vpack.c.bf16 %v1523_v31, %v1523_v31 }
 0xd6f   :  { %1822 = vrot.lane.b32.xlu0 %v1524_v33, %s4710_s0 }
 0xd72   :  { %v1633_v40 = vpop.permute.xlu1 %1632 }
 0xd73   :  { %v1635_v42 = vmul.f32 %v4535_v37, %v1633_v40 }
 0xd75   :  { %v1636_v29 = vpack.c.bf16 %v1635_v42, %v1635_v42 }
 0xd77   :  { %1934 = vrot.lane.b32.xlu1 %v1636_v29, %s4710_s0 }
 0xdc9   :  { %v1639_v41 = vpop.permute.xlu0 %1638 }
 0xdca   :  { %4139 = vmatmul.mubr.msk.bf16.vlgmr.msra.gmra.mrb[48].mxu1 %vm217_vm2, %v1639_v41 }
 0xdcb   :  { %4151 = vmatpush3.bf16.msra.mxu1 %v5189_v6  ;;  %4154 = vmatprep.mubr.msk.bf16.mxu1 %vm4707_vm0, %v4706_v0 }
 0xdcc   :  { %4152 = vmatprep.subr.bf16.mxu1 %v4706_v0 }
 0xdcf   :  { %4153 = vmatpush3.bf16.msra.mxu1 %v5198_v5 }
 0xdd0   :  { %4166 = vmatprep.subr.bf16.mxu1 %v4706_v0 }
 0xdd2   :  { %4155 = vmatmul.mubr.msk.bf16.vlgmr.msra.gmra.mrb[52].mxu1 %vm217_vm2, %v1639_v41 }
 0xdd3   :  { %4167 = vmatpush3.bf16.msra.mxu1 %v4901_v34  ;;  %4170 = vmatprep.mubr.msk.bf16.mxu1 %vm4707_vm0, %v4706_v0 }
 0xdd4   :  { %4168 = vmatprep.subr.bf16.mxu1 %v4706_v0 }
 0xdd7   :  { %4169 = vmatpush3.bf16.msra.mxu1 %v4914_v43  ;;  %v5243_v43 = vld [vmem:[%s5649_s3 + $0x18] sm:$0xff]  }
 0xdd8   :  { %4182 = vmatprep.subr.bf16.mxu1 %v4706_v0 }
 0xdd9   :  { %v1711_v46 = vpop.permute.xlu1 %1710 }
 0xdda   :  { %4147 = vmatmul.mubr.msk.bf16.vlgmr.msra.gmra.mrb[52].mxu0 %vm217_vm2, %v1711_v46  ;;  %4171 = vmatmul.mubr.msk.bf16.vlgmr.msra.gmra.mrb[56].mxu1 %vm217_vm2, %v1711_v46 }
 0xddb   :  { %4159 = vmatpush3.bf16.msra.mxu0 %v4907_v35  ;;  %4183 = vmatpush3.bf16.msra.mxu1 %v4997_v15  ;;  %v5232_v35 = vld [vmem:[%s5649_s3 + $0x10] sm:$0xff]   ;;  %v5257_v15 = vld [vmem:[%s5651_s4] ss:$0 sm:$0xff] }
 0xddc   :  { %4160 = vmatprep.subr.bf16.mxu0 %v4706_v0  ;;  %4184 = vmatprep.subr.bf16.mxu1 %v4706_v0 }
 0xddd   :  { %4162 = vmatprep.mubr.msk.bf16.mxu0 %vm4707_vm0, %v4706_v0  ;;  %4186 = vmatprep.mubr.msk.bf16.mxu1 %vm4707_vm0, %v4706_v0 }
 0xddf   :  { %4161 = vmatpush3.bf16.msra.mxu0 %v4924_v44  ;;  %4185 = vmatpush3.bf16.msra.mxu1 %v5014_v17 }
 0xde0   :  { %4174 = vmatprep.subr.bf16.mxu0 %v4706_v0  ;;  %4198 = vmatprep.subr.bf16.mxu1 %v4706_v0 }
 0xde1   :  { %v1823_v34 = vpop.permute.xlu0 %1822 }
 0xde2   :  { %4163 = vmatmul.mubr.msk.bf16.vlgmr.msra.gmra.mrb[56].mxu0 %vm217_vm2, %v1823_v34  ;;  %4187 = vmatmul.mubr.msk.bf16.vlgmr.msra.gmra.mrb[60].mxu1 %vm217_vm2, %v1823_v34 }
 0xde3   :  { %4175 = vmatpush3.bf16.msra.mxu0 %v5009_v16  ;;  %4178 = vmatprep.mubr.msk.bf16.mxu0 %vm4707_vm0, %v4706_v0  ;;  %v137_v16 = vadd.f32 %v5257_v15, %v4843_v39 }
 0xde4   :  { %4176 = vmatprep.subr.bf16.mxu0 %v4706_v0  ;;  %4199 = vmatpush3.bf16.msra.mxu1 %v5232_v35 }
 0xde5   :  { %4200 = vmatprep.subr.bf16.mxu1 %v4706_v0  ;;  %4202 = vmatprep.mubr.msk.bf16.mxu1 %vm4707_vm0, %v4706_v0 }
 0xde7   :  { %4177 = vmatpush3.bf16.msra.mxu0 %v5026_v20 }
 0xde8   :  { %4190 = vmatprep.subr.bf16.mxu0 %v4706_v0  ;;  %4201 = vmatpush3.bf16.msra.mxu1 %v5243_v43 }
 0xde9   :  { %v1935_v44 = vpop.permute.xlu1 %1934  ;;  %4214 = vmatprep.subr.bf16.mxu1 %v4706_v0 }
 0xdea   :  { %4179 = vmatmul.mubr.msk.bf16.vlgmr.msra.gmra.mrb[60].mxu0 %vm217_vm2, %v1935_v44 }
 0xdeb   :  { %4191 = vmatpush3.bf16.msra.mxu0 %v5135_v28  ;;  %4194 = vmatprep.mubr.msk.bf16.mxu0 %vm4707_vm0, %v4706_v0 }
 0xdec   :  { %4192 = vmatprep.subr.bf16.mxu0 %v4706_v0 }
 0xdef   :  { %4193 = vmatpush3.bf16.msra.mxu0 %v5144_v32 }
 0xdf0   :  { %4206 = vmatprep.subr.bf16.mxu0 %v4706_v0 }
 0xe9d   :  { %v1677_v17 = vpop.f32.mrb[48].mxu1 }
 0xe9e   :  { %v1683_v20 = vadd.f32 %v1677_v17, %v137_v16  ;;  %v4140_v11 = vpop.f32.mrb[49].mxu1 }
 0xe9f   :  { %v1680_v47 = vpop.f32.mrb[50].mxu1 }
 0xea0   :  { %4544 = vtanh.f32 %v1683_v20  ;;  %v4141_v48 = vpop.f32.mrb[51].mxu1 }
 0xea5   :  { %v1789_v49 = vpop.f32.mrb[52].mxu1 }
 0xea6   :  { %v4156_v45 = vpop.f32.mrb[53].mxu1 }
 0xea7   :  { %v1792_v50 = vpop.f32.mrb[54].mxu1 }
 0xea8   :  { %v4157_v51 = vpop.f32.mrb[55].mxu1 }
 0xeaa   :  { %v4545_v54 = vpop.eup %4544 }
 0xeab   :  { %1693 = vrot.lane.b32.xlu0 %v4545_v54, %s4709_s12 }
 0xead   :  { %v1749_v55 = vpop.f32.mrb[52].mxu0  ;;  %v1901_v56 = vpop.f32.mrb[56].mxu1 }
 0xeae   :  { %v1790_v58 = vadd.f32 %v1789_v49, %v1749_v55  ;;  %v4148_v19 = vpop.f32.mrb[53].mxu0  ;;  %v4172_v7 = vpop.f32.mrb[57].mxu1 }
 0xeaf   :  { %v1752_v37 = vpop.f32.mrb[54].mxu0  ;;  %v1904_v39 = vpop.f32.mrb[58].mxu1 }
 0xeb0   :  { %v1795_v22 = vadd.f32 %v5265_v61, %v1790_v58  ;;  %v4149_v8 = vpop.f32.mrb[55].mxu0  ;;  %v4173_v3 = vpop.f32.mrb[59].mxu1 }
 0xeb2   :  { %4546 = vtanh.f32 %v1795_v22  ;;  %v3713_v29 = vmul.f32 -1.442695, %v1795_v22 }
 0xeb5   :  { %v1861_v9 = vpop.f32.mrb[56].mxu0  ;;  %v2013_v10 = vpop.f32.mrb[60].mxu1 }
 0xeb6   :  { %v1902_v12 = vadd.f32 %v1901_v56, %v1861_v9  ;;  %v4164_v60 = vpop.f32.mrb[57].mxu0  ;;  %v4188_v14 = vpop.f32.mrb[61].mxu1 }
 0xeb7   :  { %v1864_v59 = vpop.f32.mrb[58].mxu0  ;;  %v2016_v21 = vpop.f32.mrb[62].mxu1 }
 0xeb8   :  { %v1907_v23 = vadd.f32 %v4954_v1, %v1902_v12  ;;  %v4165_v62 = vpop.f32.mrb[59].mxu0  ;;  %v4189_v24 = vpop.f32.mrb[63].mxu1  ;;  %v3710_v1 = vmul.f32 -1.442695, %v1683_v20 }
 0xeba   :  { %4548 = vtanh.f32 %v1907_v23  ;;  %v3716_v41 = vmul.f32 -1.442695, %v1907_v23 }
 0xebc   :  { %v4547_v4 = vpop.eup %4546 }
 0xebd   :  { %v1973_v2 = vpop.f32.mrb[60].mxu0  ;;  %1805 = vrot.lane.b32.xlu1 %v4547_v4, %s4709_s12 }
 0xebe   :  { %v2014_v25 = vadd.f32 %v2013_v10, %v1973_v2  ;;  %v4180_v26 = vpop.f32.mrb[61].mxu0 }
 0xebf   :  { %v1976_v27 = vpop.f32.mrb[62].mxu0 }
 0xec0   :  { %v2019_v30 = vadd.f32 %v5056_v63, %v2014_v25  ;;  %v4181_v57 = vpop.f32.mrb[63].mxu0 }
 0xec2   :  { %4550 = vtanh.f32 %v2019_v30  ;;  %v3719_v16 = vmul.f32 -1.442695, %v2019_v30 }
 0xec3   :  { %4552 = vpow2.f32 %v3710_v1  ;;  %v5312_v1 = vld [vmem:[%s5652_s2 + $0x10] sm:$0xff]  }
 0xec4   :  { %v4549_v31 = vpop.eup %4548 }
 0xec5   :  { %1917 = vrot.lane.b32.xlu0 %v4549_v31, %s4709_s12 }
 0xecc   :  { %v4551_v33 = vpop.eup %4550 }
 0xecd   :  { %2029 = vrot.lane.b32.xlu1 %v4551_v33, %s4709_s12  ;;  %v4553_v40 = vpop.eup %4552 }
 0xece   :  { %v1687_v42 = vadd.f32 1.0, %v4553_v40  ;;  %v5321_v40 = vld [vmem:[%s5652_s2 + $0x18] sm:$0xff]  }
 0xed0   :  { %4554 = vrcp.f32 %v1687_v42 }
 0xed1   :  { %4556 = vpow2.f32 %v3713_v29  ;;  %v5330_v29 = vld [vmem:[%s5649_s3 + $0x20] sm:$0xff]  }
 0xed2   :  { %4558 = vpow2.f32 %v3716_v41  ;;  %v5336_v41 = vld [vmem:[%s5652_s2 + $0x20] sm:$0xff]  }
 0xed3   :  { %4560 = vpow2.f32 %v3719_v16  ;;  %v5377_v16 = vld [vmem:[%s5649_s3 + $0x38] sm:$0xff]  }
 0xeda   :  { %v4555_v46 = vpop.eup %4554 }
 0xedb   :  { %v4557_v63 = vpop.eup %4556  ;;  %v1691_v7 = vmul.f32 %v4555_v46, %v5162_v52 }
 0xedc   :  { %v1799_v17 = vadd.f32 1.0, %v4557_v63  ;;  %v4559_v11 = vpop.eup %4558 }
 0xedd   :  { %v1911_v20 = vadd.f32 1.0, %v4559_v11  ;;  %v4561_v47 = vpop.eup %4560  ;;  %v142_v11 = vadd.f32 %v5257_v15, %v4837_v36 }
 0xede   :  { %4562 = vrcp.f32 %v1799_v17  ;;  %v2023_v50 = vadd.f32 1.0, %v4561_v47 }
 0xedf   :  { %4564 = vrcp.f32 %v1911_v20 }
 0xee0   :  { %4566 = vrcp.f32 %v2023_v50 }
 0xee8   :  { %v4563_v48 = vpop.eup %4562 }
 0xee9   :  { %v4565_v51 = vpop.eup %4564  ;;  %v1803_v8 = vmul.f32 %v4563_v48, %v5167_v13 }
 0xeea   :  { %v4567_v56 = vpop.eup %4566  ;;  %v1915_v10 = vmul.f32 %v4565_v51, %v5171_v18 }
 0xeeb   :  { %v2027_v14 = vmul.f32 %v4567_v56, %v5176_v53 }
 0xf1d   :  { %v1694_v34 = vpop.permute.xlu0 %1693 }
 0xf1e   :  { %v1696_v44 = vmul.f32 %v4555_v46, %v1694_v34  ;;  %v5354_v34 = vld [vmem:[%s5652_s2 + $0x28] sm:$0xff]  }
 0xf20   :  { %1698 = vrot.lane.b32.xlu0 %v1696_v44, %s4709_s12  ;;  %v5364_v44 = vld [vmem:[%s5649_s3 + $0x30] sm:$0xff]  }
 0xf2f   :  { %v1806_v49 = vpop.permute.xlu1 %1805 }
 0xf30   :  { %v1808_v45 = vmul.f32 %v4563_v48, %v1806_v49 }
 0xf32   :  { %1810 = vrot.lane.b32.xlu1 %v1808_v45, %s4709_s12 }
 0xf37   :  { %v1918_v54 = vpop.permute.xlu0 %1917 }
 0xf38   :  { %v1920_v55 = vmul.f32 %v4565_v51, %v1918_v54 }
 0xf3a   :  { %1922 = vrot.lane.b32.xlu0 %v1920_v55, %s4709_s12 }
 0xf3f   :  { %v2030_v58 = vpop.permute.xlu1 %2029 }
 0xf40   :  { %v2032_v19 = vmul.f32 %v4567_v56, %v2030_v58 }
 0xf42   :  { %2034 = vrot.lane.b32.xlu1 %v2032_v19, %s4709_s12 }
 0xf92   :  { %v1699_v37 = vpop.permute.xlu0 %1698 }
 0xf93   :  { %v5278_v39 = vadd.f32 %v1699_v37, %v1691_v7 }
 0xf95   :  { %4568 = vtanh.f32 %v5278_v39 }
 0xf9f   :  { %v4569_v22 = vpop.eup %4568 }
 0xfa0   :  { %1704 = vrot.lane.b32.xlu0 %v4569_v22, %s4709_s12 }
 0xfa4   :  { %v1811_v3 = vpop.permute.xlu1 %1810 }
 0xfa5   :  { %v5283_v9 = vadd.f32 %v1811_v3, %v1803_v8 }
 0xfa7   :  { %4570 = vtanh.f32 %v5283_v9 }
 0xfac   :  { %v1923_v12 = vpop.permute.xlu0 %1922 }
 0xfad   :  { %v5287_v60 = vadd.f32 %v1923_v12, %v1915_v10 }
 0xfaf   :  { %4572 = vtanh.f32 %v5287_v60 }
 0xfb1   :  { %v4571_v52 = vpop.eup %4570 }
 0xfb2   :  { %1816 = vrot.lane.b32.xlu1 %v4571_v52, %s4709_s12 }
 0xfb4   :  { %v2035_v59 = vpop.permute.xlu1 %2034 }
 0xfb5   :  { %v5292_v21 = vadd.f32 %v2035_v59, %v2027_v14 }
 0xfb7   :  { %4574 = vtanh.f32 %v5292_v21 }
 0xfb9   :  { %v4573_v13 = vpop.eup %4572 }
 0xfba   :  { %1928 = vrot.lane.b32.xlu0 %v4573_v13, %s4709_s12 }
 0xfc1   :  { %v4575_v23 = vpop.eup %4574 }
 0xfc2   :  { %2040 = vrot.lane.b32.xlu1 %v4575_v23, %s4709_s12 }
0x1012   :  { %v1705_v18 = vpop.permute.xlu0 %1704 }
0x1013   :  { %v1707_v62 = vmul.f32 %v4555_v46, %v1705_v18  ;;  %v5348_v46 = vld [vmem:[%s5649_s3 + $0x28] sm:$0xff]   ;;  %v5397_v18 = vld [vmem:[%s5651_s4 + $0x2] ss:$0 sm:$0xff] }
0x1015   :  { %v1708_v24 = vpack.c.bf16 %v1707_v62, %v1707_v62 }
0x1017   :  { %2046 = vrot.lane.b32.xlu0 %v1708_v24, %s4710_s0 }
0x1024   :  { %v1817_v4 = vpop.permute.xlu1 %1816 }
0x1025   :  { %v1819_v2 = vmul.f32 %v4563_v48, %v1817_v4 }
0x1027   :  { %v1820_v25 = vpack.c.bf16 %v1819_v2, %v1819_v2 }
0x1029   :  { %2118 = vrot.lane.b32.xlu1 %v1820_v25, %s4710_s0 }
0x102c   :  { %v1929_v53 = vpop.permute.xlu0 %1928 }
0x102d   :  { %v1931_v26 = vmul.f32 %v4565_v51, %v1929_v53 }
0x102f   :  { %v1932_v27 = vpack.c.bf16 %v1931_v26, %v1931_v26 }
0x1031   :  { %2230 = vrot.lane.b32.xlu0 %v1932_v27, %s4710_s0 }
0x1034   :  { %v2041_v30 = vpop.permute.xlu1 %2040 }
0x1035   :  { %v2043_v57 = vmul.f32 %v4567_v56, %v2041_v30  ;;  %v5404_v30 = vld [vmem:[%s5651_s4 + $0x3] ss:$0 sm:$0xff] }
0x1037   :  { %v2044_v31 = vpack.c.bf16 %v2043_v57, %v2043_v57 }
0x1039   :  { %2342 = vrot.lane.b32.xlu1 %v2044_v31, %s4710_s0 }
0x1089   :  { %v2047_v33 = vpop.permute.xlu0 %2046 }
0x108a   :  { %4195 = vmatmul.mubr.msk.bf16.vlgmr.msra.gmra.mrb[64].mxu0 %vm217_vm2, %v2047_v33 }
0x108b   :  { %4207 = vmatpush3.bf16.msra.mxu0 %v5189_v6  ;;  %4210 = vmatprep.mubr.msk.bf16.mxu0 %vm4707_vm0, %v4706_v0 }
0x108c   :  { %4208 = vmatprep.subr.bf16.mxu0 %v4706_v0 }
0x108f   :  { %4209 = vmatpush3.bf16.msra.mxu0 %v5198_v5 }
0x1090   :  { %4222 = vmatprep.subr.bf16.mxu0 %v4706_v0 }
0x1092   :  { %4211 = vmatmul.mubr.msk.bf16.vlgmr.msra.gmra.mrb[68].mxu0 %vm217_vm2, %v2047_v33 }
0x1093   :  { %4223 = vmatpush3.bf16.msra.mxu0 %v5312_v1  ;;  %4226 = vmatprep.mubr.msk.bf16.mxu0 %vm4707_vm0, %v4706_v0 }
0x1094   :  { %4224 = vmatprep.subr.bf16.mxu0 %v4706_v0 }
0x1097   :  { %4225 = vmatpush3.bf16.msra.mxu0 %v5321_v40 }
0x1098   :  { %4238 = vmatprep.subr.bf16.mxu0 %v4706_v0 }
0x109b   :  { %v2119_v42 = vpop.permute.xlu1 %2118 }
0x109c   :  { %4203 = vmatmul.mubr.msk.bf16.vlgmr.msra.gmra.mrb[64].mxu1 %vm217_vm2, %v2119_v42  ;;  %4227 = vmatmul.mubr.msk.bf16.vlgmr.msra.gmra.mrb[72].mxu0 %vm217_vm2, %v2119_v42 }
0x109d   :  { %4215 = vmatpush3.bf16.msra.mxu1 %v5330_v29  ;;  %4239 = vmatpush3.bf16.msra.mxu0 %v5336_v41 }
0x109e   :  { %4216 = vmatprep.subr.bf16.mxu1 %v4706_v0  ;;  %4240 = vmatprep.subr.bf16.mxu0 %v4706_v0 }
0x109f   :  { %4218 = vmatprep.mubr.msk.bf16.mxu1 %vm4707_vm0, %v4706_v0  ;;  %4242 = vmatprep.mubr.msk.bf16.mxu0 %vm4707_vm0, %v4706_v0 }
0x10a1   :  { %4217 = vmatpush3.bf16.msra.mxu1 %v5348_v46  ;;  %4241 = vmatpush3.bf16.msra.mxu0 %v5354_v34 }
0x10a2   :  { %4230 = vmatprep.subr.bf16.mxu1 %v4706_v0  ;;  %4254 = vmatprep.subr.bf16.mxu0 %v4706_v0 }
0x10a3   :  { %v2231_v63 = vpop.permute.xlu0 %2230 }
0x10a4   :  { %4219 = vmatmul.mubr.msk.bf16.vlgmr.msra.gmra.mrb[68].mxu1 %vm217_vm2, %v2231_v63  ;;  %4243 = vmatmul.mubr.msk.bf16.vlgmr.msra.gmra.mrb[76].mxu0 %vm217_vm2, %v2231_v63 }
0x10a5   :  { %4231 = vmatpush3.bf16.msra.mxu1 %v5364_v44  ;;  %4234 = vmatprep.mubr.msk.bf16.mxu1 %vm4707_vm0, %v4706_v0 }
0x10a6   :  { %4232 = vmatprep.subr.bf16.mxu1 %v4706_v0  ;;  %4255 = vmatpush3.bf16.msra.mxu0 %v5232_v35 }
0x10a7   :  { %4256 = vmatprep.subr.bf16.mxu0 %v4706_v0  ;;  %4258 = vmatprep.mubr.msk.bf16.mxu0 %vm4707_vm0, %v4706_v0 }
0x10a9   :  { %4233 = vmatpush3.bf16.msra.mxu1 %v5377_v16 }
0x10aa   :  { %4246 = vmatprep.subr.bf16.mxu1 %v4706_v0  ;;  %4257 = vmatpush3.bf16.msra.mxu0 %v5243_v43 }
0x10ab   :  { %v2343_v17 = vpop.permute.xlu1 %2342  ;;  %4270 = vmatprep.subr.bf16.mxu0 %v4706_v0 }
0x10ac   :  { %4235 = vmatmul.mubr.msk.bf16.vlgmr.msra.gmra.mrb[72].mxu1 %vm217_vm2, %v2343_v17 }
0x10ad   :  { %4247 = vmatpush3.bf16.msra.mxu1 %v5135_v28  ;;  %4250 = vmatprep.mubr.msk.bf16.mxu1 %vm4707_vm0, %v4706_v0 }
0x10ae   :  { %4248 = vmatprep.subr.bf16.mxu1 %v4706_v0 }
0x10b1   :  { %4249 = vmatpush3.bf16.msra.mxu1 %v5144_v32 }
0x10b2   :  { %4262 = vmatprep.subr.bf16.mxu1 %v4706_v0 }
0x115d   :  { %v2085_v20 = vpop.f32.mrb[64].mxu0 }
0x115e   :  { %v2091_v47 = vadd.f32 %v2085_v20, %v142_v11  ;;  %v4196_v48 = vpop.f32.mrb[65].mxu0 }
0x115f   :  { %v2088_v49 = vpop.f32.mrb[66].mxu0 }
0x1160   :  { %4576 = vtanh.f32 %v2091_v47  ;;  %v4197_v45 = vpop.f32.mrb[67].mxu0  ;;  %v3721_v63 = vmul.f32 -1.442695, %v2091_v47 }
0x1165   :  { %v2197_v50 = vpop.f32.mrb[68].mxu0 }
0x1166   :  { %v4212_v28 = vpop.f32.mrb[69].mxu0 }
0x1167   :  { %v2200_v51 = vpop.f32.mrb[70].mxu0 }
0x1168   :  { %v4213_v54 = vpop.f32.mrb[71].mxu0 }
0x116a   :  { %v4577_v55 = vpop.eup %4576 }
0x116b   :  { %2101 = vrot.lane.b32.xlu0 %v4577_v55, %s4709_s12 }
0x116f   :  { %v2157_v56 = vpop.f32.mrb[64].mxu1  ;;  %v2309_v32 = vpop.f32.mrb[72].mxu0 }
0x1170   :  { %v2198_v58 = vadd.f32 %v2197_v50, %v2157_v56  ;;  %v4204_v19 = vpop.f32.mrb[65].mxu1  ;;  %v4228_v7 = vpop.f32.mrb[73].mxu0 }
0x1171   :  { %v2160_v37 = vpop.f32.mrb[66].mxu1  ;;  %v2312_v36 = vpop.f32.mrb[74].mxu0 }
0x1172   :  { %v2203_v22 = vadd.f32 %v5265_v61, %v2198_v58  ;;  %v4205_v8 = vpop.f32.mrb[67].mxu1  ;;  %v4229_v3 = vpop.f32.mrb[75].mxu0 }
0x1174   :  { %4578 = vtanh.f32 %v2203_v22  ;;  %v3724_v20 = vmul.f32 -1.442695, %v2203_v22 }
0x1177   :  { %v2269_v10 = vpop.f32.mrb[68].mxu1  ;;  %v2421_v12 = vpop.f32.mrb[76].mxu0 }
0x1178   :  { %v2310_v52 = vadd.f32 %v2309_v32, %v2269_v10  ;;  %v4220_v14 = vpop.f32.mrb[69].mxu1  ;;  %v4244_v59 = vpop.f32.mrb[77].mxu0 }
0x1179   :  { %v2272_v13 = vpop.f32.mrb[70].mxu1  ;;  %v2424_v23 = vpop.f32.mrb[78].mxu0 }
0x117a   :  { %v2315_v62 = vadd.f32 %v5397_v18, %v2310_v52  ;;  %v4221_v24 = vpop.f32.mrb[71].mxu1  ;;  %v4245_v4 = vpop.f32.mrb[79].mxu0 }
0x117c   :  { %4580 = vtanh.f32 %v2315_v62  ;;  %v3727_v48 = vmul.f32 -1.442695, %v2315_v62 }
0x117e   :  { %v4579_v2 = vpop.eup %4578 }
0x117f   :  { %2213 = vrot.lane.b32.xlu1 %v4579_v2, %s4709_s12  ;;  %v2381_v25 = vpop.f32.mrb[72].mxu1 }
0x1180   :  { %v2422_v53 = vadd.f32 %v2421_v12, %v2381_v25  ;;  %v4236_v26 = vpop.f32.mrb[73].mxu1 }
0x1181   :  { %v2384_v27 = vpop.f32.mrb[74].mxu1 }
0x1182   :  { %v2427_v57 = vadd.f32 %v5404_v30, %v2422_v53  ;;  %v4237_v31 = vpop.f32.mrb[75].mxu1 }
0x1184   :  { %4582 = vtanh.f32 %v2427_v57  ;;  %v3730_v51 = vmul.f32 -1.442695, %v2427_v57 }
0x1185   :  { %4584 = vpow2.f32 %v3721_v63 }
0x1186   :  { %v4581_v33 = vpop.eup %4580 }
0x1187   :  { %2325 = vrot.lane.b32.xlu0 %v4581_v33, %s4709_s12 }
0x118e   :  { %v4583_v42 = vpop.eup %4582 }
0x118f   :  { %2437 = vrot.lane.b32.xlu1 %v4583_v42, %s4709_s12  ;;  %v4585_v17 = vpop.eup %4584 }
0x1190   :  { %v2095_v11 = vadd.f32 1.0, %v4585_v17 }
0x1192   :  { %4586 = vrcp.f32 %v2095_v11 }
0x1193   :  { %4588 = vpow2.f32 %v3724_v20 }
0x1194   :  { %4590 = vpow2.f32 %v3727_v48 }
0x1195   :  { %4592 = vpow2.f32 %v3730_v51 }
0x119c   :  { %v4587_v49 = vpop.eup %4586 }
0x119d   :  { %v4589_v28 = vpop.eup %4588  ;;  %v2099_v12 = vmul.f32 %v4587_v49, %v5278_v39 }
0x119e   :  { %v2207_v54 = vadd.f32 1.0, %v4589_v28  ;;  %v4591_v55 = vpop.eup %4590 }
0x119f   :  { %v2319_v47 = vadd.f32 1.0, %v4591_v55  ;;  %v4593_v56 = vpop.eup %4592 }
0x11a0   :  { %4594 = vrcp.f32 %v2207_v54  ;;  %v2431_v7 = vadd.f32 1.0, %v4593_v56 }
0x11a1   :  { %4596 = vrcp.f32 %v2319_v47 }
0x11a2   :  { %4598 = vrcp.f32 %v2431_v7 }
0x11aa   :  { %v4595_v32 = vpop.eup %4594 }
0x11ab   :  { %v4597_v37 = vpop.eup %4596  ;;  %v2211_v13 = vmul.f32 %v4595_v32, %v5283_v9 }
0x11ac   :  { %v4599_v8 = vpop.eup %4598  ;;  %v2323_v24 = vmul.f32 %v4597_v37, %v5287_v60 }
0x11ad   :  { %v2435_v25 = vmul.f32 %v4599_v8, %v5292_v21 }
0x11dd   :  { %v2102_v45 = vpop.permute.xlu0 %2101 }
0x11de   :  { %v2104_v50 = vmul.f32 %v4587_v49, %v2102_v45 }
0x11e0   :  { %2106 = vrot.lane.b32.xlu0 %v2104_v50, %s4709_s12 }
0x11f1   :  { %v2214_v58 = vpop.permute.xlu1 %2213 }
0x11f2   :  { %v2216_v19 = vmul.f32 %v4595_v32, %v2214_v58 }
0x11f4   :  { %2218 = vrot.lane.b32.xlu1 %v2216_v19, %s4709_s12 }
0x11f9   :  { %v2326_v36 = vpop.permute.xlu0 %2325 }
0x11fa   :  { %v2328_v22 = vmul.f32 %v4597_v37, %v2326_v36 }
0x11fc   :  { %2330 = vrot.lane.b32.xlu0 %v2328_v22, %s4709_s12 }
0x1201   :  { %v2438_v3 = vpop.permute.xlu1 %2437 }
0x1202   :  { %v2440_v10 = vmul.f32 %v4599_v8, %v2438_v3 }
0x1204   :  { %2442 = vrot.lane.b32.xlu1 %v2440_v10, %s4709_s12 }
0x1252   :  { %v2107_v52 = vpop.permute.xlu0 %2106 }
0x1253   :  { %v5414_v14 = vadd.f32 %v2107_v52, %v2099_v12 }
0x1255   :  { %4600 = vtanh.f32 %v5414_v14 }
0x125f   :  { %v4601_v59 = vpop.eup %4600 }
0x1260   :  { %2112 = vrot.lane.b32.xlu0 %v4601_v59, %s4709_s12 }
0x1266   :  { %v2219_v23 = vpop.permute.xlu1 %2218 }
0x1267   :  { %v5419_v62 = vadd.f32 %v2219_v23, %v2211_v13 }
0x1269   :  { %4602 = vtanh.f32 %v5419_v62 }
0x126e   :  { %v2331_v4 = vpop.permute.xlu0 %2330 }
0x126f   :  { %v5423_v2 = vadd.f32 %v2331_v4, %v2323_v24 }
0x1271   :  { %4604 = vtanh.f32 %v5423_v2 }
0x1273   :  { %v4603_v39 = vpop.eup %4602 }
0x1274   :  { %2224 = vrot.lane.b32.xlu1 %v4603_v39, %s4709_s12 }
0x1276   :  { %v2443_v53 = vpop.permute.xlu1 %2442 }
0x1277   :  { %v5428_v26 = vadd.f32 %v2443_v53, %v2435_v25 }
0x1279   :  { %4606 = vtanh.f32 %v5428_v26 }
0x127b   :  { %v4605_v9 = vpop.eup %4604 }
0x127c   :  { %2336 = vrot.lane.b32.xlu0 %v4605_v9, %s4709_s12 }
0x1283   :  { %v4607_v27 = vpop.eup %4606 }
0x1284   :  { %2448 = vrot.lane.b32.xlu1 %v4607_v27, %s4709_s12 }
0x12d2   :  { %v2113_v60 = vpop.permute.xlu0 %2112 }
0x12d3   :  { %v2115_v57 = vmul.f32 %v4587_v49, %v2113_v60 }
0x12d5   :  { %v2116_v31 = vpack.c.bf16 %v2115_v57, %v2115_v57 }
0x12d7   :  { %2454 = vrot.lane.b32.xlu0 %v2116_v31, %s4710_s0 }
0x12e6   :  { %v2225_v33 = vpop.permute.xlu1 %2224 }
0x12e7   :  { %v2227_v42 = vmul.f32 %v4595_v32, %v2225_v33 }
0x12e9   :  { %v2228_v63 = vpack.c.bf16 %v2227_v42, %v2227_v42 }
0x12eb   :  { %2526 = vrot.lane.b32.xlu1 %v2228_v63, %s4710_s0 }
0x12ee   :  { %v2337_v21 = vpop.permute.xlu0 %2336 }
0x12ef   :  { %v2339_v17 = vmul.f32 %v4597_v37, %v2337_v21 }
0x12f1   :  { %v2340_v11 = vpack.c.bf16 %v2339_v17, %v2339_v17 }
0x12f3   :  { %2638 = vrot.lane.b32.xlu0 %v2340_v11, %s4710_s0 }
0x12f6   :  { %v2449_v20 = vpop.permute.xlu1 %2448 }
0x12f7   :  { %v2451_v48 = vmul.f32 %v4599_v8, %v2449_v20 }
0x12f9   :  { %v2452_v45 = vpack.c.bf16 %v2451_v48, %v2451_v48 }
0x12fb   :  { %2750 = vrot.lane.b32.xlu1 %v2452_v45, %s4710_s0 }
0x1349   :  { %v2455_v50 = vpop.permute.xlu0 %2454 }
0x134a   :  { %4251 = vmatmul.mubr.msk.bf16.vlgmr.msra.gmra.mrb[76].mxu1 %vm217_vm2, %v2455_v50 }
0x134b   :  { %4263 = vmatpush3.bf16.msra.mxu1 %v5189_v6  ;;  %4266 = vmatprep.mubr.msk.bf16.mxu1 %vm4707_vm0, %v4706_v0 }
0x134c   :  { %4264 = vmatprep.subr.bf16.mxu1 %v4706_v0 }
0x134f   :  { %4265 = vmatpush3.bf16.msra.mxu1 %v5198_v5 }
0x1350   :  { %4278 = vmatprep.subr.bf16.mxu1 %v4706_v0 }
0x1352   :  { %4267 = vmatmul.mubr.msk.bf16.vlgmr.msra.gmra.mrb[80].mxu1 %vm217_vm2, %v2455_v50 }
0x1353   :  { %4279 = vmatpush3.bf16.msra.mxu1 %v5312_v1  ;;  %4282 = vmatprep.mubr.msk.bf16.mxu1 %vm4707_vm0, %v4706_v0 }
0x1354   :  { %4280 = vmatprep.subr.bf16.mxu1 %v4706_v0 }
0x1357   :  { %4281 = vmatpush3.bf16.msra.mxu1 %v5321_v40 }
0x1358   :  { %4294 = vmatprep.subr.bf16.mxu1 %v4706_v0 }
0x135d   :  { %v2527_v49 = vpop.permute.xlu1 %2526 }
0x135e   :  { %4259 = vmatmul.mubr.msk.bf16.vlgmr.msra.gmra.mrb[80].mxu0 %vm217_vm2, %v2527_v49  ;;  %4283 = vmatmul.mubr.msk.bf16.vlgmr.msra.gmra.mrb[84].mxu1 %vm217_vm2, %v2527_v49 }
0x135f   :  { %4271 = vmatpush3.bf16.msra.mxu0 %v5330_v29  ;;  %4295 = vmatpush3.bf16.msra.mxu1 %v5336_v41 }
0x1360   :  { %4272 = vmatprep.subr.bf16.mxu0 %v4706_v0  ;;  %4296 = vmatprep.subr.bf16.mxu1 %v4706_v0 }
0x1361   :  { %4274 = vmatprep.mubr.msk.bf16.mxu0 %vm4707_vm0, %v4706_v0  ;;  %4298 = vmatprep.mubr.msk.bf16.mxu1 %vm4707_vm0, %v4706_v0 }
0x1363   :  { %4273 = vmatpush3.bf16.msra.mxu0 %v5348_v46  ;;  %4297 = vmatpush3.bf16.msra.mxu1 %v5354_v34 }
0x1364   :  { %4286 = vmatprep.subr.bf16.mxu0 %v4706_v0  ;;  %4310 = vmatprep.subr.bf16.mxu1 %v4706_v0 }
0x1365   :  { %v2639_v28 = vpop.permute.xlu0 %2638 }
0x1366   :  { %4275 = vmatmul.mubr.msk.bf16.vlgmr.msra.gmra.mrb[84].mxu0 %vm217_vm2, %v2639_v28  ;;  %4299 = vmatmul.mubr.msk.bf16.vlgmr.msra.gmra.mrb[88].mxu1 %vm217_vm2, %v2639_v28 }
0x1367   :  { %4287 = vmatpush3.bf16.msra.mxu0 %v5364_v44  ;;  %4290 = vmatprep.mubr.msk.bf16.mxu0 %vm4707_vm0, %v4706_v0 }
0x1368   :  { %4288 = vmatprep.subr.bf16.mxu0 %v4706_v0  ;;  %4311 = vmatpush3.bf16.msra.mxu1 %v5189_v6  ;;  %v145_v6 = vadd.f32 %v5257_v15, %v4841_v38 }
0x1369   :  { %4312 = vmatprep.subr.bf16.mxu1 %v4706_v0  ;;  %4314 = vmatprep.mubr.msk.bf16.mxu1 %vm4707_vm0, %v4706_v0 }
0x136b   :  { %4289 = vmatpush3.bf16.msra.mxu0 %v5377_v16 }
0x136c   :  { %4313 = vmatpush3.bf16.msra.mxu1 %v5198_v5  ;;  %4302 = vmatprep.subr.bf16.mxu0 %v4706_v0 }
0x136d   :  { %v2751_v51 = vpop.permute.xlu1 %2750  ;;  %4326 = vmatprep.subr.bf16.mxu1 %v4706_v0 }
0x136e   :  { %4291 = vmatmul.mubr.msk.bf16.vlgmr.msra.gmra.mrb[88].mxu0 %vm217_vm2, %v2751_v51 }
0x136f   :  { %4303 = vmatpush3.bf16.msra.mxu0 %v5232_v35  ;;  %4306 = vmatprep.mubr.msk.bf16.mxu0 %vm4707_vm0, %v4706_v0 }
0x1370   :  { %4304 = vmatprep.subr.bf16.mxu0 %v4706_v0 }
0x1373   :  { %4305 = vmatpush3.bf16.msra.mxu0 %v5243_v43 }
0x1374   :  { %4318 = vmatprep.subr.bf16.mxu0 %v4706_v0 }
0x141d   :  { %v2493_v5 = vpop.f32.mrb[76].mxu1 }
0x141e   :  { %v2499_v54 = vadd.f32 %v2493_v5, %v145_v6  ;;  %v4252_v55 = vpop.f32.mrb[77].mxu1 }
0x141f   :  { %v2496_v47 = vpop.f32.mrb[78].mxu1 }
0x1420   :  { %4608 = vtanh.f32 %v2499_v54  ;;  %v4253_v56 = vpop.f32.mrb[79].mxu1  ;;  %v3732_v11 = vmul.f32 -1.442695, %v2499_v54 }
0x1425   :  { %v2605_v32 = vpop.f32.mrb[80].mxu1 }
0x1426   :  { %v4268_v35 = vpop.f32.mrb[81].mxu1 }
0x1427   :  { %v2608_v58 = vpop.f32.mrb[82].mxu1 }
0x1428   :  { %v4269_v19 = vpop.f32.mrb[83].mxu1 }
0x142a   :  { %v4609_v7 = vpop.eup %4608 }
0x142b   :  { %2509 = vrot.lane.b32.xlu0 %v4609_v7, %s4709_s12 }
0x1431   :  { %v2565_v37 = vpop.f32.mrb[80].mxu0  ;;  %v2717_v43 = vpop.f32.mrb[84].mxu1 }
0x1432   :  { %v2606_v36 = vadd.f32 %v2605_v32, %v2565_v37  ;;  %v4260_v22 = vpop.f32.mrb[81].mxu0  ;;  %v4284_v8 = vpop.f32.mrb[85].mxu1 }
0x1433   :  { %v2568_v3 = vpop.f32.mrb[82].mxu0  ;;  %v2720_v38 = vpop.f32.mrb[86].mxu1 }
0x1434   :  { %v2611_v15 = vadd.f32 %v5265_v61, %v2606_v36  ;;  %v4261_v10 = vpop.f32.mrb[83].mxu0  ;;  %v4285_v12 = vpop.f32.mrb[87].mxu1 }
0x1436   :  { %4610 = vtanh.f32 %v2611_v15  ;;  %v3735_v45 = vmul.f32 -1.442695, %v2611_v15 }
0x1439   :  { %v2677_v52 = vpop.f32.mrb[84].mxu0  ;;  %v2829_v59 = vpop.f32.mrb[88].mxu1 }
0x143a   :  { %v2718_v13 = vadd.f32 %v2717_v43, %v2677_v52  ;;  %v4276_v23 = vpop.f32.mrb[85].mxu0  ;;  %v4300_v24 = vpop.f32.mrb[89].mxu1 }
0x143b   :  { %v2680_v4 = vpop.f32.mrb[86].mxu0  ;;  %v2832_v39 = vpop.f32.mrb[90].mxu1 }
0x143c   :  { %v2723_v25 = vadd.f32 %v5397_v18, %v2718_v13  ;;  %v4277_v53 = vpop.f32.mrb[87].mxu0  ;;  %v4301_v9 = vpop.f32.mrb[91].mxu1 }
0x143e   :  { %4612 = vtanh.f32 %v2723_v25  ;;  %v3738_v50 = vmul.f32 -1.442695, %v2723_v25 }
0x1440   :  { %v4611_v27 = vpop.eup %4610 }
0x1441   :  { %v2789_v60 = vpop.f32.mrb[88].mxu0  ;;  %2621 = vrot.lane.b32.xlu1 %v4611_v27, %s4709_s12 }
0x1442   :  { %v2830_v57 = vadd.f32 %v2829_v59, %v2789_v60  ;;  %v4292_v31 = vpop.f32.mrb[89].mxu0 }
0x1443   :  { %v2792_v33 = vpop.f32.mrb[90].mxu0 }
0x1444   :  { %v2835_v42 = vadd.f32 %v5404_v30, %v2830_v57  ;;  %v4293_v63 = vpop.f32.mrb[91].mxu0 }
0x1446   :  { %4614 = vtanh.f32 %v2835_v42  ;;  %v3741_v5 = vmul.f32 -1.442695, %v2835_v42 }
0x1447   :  { %4616 = vpow2.f32 %v3732_v11 }
0x1448   :  { %v4613_v21 = vpop.eup %4612 }
0x1449   :  { %2733 = vrot.lane.b32.xlu0 %v4613_v21, %s4709_s12 }
0x1450   :  { %v4615_v17 = vpop.eup %4614 }
0x1451   :  { %2845 = vrot.lane.b32.xlu1 %v4615_v17, %s4709_s12  ;;  %v4617_v20 = vpop.eup %4616 }
0x1452   :  { %v2503_v48 = vadd.f32 1.0, %v4617_v20 }
0x1454   :  { %4618 = vrcp.f32 %v2503_v48 }
0x1455   :  { %4620 = vpow2.f32 %v3735_v45 }
0x1456   :  { %4622 = vpow2.f32 %v3738_v50 }
0x1457   :  { %4624 = vpow2.f32 %v3741_v5 }
0x145e   :  { %v4619_v49 = vpop.eup %4618 }
0x145f   :  { %v4621_v6 = vpop.eup %4620  ;;  %v2507_v3 = vmul.f32 %v4619_v49, %v5414_v14 }
0x1460   :  { %v2615_v55 = vadd.f32 1.0, %v4621_v6  ;;  %v4623_v47 = vpop.eup %4622 }
0x1461   :  { %v2727_v54 = vadd.f32 1.0, %v4623_v47  ;;  %v4625_v56 = vpop.eup %4624 }
0x1462   :  { %4626 = vrcp.f32 %v2615_v55  ;;  %v2839_v19 = vadd.f32 1.0, %v4625_v56 }
0x1463   :  { %4628 = vrcp.f32 %v2727_v54 }
0x1464   :  { %4630 = vrcp.f32 %v2839_v19 }
0x146c   :  { %v4627_v32 = vpop.eup %4626 }
0x146d   :  { %v4629_v7 = vpop.eup %4628  ;;  %v2619_v12 = vmul.f32 %v4627_v32, %v5419_v62 }
0x146e   :  { %v4631_v36 = vpop.eup %4630  ;;  %v2731_v13 = vmul.f32 %v4629_v7, %v5423_v2 }
0x146f   :  { %v2843_v4 = vmul.f32 %v4631_v36, %v5428_v26 }
0x149d   :  { %v2510_v28 = vpop.permute.xlu0 %2509 }
0x149e   :  { %v2512_v51 = vmul.f32 %v4619_v49, %v2510_v28 }
0x14a0   :  { %2514 = vrot.lane.b32.xlu0 %v2512_v51, %s4709_s12 }
0x14b3   :  { %v2622_v35 = vpop.permute.xlu1 %2621 }
0x14b4   :  { %v2624_v58 = vmul.f32 %v4627_v32, %v2622_v35 }
0x14b6   :  { %2626 = vrot.lane.b32.xlu1 %v2624_v58, %s4709_s12 }
0x14bb   :  { %v2734_v37 = vpop.permute.xlu0 %2733 }
0x14bc   :  { %v2736_v43 = vmul.f32 %v4629_v7, %v2734_v37 }
0x14be   :  { %2738 = vrot.lane.b32.xlu0 %v2736_v43, %s4709_s12 }
0x14c3   :  { %v2846_v22 = vpop.permute.xlu1 %2845 }
0x14c4   :  { %v2848_v8 = vmul.f32 %v4631_v36, %v2846_v22 }
0x14c6   :  { %2850 = vrot.lane.b32.xlu1 %v2848_v8, %s4709_s12 }
0x1512   :  { %v2515_v38 = vpop.permute.xlu0 %2514 }
0x1513   :  { %v2517_v15 = vadd.f32 %v2515_v38, %v2507_v3 }
0x1515   :  { %4632 = vtanh.f32 %v2517_v15 }
0x151f   :  { %v4633_v10 = vpop.eup %4632 }
0x1520   :  { %2520 = vrot.lane.b32.xlu0 %v4633_v10, %s4709_s12 }
0x1528   :  { %v2627_v52 = vpop.permute.xlu1 %2626 }
0x1529   :  { %v5502_v59 = vadd.f32 %v2627_v52, %v2619_v12 }
0x152b   :  { %4634 = vtanh.f32 %v5502_v59 }
0x1530   :  { %v2739_v23 = vpop.permute.xlu0 %2738 }
0x1531   :  { %v5506_v24 = vadd.f32 %v2739_v23, %v2731_v13 }
0x1533   :  { %4636 = vtanh.f32 %v5506_v24 }
0x1535   :  { %v4635_v14 = vpop.eup %4634 }
0x1536   :  { %2632 = vrot.lane.b32.xlu1 %v4635_v14, %s4709_s12 }
0x1538   :  { %v2851_v39 = vpop.permute.xlu1 %2850 }
0x1539   :  { %v5511_v25 = vadd.f32 %v2851_v39, %v2843_v4 }
0x153b   :  { %4638 = vtanh.f32 %v5511_v25 }
0x153d   :  { %v4637_v62 = vpop.eup %4636 }
0x153e   :  { %2744 = vrot.lane.b32.xlu0 %v4637_v62, %s4709_s12 }
0x1545   :  { %v4639_v53 = vpop.eup %4638 }
0x1546   :  { %2856 = vrot.lane.b32.xlu1 %v4639_v53, %s4709_s12 }
0x1592   :  { %v2521_v2 = vpop.permute.xlu0 %2520 }
0x1593   :  { %v2523_v9 = vmul.f32 %v4619_v49, %v2521_v2 }
0x1595   :  { %v2524_v27 = vpack.c.bf16 %v2523_v9, %v2523_v9 }
0x1597   :  { %2908 = vrot.lane.b32.xlu1 %v2524_v27, %s4710_s0 }
0x15a8   :  { %v2633_v60 = vpop.permute.xlu1 %2632 }
0x15a9   :  { %v2635_v57 = vmul.f32 %v4627_v32, %v2633_v60 }
0x15ab   :  { %v2636_v31 = vpack.c.bf16 %v2635_v57, %v2635_v57 }
0x15ad   :  { %2862 = vrot.lane.b32.xlu0 %v2636_v31, %s4710_s0 }
0x15b0   :  { %v2745_v26 = vpop.permute.xlu0 %2744 }
0x15b1   :  { %v2747_v33 = vmul.f32 %v4629_v7, %v2745_v26 }
0x15b3   :  { %v2748_v42 = vpack.c.bf16 %v2747_v33, %v2747_v33 }
0x15b5   :  { %2980 = vrot.lane.b32.xlu0 %v2748_v42, %s4710_s0 }
0x15b8   :  { %v2857_v63 = vpop.permute.xlu1 %2856 }
0x15b9   :  { %v2859_v21 = vmul.f32 %v4631_v36, %v2857_v63 }
0x15bb   :  { %v2860_v17 = vpack.c.bf16 %v2859_v21, %v2859_v21 }
0x15bd   :  { %3092 = vrot.lane.b32.xlu1 %v2860_v17, %s4710_s0 }
0x1609   :  { %v2909_v11 = vpop.permute.xlu1 %2908 }
0x160a   :  { %4315 = vmatmul.mubr.msk.bf16.vlgmr.msra.gmra.mrb[92].mxu1 %vm217_vm2, %v2909_v11 }
0x160b   :  { %4327 = vmatpush3.bf16.msra.mxu1 %v5312_v1  ;;  %4330 = vmatprep.mubr.msk.bf16.mxu1 %vm4707_vm0, %v4706_v0 }
0x160c   :  { %4328 = vmatprep.subr.bf16.mxu1 %v4706_v0 }
0x160f   :  { %4329 = vmatpush3.bf16.msra.mxu1 %v5321_v40 }
0x1610   :  { %4342 = vmatprep.subr.bf16.mxu1 %v4706_v0 }
0x161f   :  { %v2863_v20 = vpop.permute.xlu0 %2862 }
0x1620   :  { %4307 = vmatmul.mubr.msk.bf16.vlgmr.msra.gmra.mrb[92].mxu0 %vm217_vm2, %v2863_v20  ;;  %4331 = vmatmul.mubr.msk.bf16.vlgmr.msra.gmra.mrb[96].mxu1 %vm217_vm2, %v2863_v20 }
0x1621   :  { %4319 = vmatpush3.bf16.msra.mxu0 %v5330_v29  ;;  %4343 = vmatpush3.bf16.msra.mxu1 %v5336_v41 }
0x1622   :  { %4320 = vmatprep.subr.bf16.mxu0 %v4706_v0  ;;  %4344 = vmatprep.subr.bf16.mxu1 %v4706_v0 }
0x1623   :  { %4322 = vmatprep.mubr.msk.bf16.mxu0 %vm4707_vm0, %v4706_v0  ;;  %4346 = vmatprep.mubr.msk.bf16.mxu1 %vm4707_vm0, %v4706_v0 }
0x1625   :  { %4321 = vmatpush3.bf16.msra.mxu0 %v5348_v46  ;;  %4345 = vmatpush3.bf16.msra.mxu1 %v5354_v34 }
0x1626   :  { %4334 = vmatprep.subr.bf16.mxu0 %v4706_v0  ;;  %4358 = vmatprep.subr.bf16.mxu1 %v4706_v0 }
0x1627   :  { %v2981_v48 = vpop.permute.xlu0 %2980 }
0x1628   :  { %4323 = vmatmul.mubr.msk.bf16.vlgmr.msra.gmra.mrb[96].mxu0 %vm217_vm2, %v2981_v48  ;;  %4347 = vmatmul.mubr.msk.bf16.vlgmr.msra.gmra.mrb[100].mxu1 %vm217_vm2, %v2981_v48 }
0x1629   :  { %4335 = vmatpush3.bf16.msra.mxu0 %v5364_v44  ;;  %4338 = vmatprep.mubr.msk.bf16.mxu0 %vm4707_vm0, %v4706_v0 }
0x162a   :  { %4336 = vmatprep.subr.bf16.mxu0 %v4706_v0  ;;  %4359 = vmatpush3.bf16.msra.mxu1 %v5312_v1 }
0x162b   :  { %4360 = vmatprep.subr.bf16.mxu1 %v4706_v0  ;;  %4362 = vmatprep.mubr.msk.bf16.mxu1 %vm4707_vm0, %v4706_v0 }
0x162d   :  { %4337 = vmatpush3.bf16.msra.mxu0 %v5377_v16 }
0x162e   :  { %4361 = vmatpush3.bf16.msra.mxu1 %v5321_v40  ;;  %4350 = vmatprep.subr.bf16.mxu0 %v4706_v0 }
0x162f   :  { %v3093_v45 = vpop.permute.xlu1 %3092  ;;  %4374 = vmatprep.subr.bf16.mxu1 %v4706_v0 }
0x1630   :  { %4339 = vmatmul.mubr.msk.bf16.vlgmr.msra.gmra.mrb[100].mxu0 %vm217_vm2, %v3093_v45 }
0x1631   :  { %4351 = vmatpush3.bf16.msra.mxu0 %v5330_v29  ;;  %4354 = vmatprep.mubr.msk.bf16.mxu0 %vm4707_vm0, %v4706_v0 }
0x1632   :  { %4352 = vmatprep.subr.bf16.mxu0 %v4706_v0 }
0x1635   :  { %4353 = vmatpush3.bf16.msra.mxu0 %v5348_v46 }
0x1636   :  { %4366 = vmatprep.subr.bf16.mxu0 %v4706_v0 }
0x16dd   :  { %v2947_v1 = vpop.f32.mrb[92].mxu1 }
0x16de   :  { %v4316_v40 = vpop.f32.mrb[93].mxu1 }
0x16df   :  { %v2950_v50 = vpop.f32.mrb[94].mxu1 }
0x16e0   :  { %v4317_v49 = vpop.f32.mrb[95].mxu1 }
0x16f3   :  { %v2901_v28 = vpop.f32.mrb[92].mxu0  ;;  %v3059_v51 = vpop.f32.mrb[96].mxu1 }
0x16f4   :  { %v2948_v6 = vadd.f32 %v2947_v1, %v2901_v28  ;;  %v4308_v5 = vpop.f32.mrb[93].mxu0  ;;  %v4332_v55 = vpop.f32.mrb[97].mxu1 }
0x16f5   :  { %v2904_v47 = vpop.f32.mrb[94].mxu0  ;;  %v3062_v29 = vpop.f32.mrb[98].mxu1 }
0x16f6   :  { %v2953_v54 = vadd.f32 %v5265_v61, %v2948_v6  ;;  %v4309_v56 = vpop.f32.mrb[95].mxu0  ;;  %v4333_v32 = vpop.f32.mrb[99].mxu1 }
0x16f8   :  { %4640 = vtanh.f32 %v2953_v54  ;;  %v3744_v14 = vmul.f32 -1.442695, %v2953_v54 }
0x16fb   :  { %v3019_v35 = vpop.f32.mrb[96].mxu0  ;;  %v3171_v46 = vpop.f32.mrb[100].mxu1 }
0x16fc   :  { %v3060_v58 = vadd.f32 %v3059_v51, %v3019_v35  ;;  %v4324_v19 = vpop.f32.mrb[97].mxu0  ;;  %v4348_v7 = vpop.f32.mrb[101].mxu1 }
0x16fd   :  { %v3022_v37 = vpop.f32.mrb[98].mxu0  ;;  %v3174_v43 = vpop.f32.mrb[102].mxu1 }
0x16fe   :  { %v3065_v36 = vadd.f32 %v5397_v18, %v3060_v58  ;;  %v4325_v22 = vpop.f32.mrb[99].mxu0  ;;  %v4349_v8 = vpop.f32.mrb[103].mxu1 }
0x1700   :  { %4642 = vtanh.f32 %v3065_v36  ;;  %v3747_v4 = vmul.f32 -1.442695, %v3065_v36 }
0x1702   :  { %v4641_v3 = vpop.eup %4640 }
0x1703   :  { %v3131_v38 = vpop.f32.mrb[100].mxu0  ;;  %2963 = vrot.lane.b32.xlu0 %v4641_v3, %s4709_s12 }
0x1704   :  { %v3172_v61 = vadd.f32 %v3171_v46, %v3131_v38  ;;  %v4340_v15 = vpop.f32.mrb[101].mxu0 }
0x1705   :  { %v3134_v10 = vpop.f32.mrb[102].mxu0 }
0x1706   :  { %v3177_v12 = vadd.f32 %v5404_v30, %v3172_v61  ;;  %v4341_v52 = vpop.f32.mrb[103].mxu0 }
0x1708   :  { %4644 = vtanh.f32 %v3177_v12  ;;  %v3750_v62 = vmul.f32 -1.442695, %v3177_v12 }
0x1709   :  { %4646 = vpow2.f32 %v3744_v14 }
0x170a   :  { %v4643_v13 = vpop.eup %4642  ;;  %4648 = vpow2.f32 %v3747_v4 }
0x170b   :  { %3075 = vrot.lane.b32.xlu1 %v4643_v13, %s4709_s12  ;;  %4650 = vpow2.f32 %v3750_v62 }
0x1712   :  { %v4645_v23 = vpop.eup %4644 }
0x1713   :  { %3187 = vrot.lane.b32.xlu0 %v4645_v23, %s4709_s12  ;;  %v4647_v39 = vpop.eup %4646 }
0x1714   :  { %v2957_v53 = vadd.f32 1.0, %v4647_v39  ;;  %v4649_v2 = vpop.eup %4648 }
0x1715   :  { %v3069_v9 = vadd.f32 1.0, %v4649_v2  ;;  %v4651_v27 = vpop.eup %4650 }
0x1716   :  { %4652 = vrcp.f32 %v2957_v53  ;;  %v3181_v26 = vadd.f32 1.0, %v4651_v27 }
0x1717   :  { %4654 = vrcp.f32 %v3069_v9 }
0x1718   :  { %4656 = vrcp.f32 %v3181_v26 }
0x1720   :  { %v4653_v60 = vpop.eup %4652 }
0x1721   :  { %v4655_v33 = vpop.eup %4654  ;;  %v2961_v20 = vmul.f32 %v4653_v60, %v5502_v59 }
0x1722   :  { %v4657_v21 = vpop.eup %4656  ;;  %v3073_v1 = vmul.f32 %v4655_v33, %v5506_v24 }
0x1723   :  { %v3185_v28 = vmul.f32 %v4657_v21, %v5511_v25 }
0x1775   :  { %v2964_v57 = vpop.permute.xlu0 %2963 }
0x1776   :  { %v2966_v31 = vmul.f32 %v4653_v60, %v2964_v57 }
0x1778   :  { %2968 = vrot.lane.b32.xlu1 %v2966_v31, %s4709_s12 }
0x177d   :  { %v3076_v42 = vpop.permute.xlu1 %3075 }
0x177e   :  { %v3078_v63 = vmul.f32 %v4655_v33, %v3076_v42 }
0x1780   :  { %3080 = vrot.lane.b32.xlu0 %v3078_v63, %s4709_s12 }
0x1785   :  { %v3188_v17 = vpop.permute.xlu0 %3187 }
0x1786   :  { %v3190_v11 = vmul.f32 %v4657_v21, %v3188_v17 }
0x1788   :  { %3192 = vrot.lane.b32.xlu1 %v3190_v11, %s4709_s12 }
0x17ea   :  { %v2969_v48 = vpop.permute.xlu1 %2968 }
0x17eb   :  { %v2971_v45 = vadd.f32 %v2969_v48, %v2961_v20 }
0x17ed   :  { %4658 = vtanh.f32 %v2971_v45 }
0x17f2   :  { %v3081_v40 = vpop.permute.xlu0 %3080 }
0x17f3   :  { %v5573_v50 = vadd.f32 %v3081_v40, %v3073_v1 }
0x17f5   :  { %4660 = vtanh.f32 %v5573_v50 }
0x17f7   :  { %v4659_v49 = vpop.eup %4658 }
0x17f8   :  { %2974 = vrot.lane.b32.xlu0 %v4659_v49, %s4709_s12 }
0x17fa   :  { %v3193_v51 = vpop.permute.xlu1 %3192 }
0x17fb   :  { %v5578_v6 = vadd.f32 %v3193_v51, %v3185_v28 }
0x17fd   :  { %4662 = vtanh.f32 %v5578_v6 }
0x17ff   :  { %v4661_v59 = vpop.eup %4660 }
0x1800   :  { %3086 = vrot.lane.b32.xlu1 %v4661_v59, %s4709_s12 }
0x1807   :  { %v4663_v5 = vpop.eup %4662 }
0x1808   :  { %3198 = vrot.lane.b32.xlu0 %v4663_v5, %s4709_s12 }
0x186a   :  { %v2975_v24 = vpop.permute.xlu0 %2974 }
0x186b   :  { %v2977_v55 = vmul.f32 %v4653_v60, %v2975_v24 }
0x186d   :  { %v2978_v47 = vpack.c.bf16 %v2977_v55, %v2977_v55 }
0x186f   :  { %3250 = vrot.lane.b32.xlu0 %v2978_v47, %s4710_s0 }
0x1872   :  { %v3087_v29 = vpop.permute.xlu1 %3086 }
0x1873   :  { %v3089_v54 = vmul.f32 %v4655_v33, %v3087_v29 }
0x1875   :  { %v3090_v56 = vpack.c.bf16 %v3089_v54, %v3089_v54 }
0x1877   :  { %3204 = vrot.lane.b32.xlu1 %v3090_v56, %s4710_s0 }
0x187a   :  { %v3199_v25 = vpop.permute.xlu0 %3198 }
0x187b   :  { %v3201_v32 = vmul.f32 %v4657_v21, %v3199_v25 }
0x187d   :  { %v3202_v35 = vpack.c.bf16 %v3201_v32, %v3201_v32 }
0x187f   :  { %3322 = vrot.lane.b32.xlu1 %v3202_v35, %s4710_s0 }
0x18e1   :  { %v3251_v46 = vpop.permute.xlu0 %3250 }
0x18e2   :  { %4363 = vmatmul.mubr.msk.bf16.vlgmr.msra.gmra.mrb[104].mxu1 %vm217_vm2, %v3251_v46 }
0x18e3   :  { %4375 = vmatpush3.bf16.msra.mxu1 %v5336_v41  ;;  %4378 = vmatprep.mubr.msk.bf16.mxu1 %vm4707_vm0, %v4706_v0 }
0x18e4   :  { %4376 = vmatprep.subr.bf16.mxu1 %v4706_v0 }
0x18e7   :  { %4377 = vmatpush3.bf16.msra.mxu1 %v5354_v34 }
0x18e8   :  { %4390 = vmatprep.subr.bf16.mxu1 %v4706_v0 }
0x18e9   :  { %v3205_v58 = vpop.permute.xlu1 %3204 }
0x18ea   :  { %4355 = vmatmul.mubr.msk.bf16.vlgmr.msra.gmra.mrb[104].mxu0 %vm217_vm2, %v3205_v58  ;;  %4379 = vmatmul.mubr.msk.bf16.vlgmr.msra.gmra.mrb[108].mxu1 %vm217_vm2, %v3205_v58 }
0x18eb   :  { %4367 = vmatpush3.bf16.msra.mxu0 %v5364_v44  ;;  %4370 = vmatprep.mubr.msk.bf16.mxu0 %vm4707_vm0, %v4706_v0 }
0x18ec   :  { %4368 = vmatprep.subr.bf16.mxu0 %v4706_v0  ;;  %4391 = vmatpush3.bf16.msra.mxu1 %v5336_v41 }
0x18ed   :  { %4392 = vmatprep.subr.bf16.mxu1 %v4706_v0  ;;  %4394 = vmatprep.mubr.msk.bf16.mxu1 %vm4707_vm0, %v4706_v0 }
0x18ef   :  { %4369 = vmatpush3.bf16.msra.mxu0 %v5377_v16 }
0x18f0   :  { %4393 = vmatpush3.bf16.msra.mxu1 %v5354_v34  ;;  %4382 = vmatprep.subr.bf16.mxu0 %v4706_v0 }
0x18f1   :  { %v3323_v19 = vpop.permute.xlu1 %3322 }
0x18f2   :  { %4371 = vmatmul.mubr.msk.bf16.vlgmr.msra.gmra.mrb[108].mxu0 %vm217_vm2, %v3323_v19 }
0x18f3   :  { %4383 = vmatpush3.bf16.msra.mxu0 %v5364_v44  ;;  %4386 = vmatprep.mubr.msk.bf16.mxu0 %vm4707_vm0, %v4706_v0 }
0x18f4   :  { %4384 = vmatprep.subr.bf16.mxu0 %v4706_v0 }
0x18f7   :  { %4385 = vmatpush3.bf16.msra.mxu0 %v5377_v16 }
0x18f8   :  { %4398 = vmatprep.subr.bf16.mxu0 %v4706_v0 }
0x19b5   :  { %v3289_v41 = vpop.f32.mrb[104].mxu1 }
0x19b6   :  { %v4364_v7 = vpop.f32.mrb[105].mxu1 }
0x19b7   :  { %v3292_v37 = vpop.f32.mrb[106].mxu1 }
0x19b8   :  { %v4365_v34 = vpop.f32.mrb[107].mxu1 }
0x19bd   :  { %v3243_v43 = vpop.f32.mrb[104].mxu0  ;;  %v3401_v36 = vpop.f32.mrb[108].mxu1 }
0x19be   :  { %v3290_v22 = vadd.f32 %v3289_v41, %v3243_v43  ;;  %v4356_v8 = vpop.f32.mrb[105].mxu0  ;;  %v4380_v3 = vpop.f32.mrb[109].mxu1 }
0x19bf   :  { %v3246_v38 = vpop.f32.mrb[106].mxu0  ;;  %v3404_v44 = vpop.f32.mrb[110].mxu1  ;;  %v4431_v3 = vld [vmem:[%s5653_s5 + $0x8] sm:$0xff]  }
0x19c0   :  { %v3295_v61 = vadd.f32 %v5397_v18, %v3290_v22  ;;  %v4357_v15 = vpop.f32.mrb[107].mxu0  ;;  %v4381_v10 = vpop.f32.mrb[111].mxu1 }
0x19c2   :  { %4664 = vtanh.f32 %v3295_v61  ;;  %v3753_v62 = vmul.f32 -1.442695, %v3295_v61 }
0x19c5   :  { %v3361_v12 = vpop.f32.mrb[108].mxu0 }
0x19c6   :  { %v3402_v16 = vadd.f32 %v3401_v36, %v3361_v12  ;;  %v4372_v52 = vpop.f32.mrb[109].mxu0  ;;  %v3760_v12 = vld [vmem:[%s5654_s6] ss:$0 sm:$0xff] }
0x19c7   :  { %v3364_v13 = vpop.f32.mrb[110].mxu0 }
0x19c8   :  { %v3407_v23 = vadd.f32 %v5404_v30, %v3402_v16  ;;  %v4373_v14 = vpop.f32.mrb[111].mxu0 }
0x19ca   :  { %4666 = vtanh.f32 %v3407_v23  ;;  %v3756_v18 = vmul.f32 -1.442695, %v3407_v23 }
0x19cb   :  { %4668 = vpow2.f32 %v3753_v62 }
0x19cc   :  { %v4665_v4 = vpop.eup %4664  ;;  %4670 = vpow2.f32 %v3756_v18 }
0x19cd   :  { %3305 = vrot.lane.b32.xlu0 %v4665_v4, %s4709_s12 }
0x19d4   :  { %v4667_v39 = vpop.eup %4666 }
0x19d5   :  { %3417 = vrot.lane.b32.xlu1 %v4667_v39, %s4709_s12  ;;  %v4669_v53 = vpop.eup %4668 }
0x19d6   :  { %v3299_v2 = vadd.f32 1.0, %v4669_v53  ;;  %v4671_v9 = vpop.eup %4670 }
0x19d7   :  { %v3411_v27 = vadd.f32 1.0, %v4671_v9 }
0x19d8   :  { %4672 = vrcp.f32 %v3299_v2 }
0x19d9   :  { %4674 = vrcp.f32 %v3411_v27 }
0x19e2   :  { %v4673_v60 = vpop.eup %4672 }
0x19e3   :  { %v4675_v26 = vpop.eup %4674  ;;  %v3303_v63 = vmul.f32 %v4673_v60, %v5573_v50 }
0x19e4   :  { %v3415_v11 = vmul.f32 %v4675_v26, %v5578_v6 }
0x1a3f   :  { %v3306_v57 = vpop.permute.xlu0 %3305 }
0x1a40   :  { %v3308_v31 = vmul.f32 %v4673_v60, %v3306_v57 }
0x1a42   :  { %3310 = vrot.lane.b32.xlu0 %v3308_v31, %s4709_s12 }
0x1a47   :  { %v3418_v33 = vpop.permute.xlu1 %3417 }
0x1a48   :  { %v3420_v42 = vmul.f32 %v4675_v26, %v3418_v33 }
0x1a4a   :  { %3422 = vrot.lane.b32.xlu1 %v3420_v42, %s4709_s12 }
0x1ab4   :  { %v3311_v21 = vpop.permute.xlu0 %3310 }
0x1ab5   :  { %v3313_v17 = vadd.f32 %v3311_v21, %v3303_v63 }
0x1ab7   :  { %4676 = vtanh.f32 %v3313_v17 }
0x1abc   :  { %v3423_v20 = vpop.permute.xlu1 %3422 }
0x1abd   :  { %v3425_v48 = vadd.f32 %v3423_v20, %v3415_v11 }
0x1abf   :  { %4678 = vtanh.f32 %v3425_v48 }
0x1ac1   :  { %v4677_v45 = vpop.eup %4676 }
0x1ac2   :  { %3316 = vrot.lane.b32.xlu0 %v4677_v45, %s4709_s12 }
0x1ac9   :  { %v4679_v1 = vpop.eup %4678 }
0x1aca   :  { %3428 = vrot.lane.b32.xlu1 %v4679_v1, %s4709_s12 }
0x1b34   :  { %v3317_v40 = vpop.permute.xlu0 %3316 }
0x1b35   :  { %v3319_v49 = vmul.f32 %v4673_v60, %v3317_v40 }
0x1b37   :  { %v3320_v28 = vpack.c.bf16 %v3319_v49, %v3319_v49 }
0x1b39   :  { %3480 = vrot.lane.b32.xlu1 %v3320_v28, %s4710_s0 }
0x1b3c   :  { %v3429_v50 = vpop.permute.xlu1 %3428 }
0x1b3d   :  { %v3431_v51 = vmul.f32 %v4675_v26, %v3429_v50 }
0x1b3f   :  { %v3432_v59 = vpack.c.bf16 %v3431_v51, %v3431_v51 }
0x1b41   :  { %3434 = vrot.lane.b32.xlu0 %v3432_v59, %s4710_s0 }
0x1bab   :  { %v3481_v6 = vpop.permute.xlu1 %3480 }
0x1bac   :  { %4395 = vmatmul.mubr.msk.bf16.vlgmr.msra.gmra.mrb[112].mxu1 %vm217_vm2, %v3481_v6 }
0x1bb3   :  { %v3435_v5 = vpop.permute.xlu0 %3434 }
0x1bb4   :  { %4387 = vmatmul.mubr.msk.bf16.vlgmr.msra.gmra.mrb[112].mxu0 %vm217_vm2, %v3435_v5 }
0x1bb5   :  { %4402 = vmatprep.mubr.msk.bf16.mxu0 %vm4707_vm0, %v4706_v0 }
0x1c7f   :  { %v3519_v24 = vpop.f32.mrb[112].mxu1 }
0x1c80   :  { %v4396_v55 = vpop.f32.mrb[113].mxu1 }
0x1c81   :  { %v3522_v47 = vpop.f32.mrb[114].mxu1 }
0x1c82   :  { %v4397_v29 = vpop.f32.mrb[115].mxu1 }
0x1c87   :  { %v3473_v54 = vpop.f32.mrb[112].mxu0 }
0x1c88   :  { %v3520_v56 = vadd.f32 %v3519_v24, %v3473_v54  ;;  %v4388_v25 = vpop.f32.mrb[113].mxu0 }
0x1c89   :  { %v3476_v32 = vpop.f32.mrb[114].mxu0 }
0x1c8a   :  { %v3525_v35 = vadd.f32 %v5404_v30, %v3520_v56  ;;  %v4389_v46 = vpop.f32.mrb[115].mxu0  ;;  %v4430_v30 = vld [vmem:[%s5653_s5] sm:$0xff]  }
0x1c8b   :  { %4399 = vmatpush3.bf16.msra.mxu0 %v4430_v30 }
0x1c8c   :  { %4680 = vtanh.f32 %v3525_v35  ;;  %v3759_v19 = vmul.f32 -1.442695, %v3525_v35  ;;  %4400 = vmatprep.subr.bf16.mxu0 %v4706_v0 }
0x1c8e   :  { %4682 = vpow2.f32 %v3759_v19 }
0x1c8f   :  { %4401 = vmatpush3.bf16.msra.mxu0 %v4431_v3 }
0x1c96   :  { %v4681_v58 = vpop.eup %4680 }
0x1c97   :  { %3535 = vrot.lane.b32.xlu0 %v4681_v58, %s4709_s12 }
0x1c98   :  { %v4683_v41 = vpop.eup %4682 }
0x1c99   :  { %v3529_v7 = vadd.f32 1.0, %v4683_v41 }
0x1c9b   :  { %4684 = vrcp.f32 %v3529_v7 }
0x1ca5   :  { %v4685_v37 = vpop.eup %4684 }
0x1ca6   :  { %v3533_v36 = vmul.f32 %v4685_v37, %v3425_v48 }
0x1d09   :  { %v3536_v34 = vpop.permute.xlu0 %3535 }
0x1d0a   :  { %v3538_v43 = vmul.f32 %v4685_v37, %v3536_v34 }
0x1d0c   :  { %3540 = vrot.lane.b32.xlu1 %v3538_v43, %s4709_s12 }
0x1d7e   :  { %v3541_v22 = vpop.permute.xlu1 %3540 }
0x1d7f   :  { %v3543_v8 = vadd.f32 %v3541_v22, %v3533_v36 }
0x1d81   :  { %4686 = vtanh.f32 %v3543_v8 }
0x1d8b   :  { %v4687_v38 = vpop.eup %4686 }
0x1d8c   :  { %3546 = vrot.lane.b32.xlu0 %v4687_v38, %s4709_s12 }
0x1dfe   :  { %v3547_v44 = vpop.permute.xlu0 %3546 }
0x1dff   :  { %v3549_v61 = vmul.f32 %v4685_v37, %v3547_v44 }
0x1e01   :  { %v3550_v15 = vpack.c.bf16 %v3549_v61, %v3549_v61 }
0x1e03   :  { %3563 = vrot.lane.b32.xlu1 %v3550_v15, %s4710_s0 }
0x1e75   :  { %v3564_v10 = vpop.permute.xlu1 %3563 }
0x1e76   :  { %4403 = vmatmul.mubr.msk.bf16.vlgmr.msra.gmra.mrb[116].mxu0 %vm217_vm2, %v3564_v10 }
0x1f49   :  { %v3614_v16 = vpop.f32.mrb[116].mxu0 }
0x1f4a   :  { %v3615_v52 = vadd.f32 %v3760_v12, %v3614_v16  ;;  %v4404_v0 = vpop.f32.mrb[117].mxu0 }
0x1f4b   :  { %v3617_v13 = vpop.f32.mrb[118].mxu0 }
0x1f4c   :  { %3621 = vst.msk [vmem:[%s5655_s7] sm:$0xff] %vm3620_vm3, %v3615_v52  ;;  %v4405_v23 = vpop.f32.mrb[119].mxu0 }

</bundles_post_ra>
